<compile_context>
chip_gen: v7x
topology: tpu7x:2x2x1
jax: 0.10.0
libtpu: 0.0.40
codegen_flags: <defaults>
</compile_context>

<pallas_src>
import functools
import math

import jax
import jax.numpy as jnp
from jax.experimental import pallas as pl
from jax.experimental.pallas import tpu as pltpu


def _encoder_stack_kernel(num_heads, num_layers, rows_per_block, seq_len,
                          x_ref,
                          wqkv_ref, bqkv_ref, wo_ref, bo_ref,
                          ln1w_ref, ln1b_ref,
                          w1_ref, b1_ref, w2_ref, b2_ref,
                          ln2w_ref, ln2b_ref,
                          o_ref):
    """All transformer layers applied to one (rows_per_block*T, H) row slab."""
    eps = 1e-5
    Nb, T = rows_per_block, seq_len
    M, H = x_ref.shape                       # M = Nb * T
    nh = num_heads
    dh = H // nh
    scale = 1.0 / math.sqrt(dh)

    x = x_ref[...].astype(jnp.float32)       # f32 residual stream

    for l in range(num_layers):              # static unroll: all layers fused
        # ---- fused QKV projection (bf16 MXU operands, f32 accumulation) ----
        qkv = jnp.dot(x.astype(jnp.bfloat16), wqkv_ref[l],
                      preferred_element_type=jnp.float32) + bqkv_ref[l]   # (M, 3H)
        qkv3 = qkv.reshape(Nb, T, 3 * H)

        # ---- self-attention ----
        # Static per-head loop, batched over the Nb sequences in the slab.
        # Each head's context goes straight through its dh-row slice of the
        # out-projection and is accumulated in f32: no per-head concatenate.
        attn = jnp.zeros((M, H), jnp.float32)
        for h in range(nh):
            qh = (qkv3[:, :, h * dh:(h + 1) * dh] * scale).astype(jnp.bfloat16)
            kh = qkv3[:, :, H + h * dh:H + (h + 1) * dh].astype(jnp.bfloat16)
            vh = qkv3[:, :, 2 * H + h * dh:2 * H + (h + 1) * dh].astype(jnp.bfloat16)
            s = jnp.einsum('bqd,bkd->bqk', qh, kh,
                           preferred_element_type=jnp.float32)            # (Nb,T,T)
            s = s - jnp.max(s, axis=-1, keepdims=True)                    # f32 stats
            p = jnp.exp(s)
            p = p * pl.reciprocal(jnp.sum(p, axis=-1, keepdims=True), approx=True)
            ctx = jnp.einsum('bqk,bkd->bqd', p.astype(jnp.bfloat16), vh,
                             preferred_element_type=jnp.float32)          # (Nb,T,dh)
            attn = attn + jnp.dot(ctx.reshape(M, dh).astype(jnp.bfloat16),
                                  wo_ref[l, h * dh:(h + 1) * dh, :],
                                  preferred_element_type=jnp.float32)
        attn = attn + bo_ref[l]

        # TODO(synk): dropout omitted (inference / eval semantics -> identity).

        # ---- residual + LayerNorm1 (f32) ----
        y = x + attn
        mu = jnp.mean(y, axis=-1, keepdims=True)
        var = jnp.mean(jnp.square(y - mu), axis=-1, keepdims=True)
        y = (y - mu) * jax.lax.rsqrt(var + eps) * ln1w_ref[l] + ln1b_ref[l]

        # ---- feed-forward: relu(y @ W1 + b1) @ W2 + b2 (bf16 MXU, f32 acc) ----
        hdn = jnp.dot(y.astype(jnp.bfloat16), w1_ref[l],
                      preferred_element_type=jnp.float32) + b1_ref[l]
        hdn = jnp.maximum(hdn, 0.0).astype(jnp.bfloat16)   # halve largest live buffer
        ff = jnp.dot(hdn, w2_ref[l],
                     preferred_element_type=jnp.float32) + b2_ref[l]

        # ---- residual + LayerNorm2 (f32) ----
        z = y + ff
        mu2 = jnp.mean(z, axis=-1, keepdims=True)
        var2 = jnp.mean(jnp.square(z - mu2), axis=-1, keepdims=True)
        x = (z - mu2) * jax.lax.rsqrt(var2 + eps) * ln2w_ref[l] + ln2b_ref[l]

    o_ref[...] = x.astype(o_ref.dtype)


def _choose_rows_per_block(N, T):
    """Pick batch rows per grid step.

    Targets ~512-row (M) matmul slabs, prefers nb that divides N (no padded-row
    compute) and an even number of grid steps (v7x: two TensorCores share the
    'parallel' axis), and keeps nb*T a multiple of 16 so the bf16 activation
    block satisfies sublane tiling.
    """
    SUB = 16
    target_nb = max(1, 512 // max(T, 1))
    best = None
    for nb in range(1, min(target_nb, N) + 1):
        if (nb * T) % SUB:
            continue
        n_blocks = pl.cdiv(N, nb)
        key = (N % nb == 0, n_blocks % 2 == 0, nb)
        if best is None or key > best[0]:
            best = (key, nb)
    if best is not None:
        return best[1]
    # Fallback: a single block covering the whole (unpadded) batch; the block
    # then equals the full array extent, so no sublane alignment is required.
    return N


def _vmem_limit_bytes(rows, T, H, F, L):
    """Scoped-VMEM budget: weights + pipelined activation blocks + intermediates."""
    bf16, f32 = 2, 4
    weights = L * (3 * H * H + H * H + 2 * H * F) * bf16          # single-buffered
    small = L * (3 * H + H + F + H + 4 * H) * f32                 # biases + LN params
    act_io = 2 * 2 * rows * H * bf16                              # in+out, double-buffered
    nb = max(rows // max(T, 1), 1)
    interm = (rows * H + rows * 3 * H + rows * F) * f32 + 2 * nb * T * T * f32
    est = weights + small + act_io + interm
    # 2x headroom, floor 32 MiB, cap at v7x's 64 MiB physical VMEM.
    return int(min(max(2 * est, 32 << 20), 64 << 20))


def encoder_stack(x, params, num_heads):
    """Run all fused encoder layers on x: (N, T, H) -> (N, T, H)."""
    N, T, H = x.shape
    L = params["wqkv"].shape[0]
    F = params["w1"].shape[-1]

    nb = _choose_rows_per_block(N, T)
    n_blocks = pl.cdiv(N, nb)
    n_pad = n_blocks * nb
    if n_pad != N:
        x = jnp.concatenate([x, jnp.zeros((n_pad - N, T, H), x.dtype)], axis=0)
    x2 = x.reshape(n_pad * T, H).astype(jnp.bfloat16)   # bf16 lane-dense 2-D slab
    rows = nb * T

    kernel = functools.partial(_encoder_stack_kernel, num_heads, L, nb, T)

    # Grid-invariant weights/biases/LN params: one resident VMEM copy
    # (no pipeline double-buffering).
    weight_spec = pl.BlockSpec(memory_space=pltpu.MemorySpace.VMEM)

    out2 = pl.pallas_call(
        kernel,
        out_shape=jax.ShapeDtypeStruct((n_pad * T, H), jnp.bfloat16),
        grid_spec=pltpu.PrefetchScalarGridSpec(
            num_scalar_prefetch=0,
            grid=(n_blocks,),
            in_specs=[
                pl.BlockSpec((rows, H), lambda i: (i, 0)),   # activation row slab
                weight_spec,   # wqkv (L, H, 3H) bf16
                weight_spec,   # bqkv (L, 1, 3H) f32
                weight_spec,   # wo   (L, H, H)  bf16
                weight_spec,   # bo   (L, 1, H)  f32
                weight_spec,   # ln1w (L, 1, H)  f32
                weight_spec,   # ln1b (L, 1, H)  f32
                weight_spec,   # w1   (L, H, F)  bf16
                weight_spec,   # b1   (L, 1, F)  f32
                weight_spec,   # w2   (L, F, H)  bf16
                weight_spec,   # b2   (L, 1, H)  f32
                weight_spec,   # ln2w (L, 1, H)  f32
                weight_spec,   # ln2b (L, 1, H)  f32
            ],
            out_specs=pl.BlockSpec((rows, H), lambda i: (i, 0)),
        ),
        compiler_params=pltpu.CompilerParams(
            dimension_semantics=("parallel",),
            vmem_limit_bytes=_vmem_limit_bytes(rows, T, H, F, L)),
    )(x2, params["wqkv"], params["bqkv"], params["wo"], params["bo"],
      params["ln1w"], params["ln1b"], params["w1"], params["b1"],
      params["w2"], params["b2"], params["ln2w"], params["ln2b"])

    return out2.reshape(n_pad, T, H)[:N].astype(jnp.float32)


def transformer_encoder_forward(src, params, num_heads):
    # Glue: embedding-table gathers stay in plain JAX (data-dependent gather);
    # the transformer hot path (matmuls / softmax / layernorm, both layers)
    # runs in one fused Pallas kernel.
    N, T = src.shape
    max_length = params["pos_embed"].shape[0]
    assert T == max_length, "PyTorch forward only broadcasts when T == max_length"
    tok_emb = jnp.take(params["tok_embed"], src, axis=0)              # (N, T, H)
    pos_emb = jnp.take(params["pos_embed"], jnp.arange(T), axis=0)    # (T, H)
    x = (tok_emb + pos_emb[None, :, :]).astype(jnp.float32)
    return encoder_stack(x, params, num_heads)


def init_params(key, vocab, hidden, num_layers, ffn_dim, max_length):
    keys = jax.random.split(key, 2 + num_layers)

    def dense(k, shape, scale=0.02):
        return (scale * jax.random.normal(k, shape)).astype(jnp.float32)

    wqkv, wo, w1, w2 = [], [], [], []
    for l in range(num_layers):
        ks = jax.random.split(keys[2 + l], 4)
        wqkv.append(dense(ks[0], (hidden, 3 * hidden)))
        wo.append(dense(ks[1], (hidden, hidden)))
        w1.append(dense(ks[2], (hidden, ffn_dim)))
        w2.append(dense(ks[3], (ffn_dim, hidden)))

    return {
        "tok_embed": dense(keys[0], (vocab, hidden)),
        "pos_embed": dense(keys[1], (max_length, hidden)),
        # MXU operand weights stored in bf16 (halves weight DMA bytes / VMEM
        # residency; accumulation stays f32). Biases & LayerNorm params in f32.
        "wqkv": jnp.stack(wqkv).astype(jnp.bfloat16),
        "wo":   jnp.stack(wo).astype(jnp.bfloat16),
        "w1":   jnp.stack(w1).astype(jnp.bfloat16),
        "w2":   jnp.stack(w2).astype(jnp.bfloat16),
        "bqkv": jnp.zeros((num_layers, 1, 3 * hidden), jnp.float32),
        "bo":   jnp.zeros((num_layers, 1, hidden), jnp.float32),
        "b1":   jnp.zeros((num_layers, 1, ffn_dim), jnp.float32),
        "b2":   jnp.zeros((num_layers, 1, hidden), jnp.float32),
        "ln1w": jnp.ones((num_layers, 1, hidden), jnp.float32),
        "ln1b": jnp.zeros((num_layers, 1, hidden), jnp.float32),
        "ln2w": jnp.ones((num_layers, 1, hidden), jnp.float32),
        "ln2b": jnp.zeros((num_layers, 1, hidden), jnp.float32),
    }


if __name__ == "__main__":
    # Small shapes consistent with the module: T = max_length = 8 (the PyTorch
    # forward only broadcasts when T == max_length), hidden=32, 4 heads,
    # 2 layers, ffn=64, vocab=50. N=4 gives two even grid blocks (16-row bf16
    # slabs), exercising the multi-block / megacore-parallel path.
    N, T = 4, 8
    vocab, hidden, heads, layers, ffn = 50, 32, 4, 2, 64
    max_length = T

    key = jax.random.PRNGKey(0)
    pkey, dkey = jax.random.split(key)
    params = init_params(pkey, vocab, hidden, layers, ffn, max_length)
    src = jax.random.randint(dkey, (N, T), 0, vocab, dtype=jnp.int32)

    out = transformer_encoder_forward(src, params, heads)
    out = jax.block_until_ready(out)
    assert out.shape == (N, T, hidden), out.shape
    assert bool(jnp.all(jnp.isfinite(out)))
    print("KERNEL_OK")
</pallas_src>

<mosaic_0001>
module attributes {stable_mosaic.version = 11 : i64} {
  func.func @_encoder_stack_kernel(%arg0: i32, %arg1: memref<16x32xbf16, #tpu.memory_space<vmem>>, %arg2: memref<2x32x96xbf16, #tpu.memory_space<vmem>>, %arg3: memref<2x1x96xf32, #tpu.memory_space<vmem>>, %arg4: memref<2x32x32xbf16, #tpu.memory_space<vmem>>, %arg5: memref<2x1x32xf32, #tpu.memory_space<vmem>>, %arg6: memref<2x1x32xf32, #tpu.memory_space<vmem>>, %arg7: memref<2x1x32xf32, #tpu.memory_space<vmem>>, %arg8: memref<2x32x64xbf16, #tpu.memory_space<vmem>>, %arg9: memref<2x1x64xf32, #tpu.memory_space<vmem>>, %arg10: memref<2x64x32xbf16, #tpu.memory_space<vmem>>, %arg11: memref<2x1x32xf32, #tpu.memory_space<vmem>>, %arg12: memref<2x1x32xf32, #tpu.memory_space<vmem>>, %arg13: memref<2x1x32xf32, #tpu.memory_space<vmem>>, %arg14: memref<16x32xbf16, #tpu.memory_space<vmem>>) attributes {dimension_semantics = [#tpu.dimension_semantics<parallel>], iteration_bounds = array<i64: 2>, scalar_prefetch = 0 : i64, scratch_operands = 0 : i64, tpu.core_type = #tpu.core_type<tc>, window_params = [{transform_indices = @transform_0, window_bounds = array<i64: 16, 32>}, {pipeline_mode = #tpu.pipeline_mode<synchronous>, transform_indices = @transform_1, window_bounds = array<i64: 2, 32, 96>}, {pipeline_mode = #tpu.pipeline_mode<synchronous>, transform_indices = @transform_2, window_bounds = array<i64: 2, 1, 96>}, {pipeline_mode = #tpu.pipeline_mode<synchronous>, transform_indices = @transform_3, window_bounds = array<i64: 2, 32, 32>}, {pipeline_mode = #tpu.pipeline_mode<synchronous>, transform_indices = @transform_4, window_bounds = array<i64: 2, 1, 32>}, {pipeline_mode = #tpu.pipeline_mode<synchronous>, transform_indices = @transform_5, window_bounds = array<i64: 2, 1, 32>}, {pipeline_mode = #tpu.pipeline_mode<synchronous>, transform_indices = @transform_6, window_bounds = array<i64: 2, 1, 32>}, {pipeline_mode = #tpu.pipeline_mode<synchronous>, transform_indices = @transform_7, window_bounds = array<i64: 2, 32, 64>}, {pipeline_mode = #tpu.pipeline_mode<synchronous>, transform_indices = @transform_8, window_bounds = array<i64: 2, 1, 64>}, {pipeline_mode = #tpu.pipeline_mode<synchronous>, transform_indices = @transform_9, window_bounds = array<i64: 2, 64, 32>}, {pipeline_mode = #tpu.pipeline_mode<synchronous>, transform_indices = @transform_10, window_bounds = array<i64: 2, 1, 32>}, {pipeline_mode = #tpu.pipeline_mode<synchronous>, transform_indices = @transform_11, window_bounds = array<i64: 2, 1, 32>}, {pipeline_mode = #tpu.pipeline_mode<synchronous>, transform_indices = @transform_12, window_bounds = array<i64: 2, 1, 32>}, {transform_indices = @transform_13, window_bounds = array<i64: 16, 32>}]} {
    %c0 = arith.constant 0 : index
    %c0_0 = arith.constant 0 : index
    %0 = vector.load %arg1[%c0, %c0_0] : memref<16x32xbf16, #tpu.memory_space<vmem>>, vector<16x32xbf16>
    %1 = arith.extf %0 : vector<16x32xbf16> to vector<16x32xf32>
    %2 = arith.truncf %1 : vector<16x32xf32> to vector<16x32xbf16>
    %c0_1 = arith.constant 0 : index
    %c0_2 = arith.constant 0 : index
    %c0_3 = arith.constant 0 : index
    %3 = vector.load %arg2[%c0_1, %c0_2, %c0_3] : memref<2x32x96xbf16, #tpu.memory_space<vmem>>, vector<1x32x96xbf16>
    %4 = vector.shape_cast %3 : vector<1x32x96xbf16> to vector<32x96xbf16>
    %cst = arith.constant dense<0.000000e+00> : vector<16x96xf32>
    %5 = tpu.matmul %2, %4, %cst {dimension_numbers = #tpu.dot_dimension_numbers<[1], [0], [0], [1], [0, 0, 1, 1], [], []>} : vector<16x32xbf16>, vector<32x96xbf16>, vector<16x96xf32> -> vector<16x96xf32>
    %c0_4 = arith.constant 0 : index
    %c0_5 = arith.constant 0 : index
    %c0_6 = arith.constant 0 : index
    %6 = vector.load %arg3[%c0_4, %c0_5, %c0_6] : memref<2x1x96xf32, #tpu.memory_space<vmem>>, vector<1x1x96xf32>
    %7 = vector.shape_cast %6 : vector<1x1x96xf32> to vector<1x96xf32>
    %8 = vector.broadcast %7 : vector<1x96xf32> to vector<16x96xf32>
    %9 = arith.addf %5, %8 : vector<16x96xf32>
    %10 = vector.shape_cast %9 : vector<16x96xf32> to vector<2x8x96xf32>
    %cst_7 = arith.constant 0.000000e+00 : f32
    %11 = vector.broadcast %cst_7 : f32 to vector<16x32xf32>
    %12 = vector.extract_strided_slice %10 {offsets = [0, 0, 0], sizes = [2, 8, 8], strides = [1, 1, 1]} : vector<2x8x96xf32> to vector<2x8x8xf32>
    %cst_8 = arith.constant 0.353553385 : f32
    %13 = vector.broadcast %cst_8 : f32 to vector<2x8x8xf32>
    %14 = arith.mulf %12, %13 : vector<2x8x8xf32>
    %15 = arith.truncf %14 : vector<2x8x8xf32> to vector<2x8x8xbf16>
    %16 = vector.extract_strided_slice %10 {offsets = [0, 0, 32], sizes = [2, 8, 8], strides = [1, 1, 1]} : vector<2x8x96xf32> to vector<2x8x8xf32>
    %17 = arith.truncf %16 : vector<2x8x8xf32> to vector<2x8x8xbf16>
    %18 = vector.extract_strided_slice %10 {offsets = [0, 0, 64], sizes = [2, 8, 8], strides = [1, 1, 1]} : vector<2x8x96xf32> to vector<2x8x8xf32>
    %19 = arith.truncf %18 : vector<2x8x8xf32> to vector<2x8x8xbf16>
    "tpu.trace_start"() <{level = 10 : i32, message = "bqd,bkd->bqk"}> : () -> ()
    %cst_9 = arith.constant dense<0.000000e+00> : vector<2x8x8xf32>
    %20 = tpu.matmul %15, %17, %cst_9 {dimension_numbers = #tpu.dot_dimension_numbers<[2], [2], [1], [1], [0, 0, 0, 1, 1, 1], [0], [0]>} : vector<2x8x8xbf16>, vector<2x8x8xbf16>, vector<2x8x8xf32> -> vector<2x8x8xf32>
    "tpu.trace_stop"() : () -> ()
    %cst_10 = arith.constant dense<0xFF800000> : vector<2x8xf32>
    %21 = vector.multi_reduction <maximumf>, %20, %cst_10 [2] : vector<2x8x8xf32> to vector<2x8xf32>
    %22 = vector.shape_cast %21 : vector<2x8xf32> to vector<2x8x1xf32>
    %23 = vector.broadcast %22 : vector<2x8x1xf32> to vector<2x8x8xf32>
    %24 = arith.subf %20, %23 : vector<2x8x8xf32>
    %25 = math.exp %24 : vector<2x8x8xf32>
    %cst_11 = arith.constant dense<0.000000e+00> : vector<2x8xf32>
    %26 = vector.multi_reduction <add>, %25, %cst_11 [2] : vector<2x8x8xf32> to vector<2x8xf32>
    %27 = vector.shape_cast %26 : vector<2x8xf32> to vector<2x8x1xf32>
    %28 = tpu.reciprocal %27 {approx = true} : vector<2x8x1xf32> -> vector<2x8x1xf32>
    %29 = vector.broadcast %28 : vector<2x8x1xf32> to vector<2x8x8xf32>
    %30 = arith.mulf %25, %29 : vector<2x8x8xf32>
    %31 = arith.truncf %30 : vector<2x8x8xf32> to vector<2x8x8xbf16>
    "tpu.trace_start"() <{level = 10 : i32, message = "bqk,bkd->bqd"}> : () -> ()
    %cst_12 = arith.constant dense<0.000000e+00> : vector<2x8x8xf32>
    %32 = tpu.matmul %31, %19, %cst_12 {dimension_numbers = #tpu.dot_dimension_numbers<[2], [1], [1], [2], [0, 0, 0, 1, 1, 2], [0], [0]>} : vector<2x8x8xbf16>, vector<2x8x8xbf16>, vector<2x8x8xf32> -> vector<2x8x8xf32>
    "tpu.trace_stop"() : () -> ()
    %33 = vector.shape_cast %32 : vector<2x8x8xf32> to vector<16x8xf32>
    %34 = arith.truncf %33 : vector<16x8xf32> to vector<16x8xbf16>
    %c0_13 = arith.constant 0 : index
    %c0_14 = arith.constant 0 : index
    %c0_15 = arith.constant 0 : index
    %35 = vector.load %arg4[%c0_13, %c0_14, %c0_15] : memref<2x32x32xbf16, #tpu.memory_space<vmem>>, vector<1x8x32xbf16>
    %36 = vector.shape_cast %35 : vector<1x8x32xbf16> to vector<8x32xbf16>
    %cst_16 = arith.constant dense<0.000000e+00> : vector<16x32xf32>
    %37 = tpu.matmul %34, %36, %cst_16 {dimension_numbers = #tpu.dot_dimension_numbers<[1], [0], [0], [1], [0, 0, 1, 1], [], []>} : vector<16x8xbf16>, vector<8x32xbf16>, vector<16x32xf32> -> vector<16x32xf32>
    %38 = arith.addf %11, %37 : vector<16x32xf32>
    %39 = vector.extract_strided_slice %10 {offsets = [0, 0, 8], sizes = [2, 8, 8], strides = [1, 1, 1]} : vector<2x8x96xf32> to vector<2x8x8xf32>
    %cst_17 = arith.constant 0.353553385 : f32
    %40 = vector.broadcast %cst_17 : f32 to vector<2x8x8xf32>
    %41 = arith.mulf %39, %40 : vector<2x8x8xf32>
    %42 = arith.truncf %41 : vector<2x8x8xf32> to vector<2x8x8xbf16>
    %43 = vector.extract_strided_slice %10 {offsets = [0, 0, 40], sizes = [2, 8, 8], strides = [1, 1, 1]} : vector<2x8x96xf32> to vector<2x8x8xf32>
    %44 = arith.truncf %43 : vector<2x8x8xf32> to vector<2x8x8xbf16>
    %45 = vector.extract_strided_slice %10 {offsets = [0, 0, 72], sizes = [2, 8, 8], strides = [1, 1, 1]} : vector<2x8x96xf32> to vector<2x8x8xf32>
    %46 = arith.truncf %45 : vector<2x8x8xf32> to vector<2x8x8xbf16>
    "tpu.trace_start"() <{level = 10 : i32, message = "bqd,bkd->bqk"}> : () -> ()
    %cst_18 = arith.constant dense<0.000000e+00> : vector<2x8x8xf32>
    %47 = tpu.matmul %42, %44, %cst_18 {dimension_numbers = #tpu.dot_dimension_numbers<[2], [2], [1], [1], [0, 0, 0, 1, 1, 1], [0], [0]>} : vector<2x8x8xbf16>, vector<2x8x8xbf16>, vector<2x8x8xf32> -> vector<2x8x8xf32>
    "tpu.trace_stop"() : () -> ()
    %cst_19 = arith.constant dense<0xFF800000> : vector<2x8xf32>
    %48 = vector.multi_reduction <maximumf>, %47, %cst_19 [2] : vector<2x8x8xf32> to vector<2x8xf32>
    %49 = vector.shape_cast %48 : vector<2x8xf32> to vector<2x8x1xf32>
    %50 = vector.broadcast %49 : vector<2x8x1xf32> to vector<2x8x8xf32>
    %51 = arith.subf %47, %50 : vector<2x8x8xf32>
    %52 = math.exp %51 : vector<2x8x8xf32>
    %cst_20 = arith.constant dense<0.000000e+00> : vector<2x8xf32>
    %53 = vector.multi_reduction <add>, %52, %cst_20 [2] : vector<2x8x8xf32> to vector<2x8xf32>
    %54 = vector.shape_cast %53 : vector<2x8xf32> to vector<2x8x1xf32>
    %55 = tpu.reciprocal %54 {approx = true} : vector<2x8x1xf32> -> vector<2x8x1xf32>
    %56 = vector.broadcast %55 : vector<2x8x1xf32> to vector<2x8x8xf32>
    %57 = arith.mulf %52, %56 : vector<2x8x8xf32>
    %58 = arith.truncf %57 : vector<2x8x8xf32> to vector<2x8x8xbf16>
    "tpu.trace_start"() <{level = 10 : i32, message = "bqk,bkd->bqd"}> : () -> ()
    %cst_21 = arith.constant dense<0.000000e+00> : vector<2x8x8xf32>
    %59 = tpu.matmul %58, %46, %cst_21 {dimension_numbers = #tpu.dot_dimension_numbers<[2], [1], [1], [2], [0, 0, 0, 1, 1, 2], [0], [0]>} : vector<2x8x8xbf16>, vector<2x8x8xbf16>, vector<2x8x8xf32> -> vector<2x8x8xf32>
    "tpu.trace_stop"() : () -> ()
    %60 = vector.shape_cast %59 : vector<2x8x8xf32> to vector<16x8xf32>
    %61 = arith.truncf %60 : vector<16x8xf32> to vector<16x8xbf16>
    %c0_22 = arith.constant 0 : index
    %c8 = arith.constant 8 : index
    %c0_23 = arith.constant 0 : index
    %62 = vector.load %arg4[%c0_22, %c8, %c0_23] : memref<2x32x32xbf16, #tpu.memory_space<vmem>>, vector<1x8x32xbf16>
    %63 = vector.shape_cast %62 : vector<1x8x32xbf16> to vector<8x32xbf16>
    %cst_24 = arith.constant dense<0.000000e+00> : vector<16x32xf32>
    %64 = tpu.matmul %61, %63, %cst_24 {dimension_numbers = #tpu.dot_dimension_numbers<[1], [0], [0], [1], [0, 0, 1, 1], [], []>} : vector<16x8xbf16>, vector<8x32xbf16>, vector<16x32xf32> -> vector<16x32xf32>
    %65 = arith.addf %38, %64 : vector<16x32xf32>
    %66 = vector.extract_strided_slice %10 {offsets = [0, 0, 16], sizes = [2, 8, 8], strides = [1, 1, 1]} : vector<2x8x96xf32> to vector<2x8x8xf32>
    %cst_25 = arith.constant 0.353553385 : f32
    %67 = vector.broadcast %cst_25 : f32 to vector<2x8x8xf32>
    %68 = arith.mulf %66, %67 : vector<2x8x8xf32>
    %69 = arith.truncf %68 : vector<2x8x8xf32> to vector<2x8x8xbf16>
    %70 = vector.extract_strided_slice %10 {offsets = [0, 0, 48], sizes = [2, 8, 8], strides = [1, 1, 1]} : vector<2x8x96xf32> to vector<2x8x8xf32>
    %71 = arith.truncf %70 : vector<2x8x8xf32> to vector<2x8x8xbf16>
    %72 = vector.extract_strided_slice %10 {offsets = [0, 0, 80], sizes = [2, 8, 8], strides = [1, 1, 1]} : vector<2x8x96xf32> to vector<2x8x8xf32>
    %73 = arith.truncf %72 : vector<2x8x8xf32> to vector<2x8x8xbf16>
    "tpu.trace_start"() <{level = 10 : i32, message = "bqd,bkd->bqk"}> : () -> ()
    %cst_26 = arith.constant dense<0.000000e+00> : vector<2x8x8xf32>
    %74 = tpu.matmul %69, %71, %cst_26 {dimension_numbers = #tpu.dot_dimension_numbers<[2], [2], [1], [1], [0, 0, 0, 1, 1, 1], [0], [0]>} : vector<2x8x8xbf16>, vector<2x8x8xbf16>, vector<2x8x8xf32> -> vector<2x8x8xf32>
    "tpu.trace_stop"() : () -> ()
    %cst_27 = arith.constant dense<0xFF800000> : vector<2x8xf32>
    %75 = vector.multi_reduction <maximumf>, %74, %cst_27 [2] : vector<2x8x8xf32> to vector<2x8xf32>
    %76 = vector.shape_cast %75 : vector<2x8xf32> to vector<2x8x1xf32>
    %77 = vector.broadcast %76 : vector<2x8x1xf32> to vector<2x8x8xf32>
    %78 = arith.subf %74, %77 : vector<2x8x8xf32>
    %79 = math.exp %78 : vector<2x8x8xf32>
    %cst_28 = arith.constant dense<0.000000e+00> : vector<2x8xf32>
    %80 = vector.multi_reduction <add>, %79, %cst_28 [2] : vector<2x8x8xf32> to vector<2x8xf32>
    %81 = vector.shape_cast %80 : vector<2x8xf32> to vector<2x8x1xf32>
    %82 = tpu.reciprocal %81 {approx = true} : vector<2x8x1xf32> -> vector<2x8x1xf32>
    %83 = vector.broadcast %82 : vector<2x8x1xf32> to vector<2x8x8xf32>
    %84 = arith.mulf %79, %83 : vector<2x8x8xf32>
    %85 = arith.truncf %84 : vector<2x8x8xf32> to vector<2x8x8xbf16>
    "tpu.trace_start"() <{level = 10 : i32, message = "bqk,bkd->bqd"}> : () -> ()
    %cst_29 = arith.constant dense<0.000000e+00> : vector<2x8x8xf32>
    %86 = tpu.matmul %85, %73, %cst_29 {dimension_numbers = #tpu.dot_dimension_numbers<[2], [1], [1], [2], [0, 0, 0, 1, 1, 2], [0], [0]>} : vector<2x8x8xbf16>, vector<2x8x8xbf16>, vector<2x8x8xf32> -> vector<2x8x8xf32>
    "tpu.trace_stop"() : () -> ()
    %87 = vector.shape_cast %86 : vector<2x8x8xf32> to vector<16x8xf32>
    %88 = arith.truncf %87 : vector<16x8xf32> to vector<16x8xbf16>
    %c0_30 = arith.constant 0 : index
    %c16 = arith.constant 16 : index
    %c0_31 = arith.constant 0 : index
    %89 = vector.load %arg4[%c0_30, %c16, %c0_31] : memref<2x32x32xbf16, #tpu.memory_space<vmem>>, vector<1x8x32xbf16>
    %90 = vector.shape_cast %89 : vector<1x8x32xbf16> to vector<8x32xbf16>
    %cst_32 = arith.constant dense<0.000000e+00> : vector<16x32xf32>
    %91 = tpu.matmul %88, %90, %cst_32 {dimension_numbers = #tpu.dot_dimension_numbers<[1], [0], [0], [1], [0, 0, 1, 1], [], []>} : vector<16x8xbf16>, vector<8x32xbf16>, vector<16x32xf32> -> vector<16x32xf32>
    %92 = arith.addf %65, %91 : vector<16x32xf32>
    %93 = vector.extract_strided_slice %10 {offsets = [0, 0, 24], sizes = [2, 8, 8], strides = [1, 1, 1]} : vector<2x8x96xf32> to vector<2x8x8xf32>
    %cst_33 = arith.constant 0.353553385 : f32
    %94 = vector.broadcast %cst_33 : f32 to vector<2x8x8xf32>
    %95 = arith.mulf %93, %94 : vector<2x8x8xf32>
    %96 = arith.truncf %95 : vector<2x8x8xf32> to vector<2x8x8xbf16>
    %97 = vector.extract_strided_slice %10 {offsets = [0, 0, 56], sizes = [2, 8, 8], strides = [1, 1, 1]} : vector<2x8x96xf32> to vector<2x8x8xf32>
    %98 = arith.truncf %97 : vector<2x8x8xf32> to vector<2x8x8xbf16>
    %99 = vector.extract_strided_slice %10 {offsets = [0, 0, 88], sizes = [2, 8, 8], strides = [1, 1, 1]} : vector<2x8x96xf32> to vector<2x8x8xf32>
    %100 = arith.truncf %99 : vector<2x8x8xf32> to vector<2x8x8xbf16>
    "tpu.trace_start"() <{level = 10 : i32, message = "bqd,bkd->bqk"}> : () -> ()
    %cst_34 = arith.constant dense<0.000000e+00> : vector<2x8x8xf32>
    %101 = tpu.matmul %96, %98, %cst_34 {dimension_numbers = #tpu.dot_dimension_numbers<[2], [2], [1], [1], [0, 0, 0, 1, 1, 1], [0], [0]>} : vector<2x8x8xbf16>, vector<2x8x8xbf16>, vector<2x8x8xf32> -> vector<2x8x8xf32>
    "tpu.trace_stop"() : () -> ()
    %cst_35 = arith.constant dense<0xFF800000> : vector<2x8xf32>
    %102 = vector.multi_reduction <maximumf>, %101, %cst_35 [2] : vector<2x8x8xf32> to vector<2x8xf32>
    %103 = vector.shape_cast %102 : vector<2x8xf32> to vector<2x8x1xf32>
    %104 = vector.broadcast %103 : vector<2x8x1xf32> to vector<2x8x8xf32>
    %105 = arith.subf %101, %104 : vector<2x8x8xf32>
    %106 = math.exp %105 : vector<2x8x8xf32>
    %cst_36 = arith.constant dense<0.000000e+00> : vector<2x8xf32>
    %107 = vector.multi_reduction <add>, %106, %cst_36 [2] : vector<2x8x8xf32> to vector<2x8xf32>
    %108 = vector.shape_cast %107 : vector<2x8xf32> to vector<2x8x1xf32>
    %109 = tpu.reciprocal %108 {approx = true} : vector<2x8x1xf32> -> vector<2x8x1xf32>
    %110 = vector.broadcast %109 : vector<2x8x1xf32> to vector<2x8x8xf32>
    %111 = arith.mulf %106, %110 : vector<2x8x8xf32>
    %112 = arith.truncf %111 : vector<2x8x8xf32> to vector<2x8x8xbf16>
    "tpu.trace_start"() <{level = 10 : i32, message = "bqk,bkd->bqd"}> : () -> ()
    %cst_37 = arith.constant dense<0.000000e+00> : vector<2x8x8xf32>
    %113 = tpu.matmul %112, %100, %cst_37 {dimension_numbers = #tpu.dot_dimension_numbers<[2], [1], [1], [2], [0, 0, 0, 1, 1, 2], [0], [0]>} : vector<2x8x8xbf16>, vector<2x8x8xbf16>, vector<2x8x8xf32> -> vector<2x8x8xf32>
    "tpu.trace_stop"() : () -> ()
    %114 = vector.shape_cast %113 : vector<2x8x8xf32> to vector<16x8xf32>
    %115 = arith.truncf %114 : vector<16x8xf32> to vector<16x8xbf16>
    %c0_38 = arith.constant 0 : index
    %c24 = arith.constant 24 : index
    %c0_39 = arith.constant 0 : index
    %116 = vector.load %arg4[%c0_38, %c24, %c0_39] : memref<2x32x32xbf16, #tpu.memory_space<vmem>>, vector<1x8x32xbf16>
    %117 = vector.shape_cast %116 : vector<1x8x32xbf16> to vector<8x32xbf16>
    %cst_40 = arith.constant dense<0.000000e+00> : vector<16x32xf32>
    %118 = tpu.matmul %115, %117, %cst_40 {dimension_numbers = #tpu.dot_dimension_numbers<[1], [0], [0], [1], [0, 0, 1, 1], [], []>} : vector<16x8xbf16>, vector<8x32xbf16>, vector<16x32xf32> -> vector<16x32xf32>
    %119 = arith.addf %92, %118 : vector<16x32xf32>
    %c0_41 = arith.constant 0 : index
    %c0_42 = arith.constant 0 : index
    %c0_43 = arith.constant 0 : index
    %120 = vector.load %arg5[%c0_41, %c0_42, %c0_43] : memref<2x1x32xf32, #tpu.memory_space<vmem>>, vector<1x1x32xf32>
    %121 = vector.shape_cast %120 : vector<1x1x32xf32> to vector<1x32xf32>
    %122 = vector.broadcast %121 : vector<1x32xf32> to vector<16x32xf32>
    %123 = arith.addf %119, %122 : vector<16x32xf32>
    %124 = arith.addf %1, %123 : vector<16x32xf32>
    %cst_44 = arith.constant dense<0.000000e+00> : vector<16xf32>
    %125 = vector.multi_reduction <add>, %124, %cst_44 [1] : vector<16x32xf32> to vector<16xf32>
    %126 = vector.shape_cast %125 : vector<16xf32> to vector<16x1xf32>
    %cst_45 = arith.constant 3.200000e+01 : f32
    %127 = vector.broadcast %cst_45 : f32 to vector<16x1xf32>
    %128 = arith.divf %126, %127 : vector<16x1xf32>
    %129 = vector.broadcast %128 : vector<16x1xf32> to vector<16x32xf32>
    %130 = arith.subf %124, %129 : vector<16x32xf32>
    %131 = arith.mulf %130, %130 : vector<16x32xf32>
    %cst_46 = arith.constant dense<0.000000e+00> : vector<16xf32>
    %132 = vector.multi_reduction <add>, %131, %cst_46 [1] : vector<16x32xf32> to vector<16xf32>
    %133 = vector.shape_cast %132 : vector<16xf32> to vector<16x1xf32>
    %cst_47 = arith.constant 3.200000e+01 : f32
    %134 = vector.broadcast %cst_47 : f32 to vector<16x1xf32>
    %135 = arith.divf %133, %134 : vector<16x1xf32>
    %136 = vector.broadcast %128 : vector<16x1xf32> to vector<16x32xf32>
    %137 = arith.subf %124, %136 : vector<16x32xf32>
    %cst_48 = arith.constant 9.99999974E-6 : f32
    %138 = vector.broadcast %cst_48 : f32 to vector<16x1xf32>
    %139 = arith.addf %135, %138 : vector<16x1xf32>
    %140 = math.rsqrt %139 : vector<16x1xf32>
    %141 = vector.broadcast %140 : vector<16x1xf32> to vector<16x32xf32>
    %142 = arith.mulf %137, %141 : vector<16x32xf32>
    %c0_49 = arith.constant 0 : index
    %c0_50 = arith.constant 0 : index
    %c0_51 = arith.constant 0 : index
    %143 = vector.load %arg6[%c0_49, %c0_50, %c0_51] : memref<2x1x32xf32, #tpu.memory_space<vmem>>, vector<1x1x32xf32>
    %144 = vector.shape_cast %143 : vector<1x1x32xf32> to vector<1x32xf32>
    %145 = vector.broadcast %144 : vector<1x32xf32> to vector<16x32xf32>
    %146 = arith.mulf %142, %145 : vector<16x32xf32>
    %c0_52 = arith.constant 0 : index
    %c0_53 = arith.constant 0 : index
    %c0_54 = arith.constant 0 : index
    %147 = vector.load %arg7[%c0_52, %c0_53, %c0_54] : memref<2x1x32xf32, #tpu.memory_space<vmem>>, vector<1x1x32xf32>
    %148 = vector.shape_cast %147 : vector<1x1x32xf32> to vector<1x32xf32>
    %149 = vector.broadcast %148 : vector<1x32xf32> to vector<16x32xf32>
    %150 = arith.addf %146, %149 : vector<16x32xf32>
    %151 = arith.truncf %150 : vector<16x32xf32> to vector<16x32xbf16>
    %c0_55 = arith.constant 0 : index
    %c0_56 = arith.constant 0 : index
    %c0_57 = arith.constant 0 : index
    %152 = vector.load %arg8[%c0_55, %c0_56, %c0_57] : memref<2x32x64xbf16, #tpu.memory_space<vmem>>, vector<1x32x64xbf16>
    %153 = vector.shape_cast %152 : vector<1x32x64xbf16> to vector<32x64xbf16>
    %cst_58 = arith.constant dense<0.000000e+00> : vector<16x64xf32>
    %154 = tpu.matmul %151, %153, %cst_58 {dimension_numbers = #tpu.dot_dimension_numbers<[1], [0], [0], [1], [0, 0, 1, 1], [], []>} : vector<16x32xbf16>, vector<32x64xbf16>, vector<16x64xf32> -> vector<16x64xf32>
    %c0_59 = arith.constant 0 : index
    %c0_60 = arith.constant 0 : index
    %c0_61 = arith.constant 0 : index
    %155 = vector.load %arg9[%c0_59, %c0_60, %c0_61] : memref<2x1x64xf32, #tpu.memory_space<vmem>>, vector<1x1x64xf32>
    %156 = vector.shape_cast %155 : vector<1x1x64xf32> to vector<1x64xf32>
    %157 = vector.broadcast %156 : vector<1x64xf32> to vector<16x64xf32>
    %158 = arith.addf %154, %157 : vector<16x64xf32>
    %cst_62 = arith.constant 0.000000e+00 : f32
    %159 = vector.broadcast %cst_62 : f32 to vector<16x64xf32>
    %160 = arith.maximumf %158, %159 : vector<16x64xf32>
    %161 = arith.truncf %160 : vector<16x64xf32> to vector<16x64xbf16>
    %c0_63 = arith.constant 0 : index
    %c0_64 = arith.constant 0 : index
    %c0_65 = arith.constant 0 : index
    %162 = vector.load %arg10[%c0_63, %c0_64, %c0_65] : memref<2x64x32xbf16, #tpu.memory_space<vmem>>, vector<1x64x32xbf16>
    %163 = vector.shape_cast %162 : vector<1x64x32xbf16> to vector<64x32xbf16>
    %cst_66 = arith.constant dense<0.000000e+00> : vector<16x32xf32>
    %164 = tpu.matmul %161, %163, %cst_66 {dimension_numbers = #tpu.dot_dimension_numbers<[1], [0], [0], [1], [0, 0, 1, 1], [], []>} : vector<16x64xbf16>, vector<64x32xbf16>, vector<16x32xf32> -> vector<16x32xf32>
    %c0_67 = arith.constant 0 : index
    %c0_68 = arith.constant 0 : index
    %c0_69 = arith.constant 0 : index
    %165 = vector.load %arg11[%c0_67, %c0_68, %c0_69] : memref<2x1x32xf32, #tpu.memory_space<vmem>>, vector<1x1x32xf32>
    %166 = vector.shape_cast %165 : vector<1x1x32xf32> to vector<1x32xf32>
    %167 = vector.broadcast %166 : vector<1x32xf32> to vector<16x32xf32>
    %168 = arith.addf %164, %167 : vector<16x32xf32>
    %169 = arith.addf %150, %168 : vector<16x32xf32>
    %cst_70 = arith.constant dense<0.000000e+00> : vector<16xf32>
    %170 = vector.multi_reduction <add>, %169, %cst_70 [1] : vector<16x32xf32> to vector<16xf32>
    %171 = vector.shape_cast %170 : vector<16xf32> to vector<16x1xf32>
    %cst_71 = arith.constant 3.200000e+01 : f32
    %172 = vector.broadcast %cst_71 : f32 to vector<16x1xf32>
    %173 = arith.divf %171, %172 : vector<16x1xf32>
    %174 = vector.broadcast %173 : vector<16x1xf32> to vector<16x32xf32>
    %175 = arith.subf %169, %174 : vector<16x32xf32>
    %176 = arith.mulf %175, %175 : vector<16x32xf32>
    %cst_72 = arith.constant dense<0.000000e+00> : vector<16xf32>
    %177 = vector.multi_reduction <add>, %176, %cst_72 [1] : vector<16x32xf32> to vector<16xf32>
    %178 = vector.shape_cast %177 : vector<16xf32> to vector<16x1xf32>
    %cst_73 = arith.constant 3.200000e+01 : f32
    %179 = vector.broadcast %cst_73 : f32 to vector<16x1xf32>
    %180 = arith.divf %178, %179 : vector<16x1xf32>
    %181 = vector.broadcast %173 : vector<16x1xf32> to vector<16x32xf32>
    %182 = arith.subf %169, %181 : vector<16x32xf32>
    %cst_74 = arith.constant 9.99999974E-6 : f32
    %183 = vector.broadcast %cst_74 : f32 to vector<16x1xf32>
    %184 = arith.addf %180, %183 : vector<16x1xf32>
    %185 = math.rsqrt %184 : vector<16x1xf32>
    %186 = vector.broadcast %185 : vector<16x1xf32> to vector<16x32xf32>
    %187 = arith.mulf %182, %186 : vector<16x32xf32>
    %c0_75 = arith.constant 0 : index
    %c0_76 = arith.constant 0 : index
    %c0_77 = arith.constant 0 : index
    %188 = vector.load %arg12[%c0_75, %c0_76, %c0_77] : memref<2x1x32xf32, #tpu.memory_space<vmem>>, vector<1x1x32xf32>
    %189 = vector.shape_cast %188 : vector<1x1x32xf32> to vector<1x32xf32>
    %190 = vector.broadcast %189 : vector<1x32xf32> to vector<16x32xf32>
    %191 = arith.mulf %187, %190 : vector<16x32xf32>
    %c0_78 = arith.constant 0 : index
    %c0_79 = arith.constant 0 : index
    %c0_80 = arith.constant 0 : index
    %192 = vector.load %arg13[%c0_78, %c0_79, %c0_80] : memref<2x1x32xf32, #tpu.memory_space<vmem>>, vector<1x1x32xf32>
    %193 = vector.shape_cast %192 : vector<1x1x32xf32> to vector<1x32xf32>
    %194 = vector.broadcast %193 : vector<1x32xf32> to vector<16x32xf32>
    %195 = arith.addf %191, %194 : vector<16x32xf32>
    %196 = arith.truncf %195 : vector<16x32xf32> to vector<16x32xbf16>
    %c1 = arith.constant 1 : index
    %c0_81 = arith.constant 0 : index
    %c0_82 = arith.constant 0 : index
    %197 = vector.load %arg2[%c1, %c0_81, %c0_82] : memref<2x32x96xbf16, #tpu.memory_space<vmem>>, vector<1x32x96xbf16>
    %198 = vector.shape_cast %197 : vector<1x32x96xbf16> to vector<32x96xbf16>
    %cst_83 = arith.constant dense<0.000000e+00> : vector<16x96xf32>
    %199 = tpu.matmul %196, %198, %cst_83 {dimension_numbers = #tpu.dot_dimension_numbers<[1], [0], [0], [1], [0, 0, 1, 1], [], []>} : vector<16x32xbf16>, vector<32x96xbf16>, vector<16x96xf32> -> vector<16x96xf32>
    %c1_84 = arith.constant 1 : index
    %c0_85 = arith.constant 0 : index
    %c0_86 = arith.constant 0 : index
    %200 = vector.load %arg3[%c1_84, %c0_85, %c0_86] : memref<2x1x96xf32, #tpu.memory_space<vmem>>, vector<1x1x96xf32>
    %201 = vector.shape_cast %200 : vector<1x1x96xf32> to vector<1x96xf32>
    %202 = vector.broadcast %201 : vector<1x96xf32> to vector<16x96xf32>
    %203 = arith.addf %199, %202 : vector<16x96xf32>
    %204 = vector.shape_cast %203 : vector<16x96xf32> to vector<2x8x96xf32>
    %cst_87 = arith.constant 0.000000e+00 : f32
    %205 = vector.broadcast %cst_87 : f32 to vector<16x32xf32>
    %206 = vector.extract_strided_slice %204 {offsets = [0, 0, 0], sizes = [2, 8, 8], strides = [1, 1, 1]} : vector<2x8x96xf32> to vector<2x8x8xf32>
    %cst_88 = arith.constant 0.353553385 : f32
    %207 = vector.broadcast %cst_88 : f32 to vector<2x8x8xf32>
    %208 = arith.mulf %206, %207 : vector<2x8x8xf32>
    %209 = arith.truncf %208 : vector<2x8x8xf32> to vector<2x8x8xbf16>
    %210 = vector.extract_strided_slice %204 {offsets = [0, 0, 32], sizes = [2, 8, 8], strides = [1, 1, 1]} : vector<2x8x96xf32> to vector<2x8x8xf32>
    %211 = arith.truncf %210 : vector<2x8x8xf32> to vector<2x8x8xbf16>
    %212 = vector.extract_strided_slice %204 {offsets = [0, 0, 64], sizes = [2, 8, 8], strides = [1, 1, 1]} : vector<2x8x96xf32> to vector<2x8x8xf32>
    %213 = arith.truncf %212 : vector<2x8x8xf32> to vector<2x8x8xbf16>
    "tpu.trace_start"() <{level = 10 : i32, message = "bqd,bkd->bqk"}> : () -> ()
    %cst_89 = arith.constant dense<0.000000e+00> : vector<2x8x8xf32>
    %214 = tpu.matmul %209, %211, %cst_89 {dimension_numbers = #tpu.dot_dimension_numbers<[2], [2], [1], [1], [0, 0, 0, 1, 1, 1], [0], [0]>} : vector<2x8x8xbf16>, vector<2x8x8xbf16>, vector<2x8x8xf32> -> vector<2x8x8xf32>
    "tpu.trace_stop"() : () -> ()
    %cst_90 = arith.constant dense<0xFF800000> : vector<2x8xf32>
    %215 = vector.multi_reduction <maximumf>, %214, %cst_90 [2] : vector<2x8x8xf32> to vector<2x8xf32>
    %216 = vector.shape_cast %215 : vector<2x8xf32> to vector<2x8x1xf32>
    %217 = vector.broadcast %216 : vector<2x8x1xf32> to vector<2x8x8xf32>
    %218 = arith.subf %214, %217 : vector<2x8x8xf32>
    %219 = math.exp %218 : vector<2x8x8xf32>
    %cst_91 = arith.constant dense<0.000000e+00> : vector<2x8xf32>
    %220 = vector.multi_reduction <add>, %219, %cst_91 [2] : vector<2x8x8xf32> to vector<2x8xf32>
    %221 = vector.shape_cast %220 : vector<2x8xf32> to vector<2x8x1xf32>
    %222 = tpu.reciprocal %221 {approx = true} : vector<2x8x1xf32> -> vector<2x8x1xf32>
    %223 = vector.broadcast %222 : vector<2x8x1xf32> to vector<2x8x8xf32>
    %224 = arith.mulf %219, %223 : vector<2x8x8xf32>
    %225 = arith.truncf %224 : vector<2x8x8xf32> to vector<2x8x8xbf16>
    "tpu.trace_start"() <{level = 10 : i32, message = "bqk,bkd->bqd"}> : () -> ()
    %cst_92 = arith.constant dense<0.000000e+00> : vector<2x8x8xf32>
    %226 = tpu.matmul %225, %213, %cst_92 {dimension_numbers = #tpu.dot_dimension_numbers<[2], [1], [1], [2], [0, 0, 0, 1, 1, 2], [0], [0]>} : vector<2x8x8xbf16>, vector<2x8x8xbf16>, vector<2x8x8xf32> -> vector<2x8x8xf32>
    "tpu.trace_stop"() : () -> ()
    %227 = vector.shape_cast %226 : vector<2x8x8xf32> to vector<16x8xf32>
    %228 = arith.truncf %227 : vector<16x8xf32> to vector<16x8xbf16>
    %c1_93 = arith.constant 1 : index
    %c0_94 = arith.constant 0 : index
    %c0_95 = arith.constant 0 : index
    %229 = vector.load %arg4[%c1_93, %c0_94, %c0_95] : memref<2x32x32xbf16, #tpu.memory_space<vmem>>, vector<1x8x32xbf16>
    %230 = vector.shape_cast %229 : vector<1x8x32xbf16> to vector<8x32xbf16>
    %cst_96 = arith.constant dense<0.000000e+00> : vector<16x32xf32>
    %231 = tpu.matmul %228, %230, %cst_96 {dimension_numbers = #tpu.dot_dimension_numbers<[1], [0], [0], [1], [0, 0, 1, 1], [], []>} : vector<16x8xbf16>, vector<8x32xbf16>, vector<16x32xf32> -> vector<16x32xf32>
    %232 = arith.addf %205, %231 : vector<16x32xf32>
    %233 = vector.extract_strided_slice %204 {offsets = [0, 0, 8], sizes = [2, 8, 8], strides = [1, 1, 1]} : vector<2x8x96xf32> to vector<2x8x8xf32>
    %cst_97 = arith.constant 0.353553385 : f32
    %234 = vector.broadcast %cst_97 : f32 to vector<2x8x8xf32>
    %235 = arith.mulf %233, %234 : vector<2x8x8xf32>
    %236 = arith.truncf %235 : vector<2x8x8xf32> to vector<2x8x8xbf16>
    %237 = vector.extract_strided_slice %204 {offsets = [0, 0, 40], sizes = [2, 8, 8], strides = [1, 1, 1]} : vector<2x8x96xf32> to vector<2x8x8xf32>
    %238 = arith.truncf %237 : vector<2x8x8xf32> to vector<2x8x8xbf16>
    %239 = vector.extract_strided_slice %204 {offsets = [0, 0, 72], sizes = [2, 8, 8], strides = [1, 1, 1]} : vector<2x8x96xf32> to vector<2x8x8xf32>
    %240 = arith.truncf %239 : vector<2x8x8xf32> to vector<2x8x8xbf16>
    "tpu.trace_start"() <{level = 10 : i32, message = "bqd,bkd->bqk"}> : () -> ()
    %cst_98 = arith.constant dense<0.000000e+00> : vector<2x8x8xf32>
    %241 = tpu.matmul %236, %238, %cst_98 {dimension_numbers = #tpu.dot_dimension_numbers<[2], [2], [1], [1], [0, 0, 0, 1, 1, 1], [0], [0]>} : vector<2x8x8xbf16>, vector<2x8x8xbf16>, vector<2x8x8xf32> -> vector<2x8x8xf32>
    "tpu.trace_stop"() : () -> ()
    %cst_99 = arith.constant dense<0xFF800000> : vector<2x8xf32>
    %242 = vector.multi_reduction <maximumf>, %241, %cst_99 [2] : vector<2x8x8xf32> to vector<2x8xf32>
    %243 = vector.shape_cast %242 : vector<2x8xf32> to vector<2x8x1xf32>
    %244 = vector.broadcast %243 : vector<2x8x1xf32> to vector<2x8x8xf32>
    %245 = arith.subf %241, %244 : vector<2x8x8xf32>
    %246 = math.exp %245 : vector<2x8x8xf32>
    %cst_100 = arith.constant dense<0.000000e+00> : vector<2x8xf32>
    %247 = vector.multi_reduction <add>, %246, %cst_100 [2] : vector<2x8x8xf32> to vector<2x8xf32>
    %248 = vector.shape_cast %247 : vector<2x8xf32> to vector<2x8x1xf32>
    %249 = tpu.reciprocal %248 {approx = true} : vector<2x8x1xf32> -> vector<2x8x1xf32>
    %250 = vector.broadcast %249 : vector<2x8x1xf32> to vector<2x8x8xf32>
    %251 = arith.mulf %246, %250 : vector<2x8x8xf32>
    %252 = arith.truncf %251 : vector<2x8x8xf32> to vector<2x8x8xbf16>
    "tpu.trace_start"() <{level = 10 : i32, message = "bqk,bkd->bqd"}> : () -> ()
    %cst_101 = arith.constant dense<0.000000e+00> : vector<2x8x8xf32>
    %253 = tpu.matmul %252, %240, %cst_101 {dimension_numbers = #tpu.dot_dimension_numbers<[2], [1], [1], [2], [0, 0, 0, 1, 1, 2], [0], [0]>} : vector<2x8x8xbf16>, vector<2x8x8xbf16>, vector<2x8x8xf32> -> vector<2x8x8xf32>
    "tpu.trace_stop"() : () -> ()
    %254 = vector.shape_cast %253 : vector<2x8x8xf32> to vector<16x8xf32>
    %255 = arith.truncf %254 : vector<16x8xf32> to vector<16x8xbf16>
    %c1_102 = arith.constant 1 : index
    %c8_103 = arith.constant 8 : index
    %c0_104 = arith.constant 0 : index
    %256 = vector.load %arg4[%c1_102, %c8_103, %c0_104] : memref<2x32x32xbf16, #tpu.memory_space<vmem>>, vector<1x8x32xbf16>
    %257 = vector.shape_cast %256 : vector<1x8x32xbf16> to vector<8x32xbf16>
    %cst_105 = arith.constant dense<0.000000e+00> : vector<16x32xf32>
    %258 = tpu.matmul %255, %257, %cst_105 {dimension_numbers = #tpu.dot_dimension_numbers<[1], [0], [0], [1], [0, 0, 1, 1], [], []>} : vector<16x8xbf16>, vector<8x32xbf16>, vector<16x32xf32> -> vector<16x32xf32>
    %259 = arith.addf %232, %258 : vector<16x32xf32>
    %260 = vector.extract_strided_slice %204 {offsets = [0, 0, 16], sizes = [2, 8, 8], strides = [1, 1, 1]} : vector<2x8x96xf32> to vector<2x8x8xf32>
    %cst_106 = arith.constant 0.353553385 : f32
    %261 = vector.broadcast %cst_106 : f32 to vector<2x8x8xf32>
    %262 = arith.mulf %260, %261 : vector<2x8x8xf32>
    %263 = arith.truncf %262 : vector<2x8x8xf32> to vector<2x8x8xbf16>
    %264 = vector.extract_strided_slice %204 {offsets = [0, 0, 48], sizes = [2, 8, 8], strides = [1, 1, 1]} : vector<2x8x96xf32> to vector<2x8x8xf32>
    %265 = arith.truncf %264 : vector<2x8x8xf32> to vector<2x8x8xbf16>
    %266 = vector.extract_strided_slice %204 {offsets = [0, 0, 80], sizes = [2, 8, 8], strides = [1, 1, 1]} : vector<2x8x96xf32> to vector<2x8x8xf32>
    %267 = arith.truncf %266 : vector<2x8x8xf32> to vector<2x8x8xbf16>
    "tpu.trace_start"() <{level = 10 : i32, message = "bqd,bkd->bqk"}> : () -> ()
    %cst_107 = arith.constant dense<0.000000e+00> : vector<2x8x8xf32>
    %268 = tpu.matmul %263, %265, %cst_107 {dimension_numbers = #tpu.dot_dimension_numbers<[2], [2], [1], [1], [0, 0, 0, 1, 1, 1], [0], [0]>} : vector<2x8x8xbf16>, vector<2x8x8xbf16>, vector<2x8x8xf32> -> vector<2x8x8xf32>
    "tpu.trace_stop"() : () -> ()
    %cst_108 = arith.constant dense<0xFF800000> : vector<2x8xf32>
    %269 = vector.multi_reduction <maximumf>, %268, %cst_108 [2] : vector<2x8x8xf32> to vector<2x8xf32>
    %270 = vector.shape_cast %269 : vector<2x8xf32> to vector<2x8x1xf32>
    %271 = vector.broadcast %270 : vector<2x8x1xf32> to vector<2x8x8xf32>
    %272 = arith.subf %268, %271 : vector<2x8x8xf32>
    %273 = math.exp %272 : vector<2x8x8xf32>
    %cst_109 = arith.constant dense<0.000000e+00> : vector<2x8xf32>
    %274 = vector.multi_reduction <add>, %273, %cst_109 [2] : vector<2x8x8xf32> to vector<2x8xf32>
    %275 = vector.shape_cast %274 : vector<2x8xf32> to vector<2x8x1xf32>
    %276 = tpu.reciprocal %275 {approx = true} : vector<2x8x1xf32> -> vector<2x8x1xf32>
    %277 = vector.broadcast %276 : vector<2x8x1xf32> to vector<2x8x8xf32>
    %278 = arith.mulf %273, %277 : vector<2x8x8xf32>
    %279 = arith.truncf %278 : vector<2x8x8xf32> to vector<2x8x8xbf16>
    "tpu.trace_start"() <{level = 10 : i32, message = "bqk,bkd->bqd"}> : () -> ()
    %cst_110 = arith.constant dense<0.000000e+00> : vector<2x8x8xf32>
    %280 = tpu.matmul %279, %267, %cst_110 {dimension_numbers = #tpu.dot_dimension_numbers<[2], [1], [1], [2], [0, 0, 0, 1, 1, 2], [0], [0]>} : vector<2x8x8xbf16>, vector<2x8x8xbf16>, vector<2x8x8xf32> -> vector<2x8x8xf32>
    "tpu.trace_stop"() : () -> ()
    %281 = vector.shape_cast %280 : vector<2x8x8xf32> to vector<16x8xf32>
    %282 = arith.truncf %281 : vector<16x8xf32> to vector<16x8xbf16>
    %c1_111 = arith.constant 1 : index
    %c16_112 = arith.constant 16 : index
    %c0_113 = arith.constant 0 : index
    %283 = vector.load %arg4[%c1_111, %c16_112, %c0_113] : memref<2x32x32xbf16, #tpu.memory_space<vmem>>, vector<1x8x32xbf16>
    %284 = vector.shape_cast %283 : vector<1x8x32xbf16> to vector<8x32xbf16>
    %cst_114 = arith.constant dense<0.000000e+00> : vector<16x32xf32>
    %285 = tpu.matmul %282, %284, %cst_114 {dimension_numbers = #tpu.dot_dimension_numbers<[1], [0], [0], [1], [0, 0, 1, 1], [], []>} : vector<16x8xbf16>, vector<8x32xbf16>, vector<16x32xf32> -> vector<16x32xf32>
    %286 = arith.addf %259, %285 : vector<16x32xf32>
    %287 = vector.extract_strided_slice %204 {offsets = [0, 0, 24], sizes = [2, 8, 8], strides = [1, 1, 1]} : vector<2x8x96xf32> to vector<2x8x8xf32>
    %cst_115 = arith.constant 0.353553385 : f32
    %288 = vector.broadcast %cst_115 : f32 to vector<2x8x8xf32>
    %289 = arith.mulf %287, %288 : vector<2x8x8xf32>
    %290 = arith.truncf %289 : vector<2x8x8xf32> to vector<2x8x8xbf16>
    %291 = vector.extract_strided_slice %204 {offsets = [0, 0, 56], sizes = [2, 8, 8], strides = [1, 1, 1]} : vector<2x8x96xf32> to vector<2x8x8xf32>
    %292 = arith.truncf %291 : vector<2x8x8xf32> to vector<2x8x8xbf16>
    %293 = vector.extract_strided_slice %204 {offsets = [0, 0, 88], sizes = [2, 8, 8], strides = [1, 1, 1]} : vector<2x8x96xf32> to vector<2x8x8xf32>
    %294 = arith.truncf %293 : vector<2x8x8xf32> to vector<2x8x8xbf16>
    "tpu.trace_start"() <{level = 10 : i32, message = "bqd,bkd->bqk"}> : () -> ()
    %cst_116 = arith.constant dense<0.000000e+00> : vector<2x8x8xf32>
    %295 = tpu.matmul %290, %292, %cst_116 {dimension_numbers = #tpu.dot_dimension_numbers<[2], [2], [1], [1], [0, 0, 0, 1, 1, 1], [0], [0]>} : vector<2x8x8xbf16>, vector<2x8x8xbf16>, vector<2x8x8xf32> -> vector<2x8x8xf32>
    "tpu.trace_stop"() : () -> ()
    %cst_117 = arith.constant dense<0xFF800000> : vector<2x8xf32>
    %296 = vector.multi_reduction <maximumf>, %295, %cst_117 [2] : vector<2x8x8xf32> to vector<2x8xf32>
    %297 = vector.shape_cast %296 : vector<2x8xf32> to vector<2x8x1xf32>
    %298 = vector.broadcast %297 : vector<2x8x1xf32> to vector<2x8x8xf32>
    %299 = arith.subf %295, %298 : vector<2x8x8xf32>
    %300 = math.exp %299 : vector<2x8x8xf32>
    %cst_118 = arith.constant dense<0.000000e+00> : vector<2x8xf32>
    %301 = vector.multi_reduction <add>, %300, %cst_118 [2] : vector<2x8x8xf32> to vector<2x8xf32>
    %302 = vector.shape_cast %301 : vector<2x8xf32> to vector<2x8x1xf32>
    %303 = tpu.reciprocal %302 {approx = true} : vector<2x8x1xf32> -> vector<2x8x1xf32>
    %304 = vector.broadcast %303 : vector<2x8x1xf32> to vector<2x8x8xf32>
    %305 = arith.mulf %300, %304 : vector<2x8x8xf32>
    %306 = arith.truncf %305 : vector<2x8x8xf32> to vector<2x8x8xbf16>
    "tpu.trace_start"() <{level = 10 : i32, message = "bqk,bkd->bqd"}> : () -> ()
    %cst_119 = arith.constant dense<0.000000e+00> : vector<2x8x8xf32>
    %307 = tpu.matmul %306, %294, %cst_119 {dimension_numbers = #tpu.dot_dimension_numbers<[2], [1], [1], [2], [0, 0, 0, 1, 1, 2], [0], [0]>} : vector<2x8x8xbf16>, vector<2x8x8xbf16>, vector<2x8x8xf32> -> vector<2x8x8xf32>
    "tpu.trace_stop"() : () -> ()
    %308 = vector.shape_cast %307 : vector<2x8x8xf32> to vector<16x8xf32>
    %309 = arith.truncf %308 : vector<16x8xf32> to vector<16x8xbf16>
    %c1_120 = arith.constant 1 : index
    %c24_121 = arith.constant 24 : index
    %c0_122 = arith.constant 0 : index
    %310 = vector.load %arg4[%c1_120, %c24_121, %c0_122] : memref<2x32x32xbf16, #tpu.memory_space<vmem>>, vector<1x8x32xbf16>
    %311 = vector.shape_cast %310 : vector<1x8x32xbf16> to vector<8x32xbf16>
    %cst_123 = arith.constant dense<0.000000e+00> : vector<16x32xf32>
    %312 = tpu.matmul %309, %311, %cst_123 {dimension_numbers = #tpu.dot_dimension_numbers<[1], [0], [0], [1], [0, 0, 1, 1], [], []>} : vector<16x8xbf16>, vector<8x32xbf16>, vector<16x32xf32> -> vector<16x32xf32>
    %313 = arith.addf %286, %312 : vector<16x32xf32>
    %c1_124 = arith.constant 1 : index
    %c0_125 = arith.constant 0 : index
    %c0_126 = arith.constant 0 : index
    %314 = vector.load %arg5[%c1_124, %c0_125, %c0_126] : memref<2x1x32xf32, #tpu.memory_space<vmem>>, vector<1x1x32xf32>
    %315 = vector.shape_cast %314 : vector<1x1x32xf32> to vector<1x32xf32>
    %316 = vector.broadcast %315 : vector<1x32xf32> to vector<16x32xf32>
    %317 = arith.addf %313, %316 : vector<16x32xf32>
    %318 = arith.addf %195, %317 : vector<16x32xf32>
    %cst_127 = arith.constant dense<0.000000e+00> : vector<16xf32>
    %319 = vector.multi_reduction <add>, %318, %cst_127 [1] : vector<16x32xf32> to vector<16xf32>
    %320 = vector.shape_cast %319 : vector<16xf32> to vector<16x1xf32>
    %cst_128 = arith.constant 3.200000e+01 : f32
    %321 = vector.broadcast %cst_128 : f32 to vector<16x1xf32>
    %322 = arith.divf %320, %321 : vector<16x1xf32>
    %323 = vector.broadcast %322 : vector<16x1xf32> to vector<16x32xf32>
    %324 = arith.subf %318, %323 : vector<16x32xf32>
    %325 = arith.mulf %324, %324 : vector<16x32xf32>
    %cst_129 = arith.constant dense<0.000000e+00> : vector<16xf32>
    %326 = vector.multi_reduction <add>, %325, %cst_129 [1] : vector<16x32xf32> to vector<16xf32>
    %327 = vector.shape_cast %326 : vector<16xf32> to vector<16x1xf32>
    %cst_130 = arith.constant 3.200000e+01 : f32
    %328 = vector.broadcast %cst_130 : f32 to vector<16x1xf32>
    %329 = arith.divf %327, %328 : vector<16x1xf32>
    %330 = vector.broadcast %322 : vector<16x1xf32> to vector<16x32xf32>
    %331 = arith.subf %318, %330 : vector<16x32xf32>
    %cst_131 = arith.constant 9.99999974E-6 : f32
    %332 = vector.broadcast %cst_131 : f32 to vector<16x1xf32>
    %333 = arith.addf %329, %332 : vector<16x1xf32>
    %334 = math.rsqrt %333 : vector<16x1xf32>
    %335 = vector.broadcast %334 : vector<16x1xf32> to vector<16x32xf32>
    %336 = arith.mulf %331, %335 : vector<16x32xf32>
    %c1_132 = arith.constant 1 : index
    %c0_133 = arith.constant 0 : index
    %c0_134 = arith.constant 0 : index
    %337 = vector.load %arg6[%c1_132, %c0_133, %c0_134] : memref<2x1x32xf32, #tpu.memory_space<vmem>>, vector<1x1x32xf32>
    %338 = vector.shape_cast %337 : vector<1x1x32xf32> to vector<1x32xf32>
    %339 = vector.broadcast %338 : vector<1x32xf32> to vector<16x32xf32>
    %340 = arith.mulf %336, %339 : vector<16x32xf32>
    %c1_135 = arith.constant 1 : index
    %c0_136 = arith.constant 0 : index
    %c0_137 = arith.constant 0 : index
    %341 = vector.load %arg7[%c1_135, %c0_136, %c0_137] : memref<2x1x32xf32, #tpu.memory_space<vmem>>, vector<1x1x32xf32>
    %342 = vector.shape_cast %341 : vector<1x1x32xf32> to vector<1x32xf32>
    %343 = vector.broadcast %342 : vector<1x32xf32> to vector<16x32xf32>
    %344 = arith.addf %340, %343 : vector<16x32xf32>
    %345 = arith.truncf %344 : vector<16x32xf32> to vector<16x32xbf16>
    %c1_138 = arith.constant 1 : index
    %c0_139 = arith.constant 0 : index
    %c0_140 = arith.constant 0 : index
    %346 = vector.load %arg8[%c1_138, %c0_139, %c0_140] : memref<2x32x64xbf16, #tpu.memory_space<vmem>>, vector<1x32x64xbf16>
    %347 = vector.shape_cast %346 : vector<1x32x64xbf16> to vector<32x64xbf16>
    %cst_141 = arith.constant dense<0.000000e+00> : vector<16x64xf32>
    %348 = tpu.matmul %345, %347, %cst_141 {dimension_numbers = #tpu.dot_dimension_numbers<[1], [0], [0], [1], [0, 0, 1, 1], [], []>} : vector<16x32xbf16>, vector<32x64xbf16>, vector<16x64xf32> -> vector<16x64xf32>
    %c1_142 = arith.constant 1 : index
    %c0_143 = arith.constant 0 : index
    %c0_144 = arith.constant 0 : index
    %349 = vector.load %arg9[%c1_142, %c0_143, %c0_144] : memref<2x1x64xf32, #tpu.memory_space<vmem>>, vector<1x1x64xf32>
    %350 = vector.shape_cast %349 : vector<1x1x64xf32> to vector<1x64xf32>
    %351 = vector.broadcast %350 : vector<1x64xf32> to vector<16x64xf32>
    %352 = arith.addf %348, %351 : vector<16x64xf32>
    %cst_145 = arith.constant 0.000000e+00 : f32
    %353 = vector.broadcast %cst_145 : f32 to vector<16x64xf32>
    %354 = arith.maximumf %352, %353 : vector<16x64xf32>
    %355 = arith.truncf %354 : vector<16x64xf32> to vector<16x64xbf16>
    %c1_146 = arith.constant 1 : index
    %c0_147 = arith.constant 0 : index
    %c0_148 = arith.constant 0 : index
    %356 = vector.load %arg10[%c1_146, %c0_147, %c0_148] : memref<2x64x32xbf16, #tpu.memory_space<vmem>>, vector<1x64x32xbf16>
    %357 = vector.shape_cast %356 : vector<1x64x32xbf16> to vector<64x32xbf16>
    %cst_149 = arith.constant dense<0.000000e+00> : vector<16x32xf32>
    %358 = tpu.matmul %355, %357, %cst_149 {dimension_numbers = #tpu.dot_dimension_numbers<[1], [0], [0], [1], [0, 0, 1, 1], [], []>} : vector<16x64xbf16>, vector<64x32xbf16>, vector<16x32xf32> -> vector<16x32xf32>
    %c1_150 = arith.constant 1 : index
    %c0_151 = arith.constant 0 : index
    %c0_152 = arith.constant 0 : index
    %359 = vector.load %arg11[%c1_150, %c0_151, %c0_152] : memref<2x1x32xf32, #tpu.memory_space<vmem>>, vector<1x1x32xf32>
    %360 = vector.shape_cast %359 : vector<1x1x32xf32> to vector<1x32xf32>
    %361 = vector.broadcast %360 : vector<1x32xf32> to vector<16x32xf32>
    %362 = arith.addf %358, %361 : vector<16x32xf32>
    %363 = arith.addf %344, %362 : vector<16x32xf32>
    %cst_153 = arith.constant dense<0.000000e+00> : vector<16xf32>
    %364 = vector.multi_reduction <add>, %363, %cst_153 [1] : vector<16x32xf32> to vector<16xf32>
    %365 = vector.shape_cast %364 : vector<16xf32> to vector<16x1xf32>
    %cst_154 = arith.constant 3.200000e+01 : f32
    %366 = vector.broadcast %cst_154 : f32 to vector<16x1xf32>
    %367 = arith.divf %365, %366 : vector<16x1xf32>
    %368 = vector.broadcast %367 : vector<16x1xf32> to vector<16x32xf32>
    %369 = arith.subf %363, %368 : vector<16x32xf32>
    %370 = arith.mulf %369, %369 : vector<16x32xf32>
    %cst_155 = arith.constant dense<0.000000e+00> : vector<16xf32>
    %371 = vector.multi_reduction <add>, %370, %cst_155 [1] : vector<16x32xf32> to vector<16xf32>
    %372 = vector.shape_cast %371 : vector<16xf32> to vector<16x1xf32>
    %cst_156 = arith.constant 3.200000e+01 : f32
    %373 = vector.broadcast %cst_156 : f32 to vector<16x1xf32>
    %374 = arith.divf %372, %373 : vector<16x1xf32>
    %375 = vector.broadcast %367 : vector<16x1xf32> to vector<16x32xf32>
    %376 = arith.subf %363, %375 : vector<16x32xf32>
    %cst_157 = arith.constant 9.99999974E-6 : f32
    %377 = vector.broadcast %cst_157 : f32 to vector<16x1xf32>
    %378 = arith.addf %374, %377 : vector<16x1xf32>
    %379 = math.rsqrt %378 : vector<16x1xf32>
    %380 = vector.broadcast %379 : vector<16x1xf32> to vector<16x32xf32>
    %381 = arith.mulf %376, %380 : vector<16x32xf32>
    %c1_158 = arith.constant 1 : index
    %c0_159 = arith.constant 0 : index
    %c0_160 = arith.constant 0 : index
    %382 = vector.load %arg12[%c1_158, %c0_159, %c0_160] : memref<2x1x32xf32, #tpu.memory_space<vmem>>, vector<1x1x32xf32>
    %383 = vector.shape_cast %382 : vector<1x1x32xf32> to vector<1x32xf32>
    %384 = vector.broadcast %383 : vector<1x32xf32> to vector<16x32xf32>
    %385 = arith.mulf %381, %384 : vector<16x32xf32>
    %c1_161 = arith.constant 1 : index
    %c0_162 = arith.constant 0 : index
    %c0_163 = arith.constant 0 : index
    %386 = vector.load %arg13[%c1_161, %c0_162, %c0_163] : memref<2x1x32xf32, #tpu.memory_space<vmem>>, vector<1x1x32xf32>
    %387 = vector.shape_cast %386 : vector<1x1x32xf32> to vector<1x32xf32>
    %388 = vector.broadcast %387 : vector<1x32xf32> to vector<16x32xf32>
    %389 = arith.addf %385, %388 : vector<16x32xf32>
    %390 = arith.truncf %389 : vector<16x32xf32> to vector<16x32xbf16>
    %c0_164 = arith.constant 0 : index
    %c0_165 = arith.constant 0 : index
    %391 = vector.load %arg14[%c0_164, %c0_165] : memref<16x32xbf16, #tpu.memory_space<vmem>>, vector<16x32xbf16>
    tpu.vector_store %arg14[%c0_164, %c0_165], %390 {strides = array<i32>} : memref<16x32xbf16, #tpu.memory_space<vmem>>, vector<16x32xbf16>,
    return
  }
  func.func @transform_0(%arg0: i32) -> (i32, i32) {
    %c0_i32 = arith.constant 0 : i32
    %c0_i32_0 = arith.constant 0 : i32
    return %arg0, %c0_i32 : i32, i32
  }
  func.func @transform_1(%arg0: i32) -> (i32, i32, i32) {
    %c0_i32 = arith.constant 0 : i32
    %c0_i32_0 = arith.constant 0 : i32
    %c0_i32_1 = arith.constant 0 : i32
    %c0_i32_2 = arith.constant 0 : i32
    return %c0_i32, %c0_i32_0, %c0_i32_1 : i32, i32, i32
  }
  func.func @transform_2(%arg0: i32) -> (i32, i32, i32) {
    %c0_i32 = arith.constant 0 : i32
    %c0_i32_0 = arith.constant 0 : i32
    %c0_i32_1 = arith.constant 0 : i32
    %c0_i32_2 = arith.constant 0 : i32
    return %c0_i32, %c0_i32_0, %c0_i32_1 : i32, i32, i32
  }
  func.func @transform_3(%arg0: i32) -> (i32, i32, i32) {
    %c0_i32 = arith.constant 0 : i32
    %c0_i32_0 = arith.constant 0 : i32
    %c0_i32_1 = arith.constant 0 : i32
    %c0_i32_2 = arith.constant 0 : i32
    return %c0_i32, %c0_i32_0, %c0_i32_1 : i32, i32, i32
  }
  func.func @transform_4(%arg0: i32) -> (i32, i32, i32) {
    %c0_i32 = arith.constant 0 : i32
    %c0_i32_0 = arith.constant 0 : i32
    %c0_i32_1 = arith.constant 0 : i32
    %c0_i32_2 = arith.constant 0 : i32
    return %c0_i32, %c0_i32_0, %c0_i32_1 : i32, i32, i32
  }
  func.func @transform_5(%arg0: i32) -> (i32, i32, i32) {
    %c0_i32 = arith.constant 0 : i32
    %c0_i32_0 = arith.constant 0 : i32
    %c0_i32_1 = arith.constant 0 : i32
    %c0_i32_2 = arith.constant 0 : i32
    return %c0_i32, %c0_i32_0, %c0_i32_1 : i32, i32, i32
  }
  func.func @transform_6(%arg0: i32) -> (i32, i32, i32) {
    %c0_i32 = arith.constant 0 : i32
    %c0_i32_0 = arith.constant 0 : i32
    %c0_i32_1 = arith.constant 0 : i32
    %c0_i32_2 = arith.constant 0 : i32
    return %c0_i32, %c0_i32_0, %c0_i32_1 : i32, i32, i32
  }
  func.func @transform_7(%arg0: i32) -> (i32, i32, i32) {
    %c0_i32 = arith.constant 0 : i32
    %c0_i32_0 = arith.constant 0 : i32
    %c0_i32_1 = arith.constant 0 : i32
    %c0_i32_2 = arith.constant 0 : i32
    return %c0_i32, %c0_i32_0, %c0_i32_1 : i32, i32, i32
  }
  func.func @transform_8(%arg0: i32) -> (i32, i32, i32) {
    %c0_i32 = arith.constant 0 : i32
    %c0_i32_0 = arith.constant 0 : i32
    %c0_i32_1 = arith.constant 0 : i32
    %c0_i32_2 = arith.constant 0 : i32
    return %c0_i32, %c0_i32_0, %c0_i32_1 : i32, i32, i32
  }
  func.func @transform_9(%arg0: i32) -> (i32, i32, i32) {
    %c0_i32 = arith.constant 0 : i32
    %c0_i32_0 = arith.constant 0 : i32
    %c0_i32_1 = arith.constant 0 : i32
    %c0_i32_2 = arith.constant 0 : i32
    return %c0_i32, %c0_i32_0, %c0_i32_1 : i32, i32, i32
  }
  func.func @transform_10(%arg0: i32) -> (i32, i32, i32) {
    %c0_i32 = arith.constant 0 : i32
    %c0_i32_0 = arith.constant 0 : i32
    %c0_i32_1 = arith.constant 0 : i32
    %c0_i32_2 = arith.constant 0 : i32
    return %c0_i32, %c0_i32_0, %c0_i32_1 : i32, i32, i32
  }
  func.func @transform_11(%arg0: i32) -> (i32, i32, i32) {
    %c0_i32 = arith.constant 0 : i32
    %c0_i32_0 = arith.constant 0 : i32
    %c0_i32_1 = arith.constant 0 : i32
    %c0_i32_2 = arith.constant 0 : i32
    return %c0_i32, %c0_i32_0, %c0_i32_1 : i32, i32, i32
  }
  func.func @transform_12(%arg0: i32) -> (i32, i32, i32) {
    %c0_i32 = arith.constant 0 : i32
    %c0_i32_0 = arith.constant 0 : i32
    %c0_i32_1 = arith.constant 0 : i32
    %c0_i32_2 = arith.constant 0 : i32
    return %c0_i32, %c0_i32_0, %c0_i32_1 : i32, i32, i32
  }
  func.func @transform_13(%arg0: i32) -> (i32, i32) {
    %c0_i32 = arith.constant 0 : i32
    %c0_i32_0 = arith.constant 0 : i32
    return %arg0, %c0_i32 : i32, i32
  }
}

</mosaic_0001>

<bundles_post_ra>
// kernel: tpu_custom_call.1
= control target key start
LH: loop header
LB: loop body
LE: loop exit
PB: predicated region body
PF: predicated region fallthrough
CT: control target
= control target key end

     0   :  { %s5367_s0 = inlined_call_operand.hbm [shape: bf16[32,32], index: 0, kind: input, shape index: {}]   ;;  %s5368_s1 = inlined_call_operand.vmem [shape: bf16[2,32,96], index: 1, kind: input, shape index: {}]   ;;  %s5369_s2 = inlined_call_operand.vmem [shape: f32[2,1,96], index: 2, kind: input, shape index: {}]   ;;  %s5370_s3 = inlined_call_operand.vmem [shape: bf16[2,32,32], index: 3, kind: input, shape index: {}]   ;;  %s5371_s4 = inlined_call_operand.hbm [shape: f32[2,1,32], index: 4, kind: input, shape index: {}]   ;;  %s5372_s5 = inlined_call_operand.hbm [shape: f32[2,1,32], index: 5, kind: input, shape index: {}]   ;;  %s5373_s6 = inlined_call_operand.hbm [shape: f32[2,1,32], index: 6, kind: input, shape index: {}]   ;;  %s5374_s7 = inlined_call_operand.vmem [shape: bf16[2,32,64], index: 7, kind: input, shape index: {}]   ;;  %s5375_s8 = inlined_call_operand.hbm [shape: f32[2,1,64], index: 8, kind: input, shape index: {}]   ;;  %s5376_s9 = inlined_call_operand.vmem [shape: bf16[2,64,32], index: 9, kind: input, shape index: {}]   ;;  %s5377_s10 = inlined_call_operand.vmem [shape: f32[2,1,32], index: 10, kind: input, shape index: {}]   ;;  %s5378_s11 = inlined_call_operand.vmem [shape: f32[2,1,32], index: 11, kind: input, shape index: {}]   ;;  %s5379_s12 = inlined_call_operand.vmem [shape: f32[2,1,32], index: 12, kind: input, shape index: {}]   ;;  %s5380_s13 = inlined_call_operand.hbm [shape: bf16[32,32], index: 13, kind: output, shape index: {}]  }
   0x1   :  { %5405 = sst [smem:[#allocation18_spill]] %s5367_s0 }
   0x2   :  { %5406 = sst [smem:[#allocation19_spill]] %s5376_s9 }
   0x3   :  { %5407 = sst [smem:[#allocation20_spill]] %s5377_s10 }
   0x4   :  { %5408 = sst [smem:[#allocation21_spill]] %s5378_s11 }
   0x5   :  { %5409 = sst [smem:[#allocation22_spill]] %s5379_s12 }
   0x6   :  { %5410 = sst [smem:[#allocation23_spill]] %s5380_s13 }
   0x7   :  { %18 = vsyncpa [#allocation3], 0 }
   0x8   :  { %20 = vsyncpa [#allocation3 + $0x1], 0 }
   0x9   :  { %21 = vsyncpa [#allocation6], 0 }
   0xa   :  { %22 = vsyncpa [#allocation9], 0 }
   0xb   :  { %23 = vsyncpa [#allocation4], 0 }
   0xc   :  { %25 = vsyncpa [#allocation4 + $0x1], 0  ;;  %s4543_s25 = smov 0   ;;  %s4545_s26 = smov 0  }
   0xd   :  { %s4547_s27 = smov 0   ;;  %s4549_s28 = smov 0  }
   0xe LB: > { %5411 = sst [smem:[#allocation16_spill]] %s4435_s25  ;;  %s4564_s29 = sadd.s32 4294967295, %s4447_s28   ;;  %s4447_s28 = sphi %s4549_s28, %s5449_s28   ;;  %s4443_s27 = sphi %s4547_s27, %s5448_s27   ;;  %s4439_s26 = sphi %s4545_s26, %s5447_s26   ;;  %s4435_s25 = sphi %s4543_s25, %s5446_s25  }
   0xf   : > { %s3499_s30 = sadd.s32 4294967294, %s4447_s28   ;;  %p51_p0 = scmp.ne.s32.totalorder %s4439_s26, %s4435_s25 }
  0x10   : > { %p5384_p1 = scmp.eq.s32.totalorder %s4564_s29, 0  ;;  %p333_p3 = scmp.eq.s32.totalorder %s3499_s30, 1 }
  0x11   : > { %p3500_p5 = scmp.ge.s32.totalorder %s4447_s28, 1  ;;  %p340_p7 = scmp.lt.s32.totalorder %s4447_s28, 3 }
  0x12   : > { %p4573_p4 = por %p5384_p1, %p51_p0  ;;  %p4578_p6 = por %p333_p3, %p51_p0 }
  0x13   : > { %p4583_p8 = pnand %p3500_p5, %p340_p7  ;;  %s4449_s17 = smov [#allocation5]  }
  0x14   : > { %s5412_s14 = scalar_select %p4573_p4, 1, 0 }
  0x15   : > { %s5413_s15 = scalar_select %p4578_p6, 1, 0 }
  0x16   : > { %s5415_s16 = scalar_select %p4583_p8, 1, 0 }
  0x17   : > { %5414 = sst [smem:[#allocation17_spill]] %s5413_s15  ;;  %s361_s18 = sshll.u32 %s4449_s17, 4  ;;  %s4587_s18 = int_to_ptr.vmem [resolvable:$true] %s361_s18 }
  0x18   : > { %p4048_p9 = pneg %p4583_p8  ;;  %s4450_s20 = smov [#allocation8]  }
  0x19   : > { %s387_s21 = sshll.u32 %s4450_s20, 4  ;;  %s4451_s22 = smov [#allocation7]   ;;  %s4598_s21 = int_to_ptr.vmem [resolvable:$true] %s387_s21 }
  0x1a   : > { %p4594_p11 = pnand %p4048_p9, %p5384_p1  ;;  %s4600_s23 = sshll.u32 %s4451_s22, 4  ;;  %s375_s23 = int_to_ptr.vmem [resolvable:$true] %s4600_s23 }
  0x1b   : > { %s4231_s17 = scalar_lea.hbm %s5371_s4, 32 }
  0x1c   : > { %p4232_p12 = scmp.ne.s32.totalorder %s5371_s4, %s4231_s17  ;;  %p4610_p13 = pneg %p4594_p11 }
  0x1d   : > { %p4238_p5 = scmp.lt.u32.totalorder %s4231_s17, %s5371_s4 }
  0x1e   : > { %p4234_p0 = pnand %p4610_p13, %p4232_p12 }
  0x20   : > { %p4235_p3 = pneg %p4234_p0 }
  0x22   : > { %p4240_p7 = pnand %p4238_p5, %p4235_p3 }
  0x24   : > { %4243 = shalt.err (!%p4240_p7)
}
  0x25   : > { %s4244_s25 = scalar_lea.vmem %s4587_s18, 32  ;;  %p4252_p2 = scmp.lt.s32.totalorder %s4587_s18, %s4587_s18 }
  0x26   : > { %p4245_p9 = scmp.ne.s32.totalorder %s4587_s18, %s4244_s25  ;;  %p4253_p6 = scmp.lt.s32.totalorder %s4244_s25, %s4244_s25 }
  0x28   : > { %p4247_p10 = pnand %p4245_p9, %p4610_p13  ;;  %p4254_p12 = por %p4253_p6, %p4252_p2 }
  0x2a   : > { %p4248_p1 = pneg %p4247_p10 }
  0x2c   : > { %p4255_p0 = pnand %p4254_p12, %p4248_p1 }
  0x2e   : > { %4258 = shalt.err (!%p4255_p0)
}
  0x2f   : > { %s4452_s15 = smov 16   ;;  %s4453_s24 = smov 1  }
  0x30   : > { %4051 = dma.hbm_to_vmem [thread:$0]  (!%p4594_p11), %s5371_s4, 32, %s4587_s18, [#allocation6], %s4452_s15, %s4452_s15, %s4453_s24  }
  0x31   : > { %s4259_s25 = scalar_lea.hbm %s5373_s6, 32 }
  0x32   : > { %p4260_p1 = scmp.ne.s32.totalorder %s5373_s6, %s4259_s25  ;;  %p4266_p10 = scmp.lt.u32.totalorder %s4259_s25, %s5373_s6 }
  0x34   : > { %p4262_p2 = pnand %p4260_p1, %p4610_p13 }
  0x36   : > { %p4263_p6 = pneg %p4262_p2 }
  0x38   : > { %p4268_p3 = pnand %p4266_p10, %p4263_p6 }
  0x3a   : > { %4271 = shalt.err (!%p4268_p3)
}
  0x3b   : > { %s4272_s18 = scalar_lea.vmem %s4598_s21, 32  ;;  %p4280_p12 = scmp.lt.s32.totalorder %s4598_s21, %s4598_s21 }
  0x3c   : > { %p4273_p5 = scmp.ne.s32.totalorder %s4598_s21, %s4272_s18  ;;  %p4281_p0 = scmp.lt.s32.totalorder %s4272_s18, %s4272_s18 }
  0x3e   : > { %p4275_p7 = pnand %p4273_p5, %p4610_p13  ;;  %p4282_p1 = por %p4281_p0, %p4280_p12 }
  0x40   : > { %p4276_p9 = pneg %p4275_p7 }
  0x42   : > { %p4283_p2 = pnand %p4282_p1, %p4276_p9 }
  0x44   : > { %4286 = shalt.err (!%p4283_p2)
}
  0x45   : > { %4057 = dma.hbm_to_vmem [thread:$0]  (!%p4594_p11), %s5373_s6, 32, %s4598_s21, [#allocation9], %s4452_s15, %s4452_s15, %s4453_s24  }
  0x46   : > { %s4287_s30 = scalar_lea.hbm %s5372_s5, 32 }
  0x47   : > { %p4288_p6 = scmp.ne.s32.totalorder %s5372_s5, %s4287_s30  ;;  %p4294_p5 = scmp.lt.u32.totalorder %s4287_s30, %s5372_s5 }
  0x49   : > { %p4290_p10 = pnand %p4288_p6, %p4610_p13 }
  0x4b   : > { %p4291_p3 = pneg %p4290_p10 }
  0x4d   : > { %p4296_p7 = pnand %p4294_p5, %p4291_p3 }
  0x4f   : > { %4299 = shalt.err (!%p4296_p7)
}
  0x50   : > { %s4300_s18 = scalar_lea.vmem %s375_s23, 32  ;;  %p4308_p1 = scmp.lt.s32.totalorder %s375_s23, %s375_s23 }
  0x51   : > { %p4301_p9 = scmp.ne.s32.totalorder %s375_s23, %s4300_s18  ;;  %p4309_p2 = scmp.lt.s32.totalorder %s4300_s18, %s4300_s18 }
  0x53   : > { %p4303_p12 = pnand %p4301_p9, %p4610_p13  ;;  %p4310_p4 = por %p4309_p2, %p4308_p1 }
  0x55   : > { %p4304_p0 = pneg %p4303_p12 }
  0x57   : > { %p4311_p8 = pnand %p4310_p4, %p4304_p0 }
  0x59   : > { %4314 = shalt.err (!%p4311_p8)
}
  0x5a   : > { %4054 = dma.hbm_to_vmem [thread:$0]  (!%p4594_p11), %s5372_s5, 32, %s375_s23, [#allocation6], %s4452_s15, %s4452_s15, %s4453_s24  }
  0x5b   : > { %s4454_s10 = smov [#allocation10]   ;;  %s4315_s17 = scalar_lea.hbm %s5375_s8, 32 }
  0x5c   : > { %s403_s11 = sshll.u32 %s4454_s10, 4  ;;  %p4316_p4 = scmp.ne.s32.totalorder %s5375_s8, %s4315_s17  ;;  %s404_s11 = int_to_ptr.vmem [resolvable:$true] %s403_s11 }
  0x5d   : > { %p4322_p10 = scmp.lt.u32.totalorder %s4315_s17, %s5375_s8 }
  0x5e   : > { %p4318_p8 = pnand %p4316_p4, %p4610_p13 }
  0x60   : > { %p4319_p6 = pneg %p4318_p8 }
  0x62   : > { %p4324_p3 = pnand %p4322_p10, %p4319_p6 }
  0x64   : > { %4327 = shalt.err (!%p4324_p3)
}
  0x65   : > { %s4328_s23 = scalar_lea.vmem %s404_s11, 32  ;;  %p4336_p12 = scmp.lt.s32.totalorder %s404_s11, %s404_s11 }
  0x66   : > { %p4329_p5 = scmp.ne.s32.totalorder %s404_s11, %s4328_s23  ;;  %p4337_p0 = scmp.lt.s32.totalorder %s4328_s23, %s4328_s23 }
  0x68   : > { %p4331_p7 = pnand %p4329_p5, %p4610_p13  ;;  %p4338_p1 = por %p4337_p0, %p4336_p12 }
  0x6a   : > { %p4332_p9 = pneg %p4331_p7 }
  0x6c   : > { %p4339_p2 = pnand %p4338_p1, %p4332_p9 }
  0x6e   : > { %4342 = shalt.err (!%p4339_p2)
}
  0x6f   : > { %4060 = dma.hbm_to_vmem [thread:$0]  (!%p4594_p11), %s5375_s8, 32, %s404_s11, [#allocation9], %s4452_s15, %s4452_s15, %s4453_s24  }
  0x70   : > { %s4704_s13 = sadd.s32 1, %s4447_s28   ;;  %s38_s19 = sadd.s32 1, %s4443_s27 }
  0x71   : > { %s35_s10 = ssub.s32 %s4447_s28, %s4704_s13  ;;  %p45_p13 = scmp.ne.s32.totalorder %s4443_s27, %s4439_s26 }
  0x72   : > { %p36_p4 = scmp.eq.s32.totalorder %s35_s10, 0  ;;  %p46_p8 = scmp.eq.s32.totalorder %s4447_s28, 0 }
  0x73   : > { %p5418_p6 = scmp.eq.s32.totalorder %s4564_s29, 1  ;;  %p4073_p3 = scmp.lt.s32.totalorder %s4447_s28, 2 }
  0x74   : > { %s4720_s30 = scalar_select %p36_p4, %s4443_s27, %s38_s19  }
  0x75   : > { %p4714_p10 = por %p5418_p6, %p45_p13  ;;  %p47_p5 = por %p46_p8, %p45_p13 }
  0x76   : > { %s429_s17 = sand.u32 1, %s4443_s27   ;;  %s3626_s15 = sshll.u32 %s4447_s28, 7 }
  0x77   : > { %s3506_s20 = sshll.u32 %s429_s17, 3  ;;  %s5420_s0 = sld [smem:[#allocation18_spill]] }
  0x78   : > { %s433_s25 = scalar_lea.vmem [#allocation2], %s3506_s20  ;;  %p4731_p11 = pnand %p4073_p3, %p47_p5 }
  0x79   : > { %s440_s18 = sshll.u32 %s433_s25, 4  ;;  %s4735_s21 = scalar_lea.sflag [#allocation3], %s429_s17  ;;  %s4729_s18 = int_to_ptr.vmem [resolvable:$true] %s440_s18 }
  0x7a   : > { %p4345_p9 = pneg %p4731_p11 }
  0x7d   : > { %s4727_s22 = scalar_lea.hbm %s5420_s0, %s3626_s15  ;;  %s4348_s20 = scalar_lea.hbm %s5420_s0, 256 }
  0x7e   : > { %s4343_s9 = scalar_lea.hbm %s4727_s22, 128  ;;  %p4349_p1 = scmp.lt.u32.totalorder %s4727_s22, %s5420_s0 }
  0x7f   : > { %p4344_p7 = scmp.ne.s32.totalorder %s4727_s22, %s4343_s9  ;;  %p4350_p2 = scmp.lt.u32.totalorder %s4348_s20, %s4343_s9 }
  0x80   : > { %p4352_p4 = scmp.lt.u32.totalorder %s4343_s9, %s4727_s22 }
  0x81   : > { %p4346_p12 = pnand %p4345_p9, %p4344_p7  ;;  %p4351_p13 = por %p4350_p2, %p4349_p1 }
  0x83   : > { %p4347_p0 = pneg %p4346_p12  ;;  %p4353_p8 = por %p4352_p4, %p4351_p13 }
  0x85   : > { %p4354_p6 = pnand %p4353_p8, %p4347_p0 }
  0x87   : > { %4357 = shalt.err (!%p4354_p6)
}
  0x88   : > { %s4358_s17 = scalar_lea.vmem %s4729_s18, 128  ;;  %s4455_s11 = smov [#allocation2]  }
  0x89   : > { %p4359_p3 = scmp.ne.s32.totalorder %s4729_s18, %s4358_s17  ;;  %s4363_s25 = sshll.u32 %s4455_s11, 4  ;;  %s4364_s25 = int_to_ptr.vmem [resolvable:$false] %s4363_s25 }
  0x8a   : > { %s4365_s19 = scalar_lea.vmem %s4364_s25, 256  ;;  %p4366_p12 = scmp.lt.s32.totalorder %s4729_s18, %s4364_s25 }
  0x8b   : > { %p4361_p5 = pnand %p4359_p3, %p4345_p9  ;;  %p4367_p1 = scmp.lt.s32.totalorder %s4365_s19, %s4358_s17 }
  0x8d   : > { %p4362_p7 = pneg %p4361_p5  ;;  %p4368_p2 = por %p4367_p1, %p4366_p12 }
  0x8f   : > { %p4369_p13 = pnand %p4368_p2, %p4362_p7 }
  0x91   : > { %4372 = shalt.err (!%p4369_p13)
}
  0x92   : > { %s4456_s9 = smov 64   ;;  %s4457_s10 = smov 4  }
  0x93   : > { %4064 = dma.hbm_to_vmem [thread:$0]  (!%p4731_p11), %s4727_s22, 128, %s4729_s18, %s4735_s21, %s4456_s9, %s4456_s9, %s4457_s10  }
  0x94   : > { %p5422_p9 = scmp.ne.s32.totalorder %s5415_s16, 0 }
  0x95   : > { %s4766_s20 = sand.u32 (!%p5422_p9), 1, %s4439_s26   ;;  %p5423_p0 = scmp.ne.s32.totalorder (!%p5422_p9), %s5412_s14, 0 }
  0x96   : > { %452 = sbr.rel (%p5422_p9) target bundleno = 9009 (0x2331), region = 72  ;;  %s5391_s15 = sshll.u32 (!%p5422_p9), %s4766_s20, 3 }
  0x97   : > { %s455_s24 = scalar_lea.sflag (!%p5422_p9), [#allocation3], %s4766_s20  ;;  %s458_s17 = scalar_lea.vmem (!%p5422_p9), [#allocation2], %s5391_s15 }
  0x9d   : > { %4418 = dma.done.wait (%p5423_p0), %s455_s24, 128  }
  0x9e   : > { %4420 = vsyncadd (%p5423_p0), %s455_s24, 4294967168  ;;  %p5424_p11 = scmp.eq.s32.totalorder %s4564_s29, 0 }
  0xa0   : > { %4422 = dma.done.wait (%p5424_p11), [#allocation6], 64   ;;  %p5425_p4 = pmov %p5424_p11 }
  0xa2   : > { %4424 = vsyncadd (%p5425_p4), [#allocation6], 4294967232  ;;  %p5426_p8 = pmov %p5425_p4 }
  0xa3   : > { %p5427_p6 = pmov %p5425_p4 }
  0xa4   : > { %4426 = dma.done.wait (%p5426_p8), [#allocation9], 64  }
  0xa5   : > { %4428 = vsyncadd (%p5427_p6), [#allocation9], 4294967232  ;;  %v4458_v0 = vmov 0.0   ;;  %vm4459_vm0 = vmmov 0   ;;  %v4133_v1 = vld [vmem:[%s5368_s1] sm:$0xff]   ;;  %v4134_v2 = vld [vmem:[%s5368_s1 + $0x8] sm:$0xff]  }
  0xa6   : > { %3732 = vmatprep.subr.bf16.mxu1 %v4458_v0  ;;  %3736 = vmatprep.mubr.msk.bf16.mxu1 %vm4459_vm0, %v4458_v0  ;;  %v4796_v3 = vld [vmem:[%s458_s17] sm:$0xff]   ;;  %vm552_vm1 = vcmask 261120   ;;  %s4460_s11 = smov 96   ;;  %vm606_vm2 = vcmask 64512   ;;  %s5404_s25 = smov 64   ;;  %vm731_vm3 = vcmask 1043456  }
  0xa7   : > { %3746 = vmatprep.subr.bf16.mxu0 %v4458_v0  ;;  %3748 = vmatprep.mubr.msk.bf16.mxu0 %vm4459_vm0, %v4458_v0  ;;  %v3516_v4 = vld [vmem:[%s5369_s2] ss:$0 sm:$0xff]  ;;  %s4462_s19 = smov 88   ;;  %s4463_s9 = smov 120   ;;  %vm1851_vm4 = vcmask 523264   ;;  %vm3371_vm5 = vcmask 257024  }
  0xa8   : > { %3733 = vmatpush3.bf16.msra.mxu1 %v4133_v1  ;;  %s4464_s10 = smov 56   ;;  %s5400_s24 = smov 112  }
  0xa9   : > { %3734 = vmatprep.subr.bf16.mxu1 %v4458_v0  ;;  %s5402_s17 = smov 80   ;;  %s5398_s23 = smov 48  }
  0xaa   : > { %s5396_s21 = smov 72   ;;  %s5394_s14 = smov 104  }
  0xab   : > { %s5392_s18 = smov 40   ;;  %s5429_s16 = sld [smem:[#allocation20_spill]] }
  0xac   : > { %3735 = vmatpush3.bf16.msra.mxu1 %v4134_v2  ;;  %s5434_s15 = smov 48   ;;  %s3629_s22 = sshll.u32 %s4564_s29, 7 }
  0xad   : > { %3740 = vmatprep.subr.bf16.mxu1 %v4458_v0 }
  0xaf   : > { %3737 = vmatmul.mubr.msk.bf16.vlgmr.msra.gmra.mrb[0].mxu1 %vm552_vm1, %v4796_v3 }
  0xb0   : > { %3742 = vmatprep.mubr.msk.bf16.mxu1 %vm4459_vm0, %v4458_v0 }
 0x182   : > { %v590_v5 = vpop.f32.mrb[0].mxu1 }
 0x183   : > { %v591_v6 = vadd.f32 %v3516_v4, %v590_v5  ;;  %v3738_v7 = vpop.f32.mrb[1].mxu1 }
 0x184   : > { %v593_v8 = vpop.f32.mrb[2].mxu1 }
 0x185   : > { %v4807_v9 = vpack.c.bf16 %v591_v6, %v591_v6  ;;  %v594_v10 = vadd.f32 %v3516_v4, %v593_v8  ;;  %v3739_v11 = vpop.f32.mrb[3].mxu1  ;;  %v597_v15 = vmul.f32 0.35355338, %v591_v6 }
 0x187   : > { %604 = vrot.lane.b32.xlu0 %v4807_v9, %s4460_s11  ;;  %v4811_v12 = vpack.c.bf16 %v594_v10, %v594_v10  ;;  %v4818_v18 = vpack.c.bf16 %v597_v15, %v597_v15  ;;  %v598_v19 = vmul.f32 0.35355338, %v594_v10 }
 0x189   : > { %v4825_v20 = vpack.c.bf16 %v598_v19, %v598_v19 }
 0x18b   : > { %654 = vrot.lane.b32.xlu0 %v4811_v12, %s4460_s11 }
 0x1f9   : > { %v605_v13 = vpop.permute.xlu0 %604 }
 0x1fa   : > { %v611_v14 = vsel %vm606_vm2, %v605_v13, 0 }
 0x1fb   : > { %3741 = vmatpush3.bf16.xpose.msra.mxu1 %v611_v14 }
 0x1fc   : > { %3752 = vmatprep.subr.bf16.mxu1 %v4458_v0 }
 0x1fd   : > { %v655_v16 = vpop.permute.xlu0 %654 }
 0x1fe   : > { %v660_v17 = vsel %vm606_vm2, %v655_v16, 0 }
 0x1ff   : > { %3747 = vmatpush3.bf16.xpose.msra.mxu0 %v660_v17 }
 0x200   : > { %3758 = vmatprep.subr.bf16.mxu0 %v4458_v0 }
 0x202   : > { %3743 = vmatmul.mubr.msk.bf16.vlgmr.msra.gmra.mrb[4].mxu1 %vm606_vm2, %v4818_v18 }
 0x203   : > { %3754 = vmatprep.mubr.msk.bf16.mxu1 %vm4459_vm0, %v4458_v0 }
 0x206   : > { %3749 = vmatmul.mubr.msk.bf16.vlgmr.msra.gmra.mrb[0].mxu0 %vm606_vm2, %v4825_v20 }
 0x207   : > { %3760 = vmatprep.mubr.msk.bf16.mxu0 %vm4459_vm0, %v4458_v0 }
 0x2d5   : > { %v647_v21 = vpop.f32.mrb[4].mxu1 }
 0x2d6   : > { %v3744_v22 = vpop.f32.mrb[5].mxu1  ;;  %v702_v23 = vsel %vm606_vm2, %v647_v21, -inf }
 0x2d7   : > { %703 = vmax.xlane.f32.xlu1 %v702_v23  ;;  %v650_v24 = vpop.f32.mrb[6].mxu1 }
 0x2d8   : > { %v3745_v25 = vpop.f32.mrb[7].mxu1 }
 0x2d9   : > { %v696_v26 = vpop.f32.mrb[0].mxu0 }
 0x2da   : > { %v3750_v27 = vpop.f32.mrb[1].mxu0  ;;  %v705_v28 = vsel %vm606_vm2, %v696_v26, -inf }
 0x2db   : > { %v699_v29 = vpop.f32.mrb[2].mxu0  ;;  %706 = vmax.xlane.f32.xlu1 %v705_v28 }
 0x2dc   : > { %v3751_v30 = vpop.f32.mrb[3].mxu0 }
 0x2ec   : > { %726 = vrot.lane.b32.xlu1 %v4807_v9, %s5404_s25 }
 0x2f0   : > { %775 = vrot.lane.b32.xlu1 %v4811_v12, %s5404_s25 }
 0x2f4   : > { %828 = vrot.lane.b32.xlu1 %v4807_v9, %s4462_s19 }
 0x364   : > { %v704_v31 = vpop.xlane.xlu1 %703 }
 0x365   : > { %v708_v32 = vsub.f32 %v647_v21, %v704_v31 }
 0x367   : > { %v710_v33 = vmul.f32 1.442695, %v708_v32 }
 0x368   : > { %v707_v34 = vpop.xlane.xlu1 %706 }
 0x369   : > { %4151 = vpow2.f32 %v710_v33  ;;  %v709_v35 = vsub.f32 %v696_v26, %v707_v34 }
 0x36b   : > { %v712_v36 = vmul.f32 1.442695, %v709_v35 }
 0x36c   : > { %v727_v37 = vpop.permute.xlu1 %726 }
 0x36d   : > { %4153 = vpow2.f32 %v712_v36  ;;  %v733_v38 = vsel %vm731_vm3, %v727_v37, 0  ;;  %v1048_v37 = vld [vmem:[%s5370_s3 + $0x4] sm:$0xf] }
 0x36e   : > { %3753 = vmatpush3.bf16.msra.mxu1 %v733_v38 }
 0x36f   : > { %3764 = vmatprep.subr.bf16.mxu1 %v4458_v0 }
 0x370   : > { %v776_v39 = vpop.permute.xlu1 %775 }
 0x371   : > { %v781_v40 = vsel %vm731_vm3, %v776_v39, 0 }
 0x372   : > { %3759 = vmatpush3.bf16.msra.mxu0 %v781_v40  ;;  %v1053_v40 = vsel %vm731_vm3, %v1048_v37, 0 }
 0x373   : > { %v4152_v41 = vpop.eup %4151  ;;  %3770 = vmatprep.subr.bf16.mxu0 %v4458_v0 }
 0x374   : > { %v714_v42 = vsel %vm606_vm2, %v4152_v41, 0.0  ;;  %v829_v45 = vpop.permute.xlu1 %828 }
 0x375   : > { %715 = vadd.xlane.f32.xlu0 %v714_v42  ;;  %v834_v52 = vsel %vm606_vm2, %v829_v45, 0  ;;  %v824_v42 = vld [vmem:[%s5370_s3] sm:$0xf] }
 0x376   : > { %v1100_v45 = vsel %vm731_vm3, %v824_v42, 0 }
 0x377   : > { %v4154_v43 = vpop.eup %4153 }
 0x378   : > { %v717_v44 = vsel %vm606_vm2, %v4154_v43, 0.0 }
 0x379   : > { %718 = vadd.xlane.f32.xlu1 %v717_v44 }
 0x38a   : > { %879 = vrot.lane.b32.xlu1 %v4811_v12, %s4462_s19 }
 0x38b   : > { %826 = vrot.lane.b32.xlu0 %v4818_v18, %s4463_s9 }
 0x38e   : > { %877 = vrot.lane.b32.xlu1 %v4825_v20, %s4463_s9 }
 0x402   : > { %v716_v46 = vpop.xlane.xlu0 %715 }
 0x403   : > { %4155 = vrcp.f32 %v716_v46 }
 0x406   : > { %v719_v47 = vpop.xlane.xlu1 %718  ;;  %v827_v57 = vpop.permute.xlu0 %826 }
 0x407   : > { %4157 = vrcp.f32 %v719_v47 }
 0x40a   : > { %v880_v54 = vpop.permute.xlu1 %879 }
 0x40b   : > { %v885_v56 = vsel %vm606_vm2, %v880_v54, 0 }
 0x40d   : > { %v4156_v48 = vpop.eup %4155 }
 0x40e   : > { %v722_v49 = vmul.f32 %v4156_v48, %v4152_v41  ;;  %v878_v58 = vpop.permute.xlu1 %877 }
 0x410   : > { %v724_v50 = vpack.c.bf16 %v722_v49, %v722_v49 }
 0x411   : > { %v4158_v51 = vpop.eup %4157 }
 0x412   : > { %v723_v53 = vmul.f32 %v4158_v51, %v4154_v43  ;;  %3755 = vmatmul.mubr.msk.bf16.vlgmr.msra.gmra.mrb[8].mxu1 %vm606_vm2, %v724_v50 }
 0x413   : > { %3765 = vmatpush3.bf16.xpose.msra.mxu1 %v834_v52  ;;  %3766 = vmatprep.mubr.msk.bf16.mxu1 %vm4459_vm0, %v4458_v0 }
 0x414   : > { %v725_v55 = vpack.c.bf16 %v723_v53, %v723_v53  ;;  %3776 = vmatprep.subr.bf16.mxu1 %v4458_v0 }
 0x416   : > { %3761 = vmatmul.mubr.msk.bf16.vlgmr.msra.gmra.mrb[4].mxu0 %vm606_vm2, %v725_v55 }
 0x417   : > { %3771 = vmatpush3.bf16.xpose.msra.mxu0 %v885_v56  ;;  %3772 = vmatprep.mubr.msk.bf16.mxu0 %vm4459_vm0, %v4458_v0 }
 0x418   : > { %3782 = vmatprep.subr.bf16.mxu0 %v4458_v0 }
 0x41a   : > { %3767 = vmatmul.mubr.msk.bf16.vlgmr.msra.gmra.mrb[12].mxu1 %vm606_vm2, %v827_v57 }
 0x41b   : > { %3778 = vmatprep.mubr.msk.bf16.mxu1 %vm4459_vm0, %v4458_v0 }
 0x41e   : > { %3773 = vmatmul.mubr.msk.bf16.vlgmr.msra.gmra.mrb[8].mxu0 %vm606_vm2, %v878_v58 }
 0x41f   : > { %3784 = vmatprep.mubr.msk.bf16.mxu0 %vm4459_vm0, %v4458_v0 }
 0x4e5   : > { %v4867_v59 = vpop.f32.mrb[8].mxu1 }
 0x4e6   : > { %v3756_v60 = vpop.f32.mrb[9].mxu1 }
 0x4e7   : > { %v772_v61 = vpop.f32.mrb[10].mxu1 }
 0x4e8   : > { %v3757_v62 = vpop.f32.mrb[11].mxu1 }
 0x4e9   : > { %v4869_v63 = vpop.f32.mrb[4].mxu0 }
 0x4ea   : > { %v823_v1 = vpack.c.bf16 %v4869_v63, %v4867_v59  ;;  %v3762_v2 = vpop.f32.mrb[5].mxu0 }
 0x4eb   : > { %v820_v4 = vpop.f32.mrb[6].mxu0 }
 0x4ec   : > { %v3763_v5 = vpop.f32.mrb[7].mxu0 }
 0x4ed   : > { %v870_v6 = vpop.f32.mrb[12].mxu1 }
 0x4ee   : > { %v3768_v7 = vpop.f32.mrb[13].mxu1  ;;  %v927_v8 = vsel %vm606_vm2, %v870_v6, -inf }
 0x4ef   : > { %928 = vmax.xlane.f32.xlu1 %v927_v8  ;;  %v873_v10 = vpop.f32.mrb[14].mxu1 }
 0x4f0   : > { %v3769_v11 = vpop.f32.mrb[15].mxu1 }
 0x4f1   : > { %v921_v13 = vpop.f32.mrb[8].mxu0 }
 0x4f2   : > { %v3774_v14 = vpop.f32.mrb[9].mxu0  ;;  %v930_v15 = vsel %vm606_vm2, %v921_v13, -inf }
 0x4f3   : > { %931 = vmax.xlane.f32.xlu0 %v930_v15  ;;  %v924_v16 = vpop.f32.mrb[10].mxu0 }
 0x4f4   : > { %v3775_v17 = vpop.f32.mrb[11].mxu0 }
 0x509   : > { %999 = vrot.lane.b32.xlu0 %v4811_v12, %s4464_s10 }
 0x50d   : > { %1143 = vrot.lane.b32.xlu0 %v4818_v18, %s5400_s24 }
 0x57c   : > { %v929_v19 = vpop.xlane.xlu1 %928 }
 0x57d   : > { %v933_v21 = vsub.f32 %v870_v6, %v929_v19 }
 0x57f   : > { %v935_v22 = vmul.f32 1.442695, %v933_v21 }
 0x580   : > { %v932_v23 = vpop.xlane.xlu0 %931 }
 0x581   : > { %4159 = vpow2.f32 %v935_v22  ;;  %v934_v24 = vsub.f32 %v921_v13, %v932_v23 }
 0x583   : > { %v937_v25 = vmul.f32 1.442695, %v934_v24 }
 0x584   : > { %v1000_v26 = vpop.permute.xlu0 %999 }
 0x585   : > { %4161 = vpow2.f32 %v937_v25  ;;  %v1005_v27 = vsel %vm731_vm3, %v1000_v26, 0 }
 0x586   : > { %3783 = vmatpush3.bf16.msra.mxu0 %v1005_v27 }
 0x587   : > { %3794 = vmatprep.subr.bf16.mxu0 %v4458_v0 }
 0x588   : > { %v1144_v62 = vpop.permute.xlu0 %1143 }
 0x58b   : > { %v4160_v28 = vpop.eup %4159 }
 0x58c   : > { %v939_v29 = vsel %vm606_vm2, %v4160_v28, 0.0 }
 0x58d   : > { %940 = vadd.xlane.f32.xlu1 %v939_v29 }
 0x58f   : > { %v4162_v30 = vpop.eup %4161 }
 0x590   : > { %v942_v31 = vsel %vm606_vm2, %v4162_v30, 0.0 }
 0x591   : > { %943 = vadd.xlane.f32.xlu1 %v942_v31 }
 0x5a2   : > { %951 = vrot.lane.b32.xlu1 %v4807_v9, %s4464_s10 }
 0x5a6   : > { %1145 = vrot.lane.b32.xlu1 %v4807_v9, %s5402_s17 }
 0x5aa   : > { %1195 = vrot.lane.b32.xlu1 %v4811_v12, %s5402_s17  ;;  %s5435_s17 = smov 72  }
 0x5ae   : > { %1193 = vrot.lane.b32.xlu1 %v4825_v20, %s5400_s24  ;;  %s5431_s24 = sld [smem:[#allocation22_spill]] }
 0x61a   : > { %v941_v32 = vpop.xlane.xlu1 %940 }
 0x61b   : > { %4163 = vrcp.f32 %v941_v32 }
 0x61e   : > { %v944_v33 = vpop.xlane.xlu1 %943 }
 0x61f   : > { %4165 = vrcp.f32 %v944_v33 }
 0x622   : > { %v952_v34 = vpop.permute.xlu1 %951 }
 0x623   : > { %v957_v35 = vsel %vm731_vm3, %v952_v34, 0 }
 0x624   : > { %3777 = vmatpush3.bf16.msra.mxu1 %v957_v35 }
 0x625   : > { %v4164_v36 = vpop.eup %4163  ;;  %3788 = vmatprep.subr.bf16.mxu1 %v4458_v0 }
 0x626   : > { %v947_v38 = vmul.f32 %v4164_v36, %v4160_v28  ;;  %v1146_v46 = vpop.permute.xlu1 %1145 }
 0x627   : > { %v1151_v58 = vsel %vm606_vm2, %v1146_v46, 0  ;;  %v1364_v46 = vld [vmem:[%s5370_s3 + $0x8] sm:$0xf] }
 0x628   : > { %v949_v39 = vpack.c.bf16 %v947_v38, %v947_v38 }
 0x629   : > { %v4166_v41 = vpop.eup %4165 }
 0x62a   : > { %v948_v43 = vmul.f32 %v4166_v41, %v4162_v30  ;;  %3779 = vmatmul.mubr.msk.bf16.vlgmr.msra.gmra.mrb[16].mxu1 %vm606_vm2, %v949_v39  ;;  %v1196_v47 = vpop.permute.xlu1 %1195 }
 0x62b   : > { %3789 = vmatpush3.bf16.msra.mxu1 %v1053_v40  ;;  %3790 = vmatprep.mubr.msk.bf16.mxu1 %vm4459_vm0, %v4458_v0  ;;  %v1201_v48 = vsel %vm606_vm2, %v1196_v47, 0  ;;  %v1369_v47 = vsel %vm731_vm3, %v1364_v46, 0 }
 0x62c   : > { %v950_v44 = vpack.c.bf16 %v948_v43, %v948_v43  ;;  %3800 = vmatprep.subr.bf16.mxu1 %v4458_v0 }
 0x62e   : > { %3785 = vmatmul.mubr.msk.bf16.vlgmr.msra.gmra.mrb[12].mxu0 %vm606_vm2, %v950_v44  ;;  %v1194_v49 = vpop.permute.xlu1 %1193 }
 0x62f   : > { %3795 = vmatpush3.bf16.msra.mxu0 %v1100_v45  ;;  %3796 = vmatprep.mubr.msk.bf16.mxu0 %vm4459_vm0, %v4458_v0 }
 0x630   : > { %3806 = vmatprep.subr.bf16.mxu0 %v4458_v0 }
 0x636   : > { %3797 = vmatmul.mubr.msk.bf16.vlgmr.msra.gmra.mrb[16].mxu0 %vm606_vm2, %v823_v1 }
 0x637   : > { %3808 = vmatprep.mubr.msk.bf16.mxu0 %vm4459_vm0, %v4458_v0 }
 0x638   : > { %3807 = vmatpush3.bf16.xpose.msra.mxu0 %v1201_v48 }
 0x639   : > { %3818 = vmatprep.subr.bf16.mxu0 %v4458_v0 }
 0x63f   : > { %3809 = vmatmul.mubr.msk.bf16.vlgmr.msra.gmra.mrb[20].mxu0 %vm606_vm2, %v1194_v49 }
 0x640   : > { %3820 = vmatprep.mubr.msk.bf16.mxu0 %vm4459_vm0, %v4458_v0 }
 0x6fd   : > { %v993_v50 = vpop.f32.mrb[16].mxu1 }
 0x6fe   : > { %v3780_v51 = vpop.f32.mrb[17].mxu1 }
 0x6ff   : > { %v996_v52 = vpop.f32.mrb[18].mxu1 }
 0x700   : > { %v3781_v53 = vpop.f32.mrb[19].mxu1 }
 0x701   : > { %v1041_v54 = vpop.f32.mrb[12].mxu0 }
 0x702   : > { %v1047_v55 = vpack.c.bf16 %v1041_v54, %v993_v50  ;;  %v3786_v56 = vpop.f32.mrb[13].mxu0 }
 0x703   : > { %v1044_v57 = vpop.f32.mrb[14].mxu0 }
 0x704   : > { %v3787_v59 = vpop.f32.mrb[15].mxu0  ;;  %3791 = vmatmul.mubr.msk.bf16.vlgmr.msra.gmra.mrb[20].mxu1 %vm606_vm2, %v1047_v55 }
 0x705   : > { %3801 = vmatpush3.bf16.xpose.msra.mxu1 %v1151_v58  ;;  %3802 = vmatprep.mubr.msk.bf16.mxu1 %vm4459_vm0, %v4458_v0 }
 0x706   : > { %3812 = vmatprep.subr.bf16.mxu1 %v4458_v0 }
 0x709   : > { %v1136_v60 = vpop.f32.mrb[16].mxu0 }
 0x70a   : > { %v3798_v61 = vpop.f32.mrb[17].mxu0 }
 0x70b   : > { %v1139_v63 = vpop.f32.mrb[18].mxu0 }
 0x70c   : > { %v3799_v1 = vpop.f32.mrb[19].mxu0  ;;  %3803 = vmatmul.mubr.msk.bf16.vlgmr.msra.gmra.mrb[24].mxu1 %vm606_vm2, %v1144_v62 }
 0x70d   : > { %3814 = vmatprep.mubr.msk.bf16.mxu1 %vm4459_vm0, %v4458_v0 }
 0x712   : > { %v1237_v2 = vpop.f32.mrb[20].mxu0 }
 0x713   : > { %v3810_v4 = vpop.f32.mrb[21].mxu0  ;;  %v1246_v5 = vsel %vm606_vm2, %v1237_v2, -inf }
 0x714   : > { %1247 = vmax.xlane.f32.xlu1 %v1246_v5  ;;  %v1240_v6 = vpop.f32.mrb[22].mxu0 }
 0x715   : > { %v3811_v7 = vpop.f32.mrb[23].mxu0 }
 0x725   : > { %1267 = vrot.lane.b32.xlu1 %v4807_v9, %s5398_s23 }
 0x729   : > { %1416 = vrot.lane.b32.xlu1 %v4807_v9, %s5396_s21 }
 0x72d   : > { %1466 = vrot.lane.b32.xlu1 %v4811_v12, %s5396_s21  ;;  %s5436_s21 = smov 104  }
 0x731   : > { %1464 = vrot.lane.b32.xlu1 %v4825_v20, %s5394_s14 }
 0x7a1   : > { %v1248_v8 = vpop.xlane.xlu1 %1247 }
 0x7a2   : > { %v1250_v13 = vsub.f32 %v1237_v2, %v1248_v8 }
 0x7a4   : > { %v1253_v14 = vmul.f32 1.442695, %v1250_v13 }
 0x7a5   : > { %v1268_v10 = vpop.permute.xlu1 %1267 }
 0x7a6   : > { %v1273_v11 = vsel %vm731_vm3, %v1268_v10, 0  ;;  %4167 = vpow2.f32 %v1253_v14 }
 0x7a7   : > { %3813 = vmatpush3.bf16.msra.mxu1 %v1273_v11 }
 0x7a8   : > { %3824 = vmatprep.subr.bf16.mxu1 %v4458_v0 }
 0x7b0   : > { %v4168_v25 = vpop.eup %4167 }
 0x7b1   : > { %v1258_v28 = vsel %vm606_vm2, %v4168_v25, 0.0 }
 0x7d7   : > { %v1089_v15 = vpop.f32.mrb[20].mxu1 }
 0x7d8   : > { %v4939_v16 = vadd.f32 %v1136_v60, %v1089_v15  ;;  %v3792_v17 = vpop.f32.mrb[21].mxu1 }
 0x7d9   : > { %v1092_v19 = vpop.f32.mrb[22].mxu1 }
 0x7da   : > { %v4941_v21 = vadd.f32 %v1139_v63, %v1092_v19  ;;  %v3793_v22 = vpop.f32.mrb[23].mxu1 }
 0x7df   : > { %v1187_v23 = vpop.f32.mrb[24].mxu1 }
 0x7e0   : > { %v3804_v20 = vpop.f32.mrb[25].mxu1  ;;  %v1243_v24 = vsel %vm606_vm2, %v1187_v23, -inf }
 0x7e1   : > { %1244 = vmax.xlane.f32.xlu0 %v1243_v24  ;;  %v1190_v26 = vpop.f32.mrb[26].mxu1 }
 0x7e2   : > { %v3805_v27 = vpop.f32.mrb[27].mxu1 }
 0x7e5   : > { %1259 = vadd.xlane.f32.xlu0 %v1258_v28 }
 0x86e   : > { %v1245_v29 = vpop.xlane.xlu0 %1244 }
 0x86f   : > { %v1249_v30 = vsub.f32 %v1187_v23, %v1245_v29 }
 0x871   : > { %v1251_v31 = vmul.f32 1.442695, %v1249_v30 }
 0x872   : > { %v1260_v34 = vpop.xlane.xlu0 %1259 }
 0x873   : > { %4169 = vpow2.f32 %v1251_v31 }
 0x874   : > { %4171 = vrcp.f32 %v1260_v34 }
 0x87d   : > { %v4170_v32 = vpop.eup %4169 }
 0x87e   : > { %v1255_v33 = vsel %vm606_vm2, %v4170_v32, 0.0  ;;  %v4172_v35 = vpop.eup %4171 }
 0x87f   : > { %1256 = vadd.xlane.f32.xlu0 %v1255_v33  ;;  %v1264_v37 = vmul.f32 %v4172_v35, %v4168_v25 }
 0x881   : > { %v1266_v40 = vpack.c.bf16 %v1264_v37, %v1264_v37 }
 0x895   : > { %1315 = vrot.lane.b32.xlu0 %v4811_v12, %s5398_s23  ;;  %s5428_s23 = sld [smem:[#allocation19_spill]] }
 0x899   : > { %1414 = vrot.lane.b32.xlu0 %v4818_v18, %s5394_s14  ;;  %v1417_v18 = vpop.permute.xlu1 %1416 }
 0x89a   : > { %v1422_v43 = vsel %vm606_vm2, %v1417_v18, 0 }
 0x89d   : > { %v1467_v52 = vpop.permute.xlu1 %1466 }
 0x89e   : > { %v1472_v57 = vsel %vm606_vm2, %v1467_v52, 0 }
 0x8a1   : > { %v1465_v1 = vpop.permute.xlu1 %1464 }
 0x90c   : > { %v1257_v36 = vpop.xlane.xlu0 %1256 }
 0x90d   : > { %4173 = vrcp.f32 %v1257_v36 }
 0x910   : > { %v1316_v38 = vpop.permute.xlu0 %1315 }
 0x911   : > { %v1321_v39 = vsel %vm731_vm3, %v1316_v38, 0 }
 0x912   : > { %3819 = vmatpush3.bf16.msra.mxu0 %v1321_v39 }
 0x913   : > { %3830 = vmatprep.subr.bf16.mxu0 %v4458_v0 }
 0x914   : > { %v1415_v45 = vpop.permute.xlu0 %1414 }
 0x915   : > { %3821 = vmatmul.mubr.msk.bf16.vlgmr.msra.gmra.mrb[24].mxu0 %vm606_vm2, %v1266_v40 }
 0x916   : > { %3832 = vmatprep.mubr.msk.bf16.mxu0 %vm4459_vm0, %v4458_v0 }
 0x917   : > { %v4174_v41 = vpop.eup %4173 }
 0x918   : > { %v1263_v42 = vmul.f32 %v4174_v41, %v4170_v32  ;;  %v1635_v32 = vld [vmem:[%s5370_s3 + $0xc] sm:$0xf] }
 0x919   : > { %v1640_v33 = vsel %vm731_vm3, %v1635_v32, 0  ;;  %v4140_v32 = vld [vmem:[%s5428_s23 + $0x10] sm:$0xff]  }
 0x91a   : > { %v1265_v44 = vpack.c.bf16 %v1263_v42, %v1263_v42 }
 0x91b   : > { %3831 = vmatpush3.bf16.xpose.msra.mxu0 %v1422_v43 }
 0x91c   : > { %3815 = vmatmul.mubr.msk.bf16.vlgmr.msra.gmra.mrb[28].mxu1 %vm606_vm2, %v1265_v44  ;;  %3842 = vmatprep.subr.bf16.mxu0 %v4458_v0 }
 0x91d   : > { %3826 = vmatprep.mubr.msk.bf16.mxu1 %vm4459_vm0, %v4458_v0  ;;  %3825 = vmatpush3.bf16.msra.mxu1 %v1369_v47 }
 0x91e   : > { %3836 = vmatprep.subr.bf16.mxu1 %v4458_v0 }
 0x922   : > { %3833 = vmatmul.mubr.msk.bf16.vlgmr.msra.gmra.mrb[28].mxu0 %vm606_vm2, %v1415_v45 }
 0x923   : > { %3844 = vmatprep.mubr.msk.bf16.mxu0 %vm4459_vm0, %v4458_v0 }
 0x9e8   : > { %v1357_v48 = vpop.f32.mrb[24].mxu0 }
 0x9e9   : > { %v3822_v49 = vpop.f32.mrb[25].mxu0 }
 0x9ea   : > { %v1360_v50 = vpop.f32.mrb[26].mxu0 }
 0x9eb   : > { %v3823_v51 = vpop.f32.mrb[27].mxu0 }
 0x9ec   : > { %v522_v51 = vunpack.c.l.bf16 %v4796_v3 }
 0x9ef   : > { %v1309_v53 = vpop.f32.mrb[28].mxu1 }
 0x9f0   : > { %v1363_v54 = vpack.c.bf16 %v1357_v48, %v1309_v53  ;;  %v3816_v55 = vpop.f32.mrb[29].mxu1  ;;  %v3541_v48 = vld [vmem:[#allocation5] ss:$0 sm:$0xff] }
 0x9f1   : > { %v1312_v56 = vpop.f32.mrb[30].mxu1 }
 0x9f2   : > { %v3817_v58 = vpop.f32.mrb[31].mxu1  ;;  %3827 = vmatmul.mubr.msk.bf16.vlgmr.msra.gmra.mrb[32].mxu1 %vm606_vm2, %v1363_v54  ;;  %v523_v56 = vunpack.c.h.bf16 %v4796_v3 }
 0x9f3   : > { %3837 = vmatpush3.bf16.xpose.msra.mxu1 %v1472_v57  ;;  %3838 = vmatprep.mubr.msk.bf16.mxu1 %vm4459_vm0, %v4458_v0 }
 0x9f4   : > { %3848 = vmatprep.subr.bf16.mxu1 %v4458_v0 }
 0x9f5   : > { %v1458_v59 = vpop.f32.mrb[28].mxu0 }
 0x9f6   : > { %v3834_v60 = vpop.f32.mrb[29].mxu0  ;;  %v1514_v61 = vsel %vm606_vm2, %v1458_v59, -inf }
 0x9f7   : > { %1515 = vmax.xlane.f32.xlu0 %v1514_v61  ;;  %v1461_v62 = vpop.f32.mrb[30].mxu0 }
 0x9f8   : > { %v3835_v63 = vpop.f32.mrb[31].mxu0 }
 0x9fa   : > { %3839 = vmatmul.mubr.msk.bf16.vlgmr.msra.gmra.mrb[36].mxu1 %vm606_vm2, %v1465_v1 }
 0x9fb   : > { %3850 = vmatprep.mubr.msk.bf16.mxu1 %vm4459_vm0, %v4458_v0 }
 0xa84   : > { %v1516_v2 = vpop.xlane.xlu0 %1515 }
 0xa85   : > { %v1520_v4 = vsub.f32 %v1458_v59, %v1516_v2 }
 0xa87   : > { %v1522_v5 = vmul.f32 1.442695, %v1520_v4 }
 0xa89   : > { %4175 = vpow2.f32 %v1522_v5 }
 0xa93   : > { %v4176_v6 = vpop.eup %4175 }
 0xa94   : > { %v1526_v7 = vsel %vm606_vm2, %v4176_v6, 0.0 }
 0xa95   : > { %1527 = vadd.xlane.f32.xlu0 %v1526_v7 }
 0xac5   : > { %v1405_v8 = vpop.f32.mrb[32].mxu1 }
 0xac6   : > { %v1412_v10 = vadd.f32 %v1405_v8, %v4939_v16  ;;  %v3828_v11 = vpop.f32.mrb[33].mxu1 }
 0xac7   : > { %v1408_v13 = vpop.f32.mrb[34].mxu1  ;;  %v4137_v11 = vld [vmem:[%s5374_s7 + $0x8] sm:$0xff]  }
 0xac8   : > { %v1413_v14 = vadd.f32 %v1408_v13, %v4941_v21  ;;  %v3829_v15 = vpop.f32.mrb[35].mxu1  ;;  %v4138_v13 = vld [vmem:[%s5428_s23] sm:$0xff]  }
 0xacd   : > { %v1508_v17 = vpop.f32.mrb[36].mxu1 }
 0xace   : > { %v3840_v19 = vpop.f32.mrb[37].mxu1  ;;  %v1517_v22 = vsel %vm606_vm2, %v1508_v17, -inf }
 0xacf   : > { %1518 = vmax.xlane.f32.xlu1 %v1517_v22  ;;  %v1511_v23 = vpop.f32.mrb[38].mxu1 }
 0xad0   : > { %v3841_v20 = vpop.f32.mrb[39].mxu1 }
 0xae0   : > { %1538 = vrot.lane.b32.xlu1 %v4807_v9, %s5392_s18 }
 0xb22   : > { %v1528_v24 = vpop.xlane.xlu0 %1527 }
 0xb23   : > { %4177 = vrcp.f32 %v1528_v24 }
 0xb2d   : > { %v4178_v25 = vpop.eup %4177 }
 0xb2e   : > { %v1534_v27 = vmul.f32 %v4178_v25, %v4176_v6  ;;  %v3542_v25 = vld [vmem:[#allocation7] ss:$0 sm:$0xff] }
 0xb30   : > { %v1536_v30 = vpack.c.bf16 %v1534_v27, %v1534_v27 }
 0xb5c   : > { %v1519_v16 = vpop.xlane.xlu1 %1518 }
 0xb5d   : > { %v1521_v26 = vsub.f32 %v1508_v17, %v1519_v16 }
 0xb5f   : > { %v1524_v28 = vmul.f32 1.442695, %v1521_v26 }
 0xb60   : > { %v1539_v21 = vpop.permute.xlu1 %1538 }
 0xb61   : > { %4179 = vpow2.f32 %v1524_v28  ;;  %v1544_v29 = vsel %vm731_vm3, %v1539_v21, 0  ;;  %v3543_v21 = vld [vmem:[#allocation8] ss:$0 sm:$0xff] }
 0xb62   : > { %3843 = vmatpush3.bf16.msra.mxu0 %v1544_v29 }
 0xb63   : > { %3854 = vmatprep.subr.bf16.mxu0 %v4458_v0 }
 0xb65   : > { %3845 = vmatmul.mubr.msk.bf16.vlgmr.msra.gmra.mrb[32].mxu0 %vm606_vm2, %v1536_v30 }
 0xb66   : > { %3856 = vmatprep.mubr.msk.bf16.mxu0 %vm4459_vm0, %v4458_v0  ;;  %3855 = vmatpush3.bf16.msra.mxu0 %v1640_v33  ;;  %v4141_v33 = vld [vmem:[%s5428_s23 + $0x18] sm:$0xff]  }
 0xb67   : > { %3868 = vmatprep.subr.bf16.mxu0 %v4458_v0 }
 0xb6b   : > { %v4180_v9 = vpop.eup %4179 }
 0xb6c   : > { %v1529_v31 = vsel %vm606_vm2, %v4180_v9, 0.0 }
 0xb6d   : > { %1530 = vadd.xlane.f32.xlu0 %v1529_v31 }
 0xb83   : > { %1586 = vrot.lane.b32.xlu0 %v4811_v12, %s5392_s18  ;;  %s5430_s18 = sld [smem:[#allocation21_spill]] }
 0xbfa   : > { %v1531_v34 = vpop.xlane.xlu0 %1530 }
 0xbfb   : > { %4181 = vrcp.f32 %v1531_v34  ;;  %v3544_v34 = vld [vmem:[#allocation10] ss:$0 sm:$0xff] }
 0xbfe   : > { %v1587_v35 = vpop.permute.xlu0 %1586 }
 0xbff   : > { %v1592_v36 = vsel %vm731_vm3, %v1587_v35, 0 }
 0xc00   : > { %3849 = vmatpush3.bf16.msra.mxu1 %v1592_v36 }
 0xc01   : > { %3860 = vmatprep.subr.bf16.mxu1 %v4458_v0 }
 0xc05   : > { %v4182_v37 = vpop.eup %4181 }
 0xc06   : > { %v1535_v38 = vmul.f32 %v4182_v37, %v4180_v9 }
 0xc08   : > { %v1537_v12 = vpack.c.bf16 %v1535_v38, %v1535_v38 }
 0xc0a   : > { %3851 = vmatmul.mubr.msk.bf16.vlgmr.msra.gmra.mrb[40].mxu1 %vm606_vm2, %v1537_v12 }
 0xc0b   : > { %3864 = vmatprep.mubr.msk.bf16.mxu1 %vm4459_vm0, %v4458_v0 }
 0xc38   : > { %v1580_v39 = vpop.f32.mrb[32].mxu0 }
 0xc39   : > { %v3846_v40 = vpop.f32.mrb[33].mxu0 }
 0xc3a   : > { %v1583_v41 = vpop.f32.mrb[34].mxu0 }
 0xc3b   : > { %v3847_v18 = vpop.f32.mrb[35].mxu0 }
 0xcdd   : > { %v1628_v42 = vpop.f32.mrb[40].mxu1 }
 0xcde   : > { %v1634_v43 = vpack.c.bf16 %v1628_v42, %v1580_v39  ;;  %v3852_v44 = vpop.f32.mrb[41].mxu1  ;;  %v3548_v42 = vld [vmem:[%s5429_s16] ss:$0 sm:$0xff] }
 0xcdf   : > { %v1631_v45 = vpop.f32.mrb[42].mxu1 }
 0xce0   : > { %v3853_v46 = vpop.f32.mrb[43].mxu1  ;;  %3857 = vmatmul.mubr.msk.bf16.vlgmr.msra.gmra.mrb[36].mxu0 %vm606_vm2, %v1634_v43 }
 0xce1   : > { %3876 = vmatprep.mubr.msk.bf16.mxu0 %vm4459_vm0, %v4458_v0  ;;  %3869 = vmatpush3.bf16.msra.mxu0 %v4138_v13 }
 0xce2   : > { %3870 = vmatprep.subr.bf16.mxu0 %v4458_v0 }
 0xdb3   : > { %v1676_v47 = vpop.f32.mrb[36].mxu0 }
 0xdb4   : > { %v1683_v49 = vadd.f32 %v1676_v47, %v1412_v10  ;;  %v3858_v50 = vpop.f32.mrb[37].mxu0  ;;  %v4136_v10 = vld [vmem:[%s5374_s7] sm:$0xff]  }
 0xdb5   : > { %v1679_v52 = vpop.f32.mrb[38].mxu0  ;;  %3861 = vmatpush3.bf16.msra.mxu1 %v4136_v10  ;;  %v3554_v10 = vld [vmem:[%s5430_s18] ss:$0 sm:$0xff] }
 0xdb6   : > { %v1692_v53 = vadd.f32 %v3541_v48, %v1683_v49  ;;  %v1684_v54 = vadd.f32 %v1679_v52, %v1413_v14  ;;  %v3859_v55 = vpop.f32.mrb[39].mxu0  ;;  %3862 = vmatprep.subr.bf16.mxu1 %v4458_v0  ;;  %v4139_v14 = vld [vmem:[%s5428_s23 + $0x8] sm:$0xff]  }
 0xdb7   : > { %3871 = vmatpush3.bf16.msra.mxu0 %v4139_v14 }
 0xdb8   : > { %v1693_v57 = vadd.f32 %v3541_v48, %v1684_v54  ;;  %v1694_v58 = vadd.f32 %v1692_v53, %v522_v51  ;;  %3872 = vmatprep.subr.bf16.mxu0 %v4458_v0 }
 0xdb9   : > { %3863 = vmatpush3.bf16.msra.mxu1 %v4137_v11 }
 0xdba   : > { %v1696_v59 = vsel %vm552_vm1, %v1694_v58, 0.0  ;;  %v1695_v60 = vadd.f32 %v1693_v57, %v523_v56  ;;  %3880 = vmatprep.subr.bf16.mxu1 %v4458_v0 }
 0xdbb   : > { %1697 = vadd.xlane.f32.xlu1 %v1696_v59  ;;  %3873 = vmatpush3.bf16.msra.mxu0 %v4140_v32 }
 0xdbc   : > { %v1699_v61 = vsel %vm552_vm1, %v1695_v60, 0.0  ;;  %3874 = vmatprep.subr.bf16.mxu0 %v4458_v0 }
 0xdbd   : > { %1700 = vadd.xlane.f32.xlu0 %v1699_v61 }
 0xdbf   : > { %3875 = vmatpush3.bf16.msra.mxu0 %v4141_v33 }
 0xdc0   : > { %3894 = vmatprep.subr.bf16.mxu0 %v4458_v0 }
 0xe48   : > { %v1698_v62 = vpop.xlane.xlu1 %1697 }
 0xe49   : > { %v1703_v63 = vmul.f32 0.03125, %v1698_v62 }
 0xe4a   : > { %v1701_v1 = vpop.xlane.xlu0 %1700 }
 0xe4b   : > { %v1705_v2 = vsub.f32 %v1694_v58, %v1703_v63  ;;  %v1704_v4 = vmul.f32 0.03125, %v1701_v1  ;;  %v4142_v63 = vld [vmem:[%s5368_s1 + $0x10] sm:$0xff]   ;;  %v4143_v1 = vld [vmem:[%s5368_s1 + $0x18] sm:$0xff]  }
 0xe4d   : > { %v1706_v5 = vsub.f32 %v1695_v60, %v1704_v4  ;;  %v1707_v6 = vmul.f32 %v1705_v2, %v1705_v2 }
 0xe4f   : > { %v1709_v7 = vsel %vm552_vm1, %v1707_v6, 0.0  ;;  %v1708_v8 = vmul.f32 %v1706_v5, %v1706_v5 }
 0xe50   : > { %1710 = vadd.xlane.f32.xlu1 %v1709_v7 }
 0xe51   : > { %v1712_v3 = vsel %vm552_vm1, %v1708_v8, 0.0 }
 0xe52   : > { %1713 = vadd.xlane.f32.xlu0 %v1712_v3 }
 0xedd   : > { %v1711_v15 = vpop.xlane.xlu1 %1710 }
 0xede   : > { %v1715_v17 = vmul.f32 0.03125, %v1711_v15 }
 0xedf   : > { %v1714_v19 = vpop.xlane.xlu0 %1713 }
 0xee0   : > { %v1717_v22 = vadd.f32 1e-05, %v1715_v17  ;;  %v1716_v23 = vmul.f32 0.03125, %v1714_v19  ;;  %v3555_v17 = vld [vmem:[%s5431_s24] ss:$0 sm:$0xff] }
 0xee2   : > { %4183 = vrsqrt.f32 %v1717_v22  ;;  %v1718_v20 = vadd.f32 1e-05, %v1716_v23 }
 0xee4   : > { %4185 = vrsqrt.f32 %v1718_v20 }
 0xeec   : > { %v4184_v24 = vpop.eup %4183 }
 0xeed   : > { %v1721_v16 = vmul.f32 %v4184_v24, %v1705_v2  ;;  %v3561_v24 = vld [vmem:[%s5369_s2 + $0x1] ss:$0 sm:$0xff] }
 0xeee   : > { %v4186_v26 = vpop.eup %4185 }
 0xeef   : > { %v1730_v27 = vmul.f32 %v3542_v25, %v1721_v16  ;;  %v1722_v28 = vmul.f32 %v4186_v26, %v1706_v5 }
 0xef1   : > { %v1731_v29 = vmul.f32 %v3542_v25, %v1722_v28  ;;  %v1739_v30 = vadd.f32 %v3543_v21, %v1730_v27 }
 0xef3   : > { %v1740_v9 = vadd.f32 %v3543_v21, %v1731_v29 }
 0xef5   : > { %v1741_v31 = vpack.c.bf16 %v1740_v9, %v1739_v30 }
 0xef7   : > { %3865 = vmatmul.mubr.msk.bf16.vlgmr.msra.gmra.mrb[44].mxu1 %vm552_vm1, %v1741_v31 }
 0xef8   : > { %3884 = vmatprep.mubr.msk.bf16.mxu1 %vm4459_vm0, %v4458_v0  ;;  %3881 = vmatpush3.bf16.msra.mxu1 %v4142_v63 }
 0xef9   : > { %3882 = vmatprep.subr.bf16.mxu1 %v4458_v0 }
 0xefc   : > { %3883 = vmatpush3.bf16.msra.mxu1 %v4143_v1 }
 0xefd   : > { %3888 = vmatprep.subr.bf16.mxu1 %v4458_v0 }
 0xfca   : > { %v1802_v35 = vpop.f32.mrb[44].mxu1 }
 0xfcb   : > { %v1803_v36 = vadd.f32 %v3544_v34, %v1802_v35  ;;  %v3866_v37 = vpop.f32.mrb[45].mxu1 }
 0xfcc   : > { %v1805_v38 = vpop.f32.mrb[46].mxu1 }
 0xfcd   : > { %v1806_v12 = vadd.f32 %v3544_v34, %v1805_v38  ;;  %v3867_v39 = vpop.f32.mrb[47].mxu1  ;;  %v1809_v40 = vmax.f32 %v1803_v36, 0.0 }
 0xfcf   : > { %v1810_v41 = vmax.f32 %v1806_v12, 0.0 }
 0xfd1   : > { %v1811_v18 = vpack.c.bf16 %v1810_v41, %v1809_v40 }
 0xfd3   : > { %3877 = vmatmul.mubr.msk.bf16.vlgmr.msra.gmra.mrb[40].mxu0 %vm1851_vm4, %v1811_v18 }
 0xfd4   : > { %3896 = vmatprep.mubr.msk.bf16.mxu0 %vm4459_vm0, %v4458_v0 }
0x10a6   : > { %v1889_v43 = vpop.f32.mrb[40].mxu0 }
0x10a7   : > { %v1890_v44 = vadd.f32 %v3548_v42, %v1889_v43  ;;  %v3878_v45 = vpop.f32.mrb[41].mxu0 }
0x10a8   : > { %v1892_v46 = vpop.f32.mrb[42].mxu0 }
0x10a9   : > { %v1893_v47 = vadd.f32 %v3548_v42, %v1892_v46  ;;  %v3879_v48 = vpop.f32.mrb[43].mxu0  ;;  %v1896_v49 = vadd.f32 %v1890_v44, %v1739_v30 }
0x10ab   : > { %v1898_v50 = vsel %vm552_vm1, %v1896_v49, 0.0  ;;  %v1897_v51 = vadd.f32 %v1893_v47, %v1740_v9 }
0x10ac   : > { %1899 = vadd.xlane.f32.xlu1 %v1898_v50 }
0x10ad   : > { %v1901_v52 = vsel %vm552_vm1, %v1897_v51, 0.0 }
0x10ae   : > { %1902 = vadd.xlane.f32.xlu0 %v1901_v52 }
0x1139   : > { %v1900_v53 = vpop.xlane.xlu1 %1899 }
0x113a   : > { %v1904_v54 = vmul.f32 0.03125, %v1900_v53 }
0x113b   : > { %v1903_v55 = vpop.xlane.xlu0 %1902 }
0x113c   : > { %v1906_v56 = vsub.f32 %v1896_v49, %v1904_v54  ;;  %v1905_v57 = vmul.f32 0.03125, %v1903_v55 }
0x113e   : > { %v1907_v58 = vsub.f32 %v1897_v51, %v1905_v57  ;;  %v1908_v59 = vmul.f32 %v1906_v56, %v1906_v56 }
0x1140   : > { %v1910_v60 = vsel %vm552_vm1, %v1908_v59, 0.0  ;;  %v1909_v61 = vmul.f32 %v1907_v58, %v1907_v58 }
0x1141   : > { %1911 = vadd.xlane.f32.xlu1 %v1910_v60 }
0x1142   : > { %v1913_v62 = vsel %vm552_vm1, %v1909_v61, 0.0 }
0x1143   : > { %1914 = vadd.xlane.f32.xlu0 %v1913_v62 }
0x11ce   : > { %v1912_v2 = vpop.xlane.xlu1 %1911 }
0x11cf   : > { %v1916_v4 = vmul.f32 0.03125, %v1912_v2 }
0x11d0   : > { %v1915_v5 = vpop.xlane.xlu0 %1914 }
0x11d1   : > { %v1918_v6 = vadd.f32 1e-05, %v1916_v4  ;;  %v1917_v7 = vmul.f32 0.03125, %v1915_v5 }
0x11d3   : > { %4187 = vrsqrt.f32 %v1918_v6  ;;  %v1919_v8 = vadd.f32 1e-05, %v1917_v7 }
0x11d5   : > { %4189 = vrsqrt.f32 %v1919_v8 }
0x11dd   : > { %v4188_v3 = vpop.eup %4187 }
0x11de   : > { %v1922_v11 = vmul.f32 %v4188_v3, %v1906_v56 }
0x11df   : > { %v4190_v13 = vpop.eup %4189 }
0x11e0   : > { %v1931_v14 = vmul.f32 %v3554_v10, %v1922_v11  ;;  %v1923_v15 = vmul.f32 %v4190_v13, %v1907_v58 }
0x11e2   : > { %v1932_v19 = vmul.f32 %v3554_v10, %v1923_v15  ;;  %v5061_v22 = vadd.f32 %v3555_v17, %v1931_v14 }
0x11e4   : > { %v5063_v23 = vadd.f32 %v3555_v17, %v1932_v19 }
0x11e6   : > { %v1942_v20 = vpack.c.bf16 %v5063_v23, %v5061_v22 }
0x11e8   : > { %3885 = vmatmul.mubr.msk.bf16.vlgmr.msra.gmra.mrb[48].mxu1 %vm552_vm1, %v1942_v20 }
0x11e9   : > { %3890 = vmatprep.mubr.msk.bf16.mxu1 %vm4459_vm0, %v4458_v0 }
0x12bb   : > { %v2005_v25 = vpop.f32.mrb[48].mxu1 }
0x12bc   : > { %v2006_v16 = vadd.f32 %v3561_v24, %v2005_v25  ;;  %v3886_v26 = vpop.f32.mrb[49].mxu1 }
0x12bd   : > { %v2008_v27 = vpop.f32.mrb[50].mxu1 }
0x12be   : > { %v5073_v28 = vpack.c.bf16 %v2006_v16, %v2006_v16  ;;  %v2009_v21 = vadd.f32 %v3561_v24, %v2008_v27  ;;  %v3887_v29 = vpop.f32.mrb[51].mxu1  ;;  %v2012_v33 = vmul.f32 0.35355338, %v2006_v16 }
0x12c0   : > { %v5075_v30 = vpack.c.bf16 %v2009_v21, %v2009_v21  ;;  %2019 = vrot.lane.b32.xlu1 %v5073_v28, %s4460_s11  ;;  %v2013_v35 = vmul.f32 0.35355338, %v2009_v21  ;;  %v5085_v36 = vpack.c.bf16 %v2012_v33, %v2012_v33 }
0x12c2   : > { %2068 = vrot.lane.b32.xlu0 %v5075_v30, %s4460_s11  ;;  %v5087_v37 = vpack.c.bf16 %v2013_v35, %v2013_v35  ;;  %s5432_s11 = smov 80  }
0x1332   : > { %v2020_v9 = vpop.permute.xlu1 %2019 }
0x1333   : > { %v2025_v31 = vsel %vm606_vm2, %v2020_v9, 0 }
0x1334   : > { %3889 = vmatpush3.bf16.xpose.msra.mxu1 %v2025_v31  ;;  %v2069_v32 = vpop.permute.xlu0 %2068 }
0x1335   : > { %v2074_v34 = vsel %vm606_vm2, %v2069_v32, 0  ;;  %3900 = vmatprep.subr.bf16.mxu1 %v4458_v0 }
0x1336   : > { %3895 = vmatpush3.bf16.xpose.msra.mxu0 %v2074_v34 }
0x1337   : > { %3906 = vmatprep.subr.bf16.mxu0 %v4458_v0 }
0x133b   : > { %3891 = vmatmul.mubr.msk.bf16.vlgmr.msra.gmra.mrb[52].mxu1 %vm606_vm2, %v5085_v36 }
0x133c   : > { %3902 = vmatprep.mubr.msk.bf16.mxu1 %vm4459_vm0, %v4458_v0 }
0x133d   : > { %3897 = vmatmul.mubr.msk.bf16.vlgmr.msra.gmra.mrb[44].mxu0 %vm606_vm2, %v5087_v37 }
0x133e   : > { %3908 = vmatprep.mubr.msk.bf16.mxu0 %vm4459_vm0, %v4458_v0 }
0x140e   : > { %v2061_v38 = vpop.f32.mrb[52].mxu1 }
0x140f   : > { %v3892_v12 = vpop.f32.mrb[53].mxu1  ;;  %v2116_v39 = vsel %vm606_vm2, %v2061_v38, -inf }
0x1410   : > { %v2110_v40 = vpop.f32.mrb[44].mxu0  ;;  %2117 = vmax.xlane.f32.xlu1 %v2116_v39  ;;  %v2064_v41 = vpop.f32.mrb[54].mxu1 }
0x1411   : > { %v3893_v18 = vpop.f32.mrb[55].mxu1  ;;  %v3898_v42 = vpop.f32.mrb[45].mxu0  ;;  %v2119_v43 = vsel %vm606_vm2, %v2110_v40, -inf }
0x1412   : > { %2120 = vmax.xlane.f32.xlu0 %v2119_v43  ;;  %v2113_v44 = vpop.f32.mrb[46].mxu0 }
0x1413   : > { %v3899_v45 = vpop.f32.mrb[47].mxu0 }
0x1421   : > { %2140 = vrot.lane.b32.xlu1 %v5073_v28, %s5404_s25 }
0x149d   : > { %v2118_v46 = vpop.xlane.xlu1 %2117 }
0x149e   : > { %v2122_v47 = vsub.f32 %v2061_v38, %v2118_v46 }
0x149f   : > { %v2121_v48 = vpop.xlane.xlu0 %2120 }
0x14a0   : > { %v2124_v49 = vmul.f32 1.442695, %v2122_v47  ;;  %v2123_v50 = vsub.f32 %v2110_v40, %v2121_v48 }
0x14a1   : > { %v2141_v51 = vpop.permute.xlu1 %2140 }
0x14a2   : > { %4191 = vpow2.f32 %v2124_v49  ;;  %v2126_v52 = vmul.f32 1.442695, %v2123_v50  ;;  %v2146_v53 = vsel %vm731_vm3, %v2141_v51, 0 }
0x14a3   : > { %3901 = vmatpush3.bf16.msra.mxu1 %v2146_v53  ;;  %v3574_v53 = vld [vmem:[%s5370_s3 + $0x14] sm:$0xf] }
0x14a4   : > { %4193 = vpow2.f32 %v2126_v52  ;;  %3912 = vmatprep.subr.bf16.mxu1 %v4458_v0 }
0x14ac   : > { %v4192_v54 = vpop.eup %4191 }
0x14ad   : > { %v2128_v55 = vsel %vm606_vm2, %v4192_v54, 0.0 }
0x14ae   : > { %v4194_v56 = vpop.eup %4193  ;;  %2129 = vadd.xlane.f32.xlu1 %v2128_v55 }
0x14af   : > { %v2131_v57 = vsel %vm606_vm2, %v4194_v56, 0.0 }
0x14b0   : > { %2132 = vadd.xlane.f32.xlu0 %v2131_v57 }
0x14bf   : > { %2242 = vrot.lane.b32.xlu1 %v5073_v28, %s4462_s19 }
0x14c3   : > { %2293 = vrot.lane.b32.xlu1 %v5075_v30, %s4462_s19  ;;  %s5433_s19 = smov 112  }
0x14c6   : > { %2188 = vrot.lane.b32.xlu0 %v5075_v30, %s5404_s25 }
0x14c7   : > { %2291 = vrot.lane.b32.xlu1 %v5087_v37, %s4463_s9 }
0x14ca   : > { %2240 = vrot.lane.b32.xlu0 %v5085_v36, %s4463_s9  ;;  %s5437_s9 = smov 40  }
0x153b   : > { %v2130_v58 = vpop.xlane.xlu1 %2129 }
0x153c   : > { %4195 = vrcp.f32 %v2130_v58  ;;  %v3569_v58 = vld [vmem:[%s5370_s3 + $0x10] sm:$0xf] }
0x153d   : > { %v2133_v59 = vpop.xlane.xlu0 %2132 }
0x153e   : > { %4197 = vrcp.f32 %v2133_v59 }
0x153f   : > { %v2243_v62 = vpop.permute.xlu1 %2242 }
0x1540   : > { %v2248_v7 = vsel %vm606_vm2, %v2243_v62, 0 }
0x1541   : > { %v2189_v60 = vpop.permute.xlu0 %2188 }
0x1542   : > { %v2194_v61 = vsel %vm731_vm3, %v2189_v60, 0 }
0x1543   : > { %3907 = vmatpush3.bf16.msra.mxu0 %v2194_v61  ;;  %v2294_v6 = vpop.permute.xlu1 %2293  ;;  %v2514_v61 = vsel %vm731_vm3, %v3569_v58, 0 }
0x1544   : > { %3918 = vmatprep.subr.bf16.mxu0 %v4458_v0  ;;  %v2299_v3 = vsel %vm606_vm2, %v2294_v6, 0 }
0x1545   : > { %v2241_v10 = vpop.permute.xlu0 %2240 }
0x1546   : > { %v4196_v63 = vpop.eup %4195 }
0x1547   : > { %v2136_v1 = vmul.f32 %v4196_v63, %v4192_v54  ;;  %v2292_v11 = vpop.permute.xlu1 %2291 }
0x1548   : > { %v4198_v2 = vpop.eup %4197 }
0x1549   : > { %v2137_v4 = vmul.f32 %v4198_v2, %v4194_v56  ;;  %v2138_v5 = vpack.c.bf16 %v2136_v1, %v2136_v1  ;;  %v2467_v56 = vsel %vm731_vm3, %v3574_v53, 0 }
0x154b   : > { %3903 = vmatmul.mubr.msk.bf16.vlgmr.msra.gmra.mrb[56].mxu1 %vm606_vm2, %v2138_v5  ;;  %v2139_v8 = vpack.c.bf16 %v2137_v4, %v2137_v4 }
0x154c   : > { %3913 = vmatpush3.bf16.xpose.msra.mxu1 %v2248_v7  ;;  %3914 = vmatprep.mubr.msk.bf16.mxu1 %vm4459_vm0, %v4458_v0 }
0x154d   : > { %3909 = vmatmul.mubr.msk.bf16.vlgmr.msra.gmra.mrb[48].mxu0 %vm606_vm2, %v2139_v8  ;;  %3924 = vmatprep.subr.bf16.mxu1 %v4458_v0 }
0x154e   : > { %3919 = vmatpush3.bf16.xpose.msra.mxu0 %v2299_v3  ;;  %3920 = vmatprep.mubr.msk.bf16.mxu0 %vm4459_vm0, %v4458_v0 }
0x154f   : > { %3930 = vmatprep.subr.bf16.mxu0 %v4458_v0 }
0x1553   : > { %3915 = vmatmul.mubr.msk.bf16.vlgmr.msra.gmra.mrb[60].mxu1 %vm606_vm2, %v2241_v10 }
0x1554   : > { %3926 = vmatprep.mubr.msk.bf16.mxu1 %vm4459_vm0, %v4458_v0 }
0x1555   : > { %3921 = vmatmul.mubr.msk.bf16.vlgmr.msra.gmra.mrb[52].mxu0 %vm606_vm2, %v2292_v11 }
0x1556   : > { %3932 = vmatprep.mubr.msk.bf16.mxu0 %vm4459_vm0, %v4458_v0 }
0x161e   : > { %v5133_v13 = vpop.f32.mrb[56].mxu1 }
0x161f   : > { %v3904_v14 = vpop.f32.mrb[57].mxu1 }
0x1620   : > { %v2185_v15 = vpop.f32.mrb[58].mxu1  ;;  %v5135_v17 = vpop.f32.mrb[48].mxu0 }
0x1621   : > { %v2236_v19 = vpack.c.bf16 %v5135_v17, %v5133_v13  ;;  %v3905_v20 = vpop.f32.mrb[59].mxu1  ;;  %v3910_v24 = vpop.f32.mrb[49].mxu0 }
0x1622   : > { %v2233_v25 = vpop.f32.mrb[50].mxu0 }
0x1623   : > { %v3911_v16 = vpop.f32.mrb[51].mxu0 }
0x1626   : > { %v2284_v26 = vpop.f32.mrb[60].mxu1 }
0x1627   : > { %v3916_v27 = vpop.f32.mrb[61].mxu1  ;;  %v2341_v21 = vsel %vm606_vm2, %v2284_v26, -inf }
0x1628   : > { %v2335_v29 = vpop.f32.mrb[52].mxu0  ;;  %2342 = vmax.xlane.f32.xlu0 %v2341_v21  ;;  %v2287_v9 = vpop.f32.mrb[62].mxu1 }
0x1629   : > { %v3917_v31 = vpop.f32.mrb[63].mxu1  ;;  %v3922_v32 = vpop.f32.mrb[53].mxu0  ;;  %v2344_v33 = vsel %vm606_vm2, %v2335_v29, -inf }
0x162a   : > { %2345 = vmax.xlane.f32.xlu1 %v2344_v33  ;;  %v2338_v34 = vpop.f32.mrb[54].mxu0 }
0x162b   : > { %v3923_v35 = vpop.f32.mrb[55].mxu0 }
0x163b   : > { %2365 = vrot.lane.b32.xlu1 %v5073_v28, %s4464_s10 }
0x163f   : > { %2559 = vrot.lane.b32.xlu1 %v5073_v28, %s5432_s11 }
0x1643   : > { %2609 = vrot.lane.b32.xlu1 %v5075_v30, %s5432_s11 }
0x1647   : > { %2607 = vrot.lane.b32.xlu1 %v5087_v37, %s5433_s19 }
0x16b5   : > { %v2343_v38 = vpop.xlane.xlu0 %2342 }
0x16b6   : > { %v2347_v12 = vsub.f32 %v2284_v26, %v2343_v38 }
0x16b7   : > { %v2346_v39 = vpop.xlane.xlu1 %2345 }
0x16b8   : > { %v2349_v40 = vmul.f32 1.442695, %v2347_v12  ;;  %v2348_v41 = vsub.f32 %v2335_v29, %v2346_v39 }
0x16ba   : > { %4199 = vpow2.f32 %v2349_v40  ;;  %v2351_v18 = vmul.f32 1.442695, %v2348_v41 }
0x16bb   : > { %v2366_v42 = vpop.permute.xlu1 %2365 }
0x16bc   : > { %4201 = vpow2.f32 %v2351_v18  ;;  %v2371_v43 = vsel %vm731_vm3, %v2366_v42, 0 }
0x16bd   : > { %3925 = vmatpush3.bf16.msra.mxu1 %v2371_v43 }
0x16be   : > { %3936 = vmatprep.subr.bf16.mxu1 %v4458_v0 }
0x16bf   : > { %v2560_v62 = vpop.permute.xlu1 %2559 }
0x16c0   : > { %v2565_v13 = vsel %vm606_vm2, %v2560_v62, 0 }
0x16c3   : > { %v2610_v63 = vpop.permute.xlu1 %2609 }
0x16c4   : > { %v4200_v44 = vpop.eup %4199  ;;  %v2615_v1 = vsel %vm606_vm2, %v2610_v63, 0  ;;  %v3581_v63 = vld [vmem:[%s5370_s3 + $0x18] sm:$0xf] }
0x16c5   : > { %v2353_v45 = vsel %vm606_vm2, %v4200_v44, 0.0 }
0x16c6   : > { %v4202_v46 = vpop.eup %4201  ;;  %2354 = vadd.xlane.f32.xlu0 %v2353_v45 }
0x16c7   : > { %v2356_v47 = vsel %vm606_vm2, %v4202_v46, 0.0  ;;  %v2608_v2 = vpop.permute.xlu1 %2607 }
0x16ca   : > { %2357 = vadd.xlane.f32.xlu0 %v2356_v47 }
0x16e0   : > { %2413 = vrot.lane.b32.xlu0 %v5075_v30, %s4464_s10  ;;  %s4471_s10 = smov [#allocation11]  }
0x16e4   : > { %2557 = vrot.lane.b32.xlu0 %v5085_v36, %s5433_s19 }
0x1753   : > { %v2355_v48 = vpop.xlane.xlu0 %2354 }
0x1754   : > { %4203 = vrcp.f32 %v2355_v48 }
0x1757   : > { %v2358_v49 = vpop.xlane.xlu0 %2357 }
0x1758   : > { %4205 = vrcp.f32 %v2358_v49 }
0x175b   : > { %v2414_v50 = vpop.permute.xlu0 %2413 }
0x175c   : > { %v2419_v51 = vsel %vm731_vm3, %v2414_v50, 0 }
0x175d   : > { %3931 = vmatpush3.bf16.msra.mxu0 %v2419_v51 }
0x175e   : > { %v4204_v52 = vpop.eup %4203  ;;  %3942 = vmatprep.subr.bf16.mxu0 %v4458_v0 }
0x175f   : > { %v2361_v54 = vmul.f32 %v4204_v52, %v4200_v44 }
0x1761   : > { %v2363_v55 = vpack.c.bf16 %v2361_v54, %v2361_v54 }
0x1762   : > { %v4206_v57 = vpop.eup %4205 }
0x1763   : > { %v2362_v59 = vmul.f32 %v4206_v57, %v4202_v46  ;;  %3927 = vmatmul.mubr.msk.bf16.vlgmr.msra.gmra.mrb[64].mxu1 %vm606_vm2, %v2363_v55 }
0x1764   : > { %3937 = vmatpush3.bf16.msra.mxu1 %v2467_v56  ;;  %3938 = vmatprep.mubr.msk.bf16.mxu1 %vm4459_vm0, %v4458_v0 }
0x1765   : > { %v2364_v60 = vpack.c.bf16 %v2362_v59, %v2362_v59  ;;  %3948 = vmatprep.subr.bf16.mxu1 %v4458_v0 }
0x1767   : > { %3933 = vmatmul.mubr.msk.bf16.vlgmr.msra.gmra.mrb[56].mxu0 %vm606_vm2, %v2364_v60 }
0x1768   : > { %3943 = vmatpush3.bf16.msra.mxu0 %v2514_v61  ;;  %3944 = vmatprep.mubr.msk.bf16.mxu0 %vm4459_vm0, %v4458_v0 }
0x1769   : > { %3954 = vmatprep.subr.bf16.mxu0 %v4458_v0 }
0x176f   : > { %3945 = vmatmul.mubr.msk.bf16.vlgmr.msra.gmra.mrb[60].mxu0 %vm606_vm2, %v2236_v19  ;;  %v2558_v19 = vpop.permute.xlu0 %2557 }
0x1770   : > { %3956 = vmatprep.mubr.msk.bf16.mxu0 %vm4459_vm0, %v4458_v0 }
0x1771   : > { %3955 = vmatpush3.bf16.xpose.msra.mxu0 %v2615_v1  ;;  %v2783_v1 = vsel %vm731_vm3, %v3581_v63, 0 }
0x1772   : > { %3966 = vmatprep.subr.bf16.mxu0 %v4458_v0 }
0x1778   : > { %3957 = vmatmul.mubr.msk.bf16.vlgmr.msra.gmra.mrb[64].mxu0 %vm606_vm2, %v2608_v2 }
0x1779   : > { %3968 = vmatprep.mubr.msk.bf16.mxu0 %vm4459_vm0, %v4458_v0 }
0x1836   : > { %v2407_v4 = vpop.f32.mrb[64].mxu1 }
0x1837   : > { %v3928_v5 = vpop.f32.mrb[65].mxu1 }
0x1838   : > { %v2410_v6 = vpop.f32.mrb[66].mxu1 }
0x1839   : > { %v3929_v7 = vpop.f32.mrb[67].mxu1 }
0x183a   : > { %v2455_v8 = vpop.f32.mrb[56].mxu0 }
0x183b   : > { %v2461_v3 = vpack.c.bf16 %v2455_v8, %v2407_v4  ;;  %v3934_v10 = vpop.f32.mrb[57].mxu0 }
0x183c   : > { %v2458_v11 = vpop.f32.mrb[58].mxu0 }
0x183d   : > { %v3935_v14 = vpop.f32.mrb[59].mxu0  ;;  %3939 = vmatmul.mubr.msk.bf16.vlgmr.msra.gmra.mrb[68].mxu1 %vm606_vm2, %v2461_v3 }
0x183e   : > { %3949 = vmatpush3.bf16.xpose.msra.mxu1 %v2565_v13  ;;  %3950 = vmatprep.mubr.msk.bf16.mxu1 %vm4459_vm0, %v4458_v0 }
0x183f   : > { %3960 = vmatprep.subr.bf16.mxu1 %v4458_v0 }
0x1842   : > { %v2550_v15 = vpop.f32.mrb[60].mxu0 }
0x1843   : > { %v3946_v17 = vpop.f32.mrb[61].mxu0 }
0x1844   : > { %v2553_v20 = vpop.f32.mrb[62].mxu0 }
0x1845   : > { %v3947_v24 = vpop.f32.mrb[63].mxu0  ;;  %3951 = vmatmul.mubr.msk.bf16.vlgmr.msra.gmra.mrb[72].mxu1 %vm606_vm2, %v2558_v19 }
0x1846   : > { %3962 = vmatprep.mubr.msk.bf16.mxu1 %vm4459_vm0, %v4458_v0 }
0x184b   : > { %v2651_v25 = vpop.f32.mrb[64].mxu0 }
0x184c   : > { %v3958_v16 = vpop.f32.mrb[65].mxu0  ;;  %v2660_v26 = vsel %vm606_vm2, %v2651_v25, -inf }
0x184d   : > { %2661 = vmax.xlane.f32.xlu1 %v2660_v26  ;;  %v2654_v27 = vpop.f32.mrb[66].mxu0 }
0x184e   : > { %v3959_v21 = vpop.f32.mrb[67].mxu0 }
0x185e   : > { %2681 = vrot.lane.b32.xlu1 %v5073_v28, %s5434_s15 }
0x1862   : > { %2830 = vrot.lane.b32.xlu1 %v5073_v28, %s5435_s17 }
0x1866   : > { %2880 = vrot.lane.b32.xlu1 %v5075_v30, %s5435_s17 }
0x186a   : > { %2878 = vrot.lane.b32.xlu1 %v5087_v37, %s5436_s21 }
0x18da   : > { %v2662_v29 = vpop.xlane.xlu1 %2661 }
0x18db   : > { %v2664_v32 = vsub.f32 %v2651_v25, %v2662_v29 }
0x18dd   : > { %v2667_v33 = vmul.f32 1.442695, %v2664_v32 }
0x18de   : > { %v2682_v9 = vpop.permute.xlu1 %2681 }
0x18df   : > { %v2687_v31 = vsel %vm731_vm3, %v2682_v9, 0  ;;  %4207 = vpow2.f32 %v2667_v33 }
0x18e0   : > { %3961 = vmatpush3.bf16.msra.mxu1 %v2687_v31 }
0x18e1   : > { %3972 = vmatprep.subr.bf16.mxu1 %v4458_v0 }
0x18e9   : > { %v4208_v42 = vpop.eup %4207 }
0x18ea   : > { %v2672_v45 = vsel %vm606_vm2, %v4208_v42, 0.0 }
0x1910   : > { %v2503_v34 = vpop.f32.mrb[68].mxu1 }
0x1911   : > { %v5205_v35 = vadd.f32 %v2550_v15, %v2503_v34  ;;  %v3940_v38 = vpop.f32.mrb[69].mxu1 }
0x1912   : > { %v2506_v12 = vpop.f32.mrb[70].mxu1 }
0x1913   : > { %v5207_v39 = vadd.f32 %v2553_v20, %v2506_v12  ;;  %v3941_v40 = vpop.f32.mrb[71].mxu1 }
0x1918   : > { %v2601_v41 = vpop.f32.mrb[72].mxu1 }
0x1919   : > { %v3952_v37 = vpop.f32.mrb[73].mxu1  ;;  %v2657_v18 = vsel %vm606_vm2, %v2601_v41, -inf }
0x191a   : > { %2658 = vmax.xlane.f32.xlu0 %v2657_v18  ;;  %v2604_v43 = vpop.f32.mrb[74].mxu1 }
0x191b   : > { %v3953_v44 = vpop.f32.mrb[75].mxu1 }
0x191e   : > { %2673 = vadd.xlane.f32.xlu0 %v2672_v45 }
0x19a7   : > { %v2659_v46 = vpop.xlane.xlu0 %2658 }
0x19a8   : > { %v2663_v47 = vsub.f32 %v2601_v41, %v2659_v46 }
0x19aa   : > { %v2665_v48 = vmul.f32 1.442695, %v2663_v47 }
0x19ab   : > { %v2674_v51 = vpop.xlane.xlu0 %2673 }
0x19ac   : > { %4209 = vpow2.f32 %v2665_v48 }
0x19ad   : > { %4211 = vrcp.f32 %v2674_v51 }
0x19b6   : > { %v4210_v49 = vpop.eup %4209 }
0x19b7   : > { %v2669_v50 = vsel %vm606_vm2, %v4210_v49, 0.0  ;;  %v4212_v52 = vpop.eup %4211 }
0x19b8   : > { %2670 = vadd.xlane.f32.xlu0 %v2669_v50  ;;  %v2678_v54 = vmul.f32 %v4212_v52, %v4208_v42  ;;  %v3587_v50 = vld [vmem:[%s5370_s3 + $0x1c] sm:$0xf] }
0x19b9   : > { %v3054_v51 = vsel %vm731_vm3, %v3587_v50, 0  ;;  %v3596_v50 = vld [vmem:[#allocation10 + $0x1] ss:$0 sm:$0xff] }
0x19ba   : > { %v2680_v57 = vpack.c.bf16 %v2678_v54, %v2678_v54 }
0x19ce   : > { %2729 = vrot.lane.b32.xlu0 %v5075_v30, %s5434_s15  ;;  %s5438_s15 = sshll.u32 %s4766_s20, 3 }
0x19cf   : > { %s516_s17 = scalar_lea.vmem [#allocation11], %s5438_s15  ;;  %s4377_s15 = sshll.u32 %s4471_s10, 4  ;;  %s4378_s15 = int_to_ptr.vmem [resolvable:$false] %s4377_s15 }
0x19d0   : > { %s4379_s11 = scalar_lea.vmem %s4378_s15, 256 }
0x19d2   : > { %2828 = vrot.lane.b32.xlu0 %v5085_v36, %s5436_s21  ;;  %v2831_v36 = vpop.permute.xlu1 %2830  ;;  %s3388_s21 = sshll.u32 %s516_s17, 4  ;;  %s5321_s21 = int_to_ptr.vmem [resolvable:$true] %s3388_s21 }
0x19d3   : > { %v2836_v60 = vsel %vm606_vm2, %v2831_v36, 0  ;;  %s4373_s14 = scalar_lea.vmem %s5321_s21, 128  ;;  %p4380_p12 = scmp.lt.s32.totalorder %s5321_s21, %s4378_s15 }
0x19d4   : > { %p4374_p3 = scmp.ne.s32.totalorder %s5321_s21, %s4373_s14  ;;  %p4381_p1 = scmp.lt.s32.totalorder %s4379_s11, %s4373_s14 }
0x19d6   : > { %v2881_v7 = vpop.permute.xlu1 %2880  ;;  %p4375_p5 = pnand %p4374_p3, %p4714_p10  ;;  %p4382_p2 = por %p4381_p1, %p4380_p12 }
0x19d7   : > { %v2886_v13 = vsel %vm606_vm2, %v2881_v7, 0 }
0x19d8   : > { %p4376_p7 = pneg %p4375_p5 }
0x19da   : > { %v2879_v25 = vpop.permute.xlu1 %2878  ;;  %p4383_p13 = pnand %p4382_p2, %p4376_p7 }
0x1a45   : > { %v2671_v53 = vpop.xlane.xlu0 %2670 }
0x1a46   : > { %4213 = vrcp.f32 %v2671_v53 }
0x1a49   : > { %v2730_v55 = vpop.permute.xlu0 %2729 }
0x1a4a   : > { %v2735_v56 = vsel %vm731_vm3, %v2730_v55, 0 }
0x1a4b   : > { %3967 = vmatpush3.bf16.msra.mxu0 %v2735_v56 }
0x1a4c   : > { %3978 = vmatprep.subr.bf16.mxu0 %v4458_v0 }
0x1a4d   : > { %v2829_v62 = vpop.permute.xlu0 %2828 }
0x1a4e   : > { %3969 = vmatmul.mubr.msk.bf16.vlgmr.msra.gmra.mrb[68].mxu0 %vm606_vm2, %v2680_v57 }
0x1a4f   : > { %3980 = vmatprep.mubr.msk.bf16.mxu0 %vm4459_vm0, %v4458_v0 }
0x1a50   : > { %v4214_v58 = vpop.eup %4213 }
0x1a51   : > { %v2677_v59 = vmul.f32 %v4214_v58, %v4210_v49 }
0x1a53   : > { %v2679_v61 = vpack.c.bf16 %v2677_v59, %v2677_v59 }
0x1a54   : > { %3979 = vmatpush3.bf16.xpose.msra.mxu0 %v2836_v60 }
0x1a55   : > { %3963 = vmatmul.mubr.msk.bf16.vlgmr.msra.gmra.mrb[76].mxu1 %vm606_vm2, %v2679_v61  ;;  %3990 = vmatprep.subr.bf16.mxu0 %v4458_v0 }
0x1a56   : > { %3974 = vmatprep.mubr.msk.bf16.mxu1 %vm4459_vm0, %v4458_v0  ;;  %3973 = vmatpush3.bf16.msra.mxu1 %v2783_v1 }
0x1a57   : > { %3984 = vmatprep.subr.bf16.mxu1 %v4458_v0 }
0x1a5b   : > { %3981 = vmatmul.mubr.msk.bf16.vlgmr.msra.gmra.mrb[72].mxu0 %vm606_vm2, %v2829_v62 }
0x1a5c   : > { %3992 = vmatprep.mubr.msk.bf16.mxu0 %vm4459_vm0, %v4458_v0 }
0x1b21   : > { %v2771_v2 = vpop.f32.mrb[68].mxu0 }
0x1b22   : > { %v3970_v4 = vpop.f32.mrb[69].mxu0 }
0x1b23   : > { %v2774_v5 = vpop.f32.mrb[70].mxu0  ;;  %v3589_v4 = vld [vmem:[#allocation5 + $0x1] ss:$0 sm:$0xff] }
0x1b24   : > { %v3971_v6 = vpop.f32.mrb[71].mxu0 }
0x1b28   : > { %v2723_v8 = vpop.f32.mrb[76].mxu1 }
0x1b29   : > { %v2777_v3 = vpack.c.bf16 %v2771_v2, %v2723_v8  ;;  %v3964_v10 = vpop.f32.mrb[77].mxu1 }
0x1b2a   : > { %v2726_v11 = vpop.f32.mrb[78].mxu1 }
0x1b2b   : > { %v3965_v14 = vpop.f32.mrb[79].mxu1  ;;  %3975 = vmatmul.mubr.msk.bf16.vlgmr.msra.gmra.mrb[80].mxu1 %vm606_vm2, %v2777_v3 }
0x1b2c   : > { %3985 = vmatpush3.bf16.xpose.msra.mxu1 %v2886_v13  ;;  %3986 = vmatprep.mubr.msk.bf16.mxu1 %vm4459_vm0, %v4458_v0 }
0x1b2d   : > { %3996 = vmatprep.subr.bf16.mxu1 %v4458_v0 }
0x1b2e   : > { %v2872_v15 = vpop.f32.mrb[72].mxu0 }
0x1b2f   : > { %v3982_v17 = vpop.f32.mrb[73].mxu0  ;;  %v2928_v19 = vsel %vm606_vm2, %v2872_v15, -inf }
0x1b30   : > { %2929 = vmax.xlane.f32.xlu0 %v2928_v19  ;;  %v2875_v20 = vpop.f32.mrb[74].mxu0 }
0x1b31   : > { %v3983_v24 = vpop.f32.mrb[75].mxu0 }
0x1b33   : > { %3987 = vmatmul.mubr.msk.bf16.vlgmr.msra.gmra.mrb[84].mxu1 %vm606_vm2, %v2879_v25 }
0x1b34   : > { %3998 = vmatprep.mubr.msk.bf16.mxu1 %vm4459_vm0, %v4458_v0 }
0x1bbd   : > { %v2930_v16 = vpop.xlane.xlu0 %2929 }
0x1bbe   : > { %v2934_v26 = vsub.f32 %v2872_v15, %v2930_v16 }
0x1bc0   : > { %v2936_v27 = vmul.f32 1.442695, %v2934_v26 }
0x1bc2   : > { %4215 = vpow2.f32 %v2936_v27 }
0x1bcc   : > { %v4216_v21 = vpop.eup %4215 }
0x1bcd   : > { %v2940_v29 = vsel %vm606_vm2, %v4216_v21, 0.0 }
0x1bce   : > { %2941 = vadd.xlane.f32.xlu0 %v2940_v29 }
0x1bfe   : > { %v2819_v9 = vpop.f32.mrb[80].mxu1 }
0x1bff   : > { %v2826_v31 = vadd.f32 %v2819_v9, %v5205_v35  ;;  %v3976_v32 = vpop.f32.mrb[81].mxu1  ;;  %v4145_v9 = vld [vmem:[%s5374_s7 + $0x18] sm:$0xff]  }
0x1c00   : > { %v2822_v33 = vpop.f32.mrb[82].mxu1  ;;  %v4147_v32 = vld [vmem:[%s5428_s23 + $0x28] sm:$0xff]  }
0x1c01   : > { %v2827_v34 = vadd.f32 %v2822_v33, %v5207_v39  ;;  %v3977_v38 = vpop.f32.mrb[83].mxu1 }
0x1c06   : > { %v2922_v12 = vpop.f32.mrb[84].mxu1 }
0x1c07   : > { %v3988_v40 = vpop.f32.mrb[85].mxu1  ;;  %v2931_v41 = vsel %vm606_vm2, %v2922_v12, -inf }
0x1c08   : > { %2932 = vmax.xlane.f32.xlu1 %v2931_v41  ;;  %v2925_v37 = vpop.f32.mrb[86].mxu1 }
0x1c09   : > { %v3989_v18 = vpop.f32.mrb[87].mxu1 }
0x1c0a   : > { %v3590_v18 = vld [vmem:[#allocation7 + $0x1] ss:$0 sm:$0xff] }
0x1c19   : > { %2952 = vrot.lane.b32.xlu1 %v5073_v28, %s5437_s9 }
0x1c5b   : > { %v2942_v42 = vpop.xlane.xlu0 %2941 }
0x1c5c   : > { %4217 = vrcp.f32 %v2942_v42 }
0x1c66   : > { %v4218_v43 = vpop.eup %4217 }
0x1c67   : > { %v2948_v45 = vmul.f32 %v4218_v43, %v4216_v21 }
0x1c69   : > { %v2950_v48 = vpack.c.bf16 %v2948_v45, %v2948_v45  ;;  %v3591_v45 = vld [vmem:[#allocation8 + $0x1] ss:$0 sm:$0xff] }
0x1c95   : > { %v2933_v44 = vpop.xlane.xlu1 %2932 }
0x1c96   : > { %v2935_v35 = vsub.f32 %v2922_v12, %v2933_v44 }
0x1c98   : > { %v2938_v46 = vmul.f32 1.442695, %v2935_v35 }
0x1c99   : > { %v2953_v47 = vpop.permute.xlu1 %2952 }
0x1c9a   : > { %4219 = vpow2.f32 %v2938_v46  ;;  %v2958_v39 = vsel %vm731_vm3, %v2953_v47, 0 }
0x1c9b   : > { %3991 = vmatpush3.bf16.msra.mxu0 %v2958_v39 }
0x1c9c   : > { %4002 = vmatprep.subr.bf16.mxu0 %v4458_v0 }
0x1c9e   : > { %3993 = vmatmul.mubr.msk.bf16.vlgmr.msra.gmra.mrb[76].mxu0 %vm606_vm2, %v2950_v48 }
0x1c9f   : > { %4004 = vmatprep.mubr.msk.bf16.mxu0 %vm4459_vm0, %v4458_v0  ;;  %4003 = vmatpush3.bf16.msra.mxu0 %v3054_v51 }
0x1ca0   : > { %4016 = vmatprep.subr.bf16.mxu0 %v4458_v0 }
0x1ca4   : > { %v4220_v28 = vpop.eup %4219 }
0x1ca5   : > { %v2943_v49 = vsel %vm606_vm2, %v4220_v28, 0.0 }
0x1ca6   : > { %2944 = vadd.xlane.f32.xlu0 %v2943_v49  ;;  %v4149_v49 = vld [vmem:[%s5428_s23 + $0x38] sm:$0xff]  }
0x1cbc   : > { %3000 = vrot.lane.b32.xlu0 %v5075_v30, %s5437_s9  ;;  %s5439_s9 = sld [smem:[#allocation23_spill]] }
0x1cc2   : > { %s5319_s25 = scalar_lea.hbm %s5439_s9, %s3629_s22 }
0x1d33   : > { %v2945_v52 = vpop.xlane.xlu0 %2944 }
0x1d34   : > { %4221 = vrcp.f32 %v2945_v52 }
0x1d37   : > { %v3001_v53 = vpop.permute.xlu0 %3000 }
0x1d38   : > { %v3006_v54 = vsel %vm731_vm3, %v3001_v53, 0 }
0x1d39   : > { %3997 = vmatpush3.bf16.msra.mxu1 %v3006_v54 }
0x1d3a   : > { %4008 = vmatprep.subr.bf16.mxu1 %v4458_v0 }
0x1d3e   : > { %v4222_v55 = vpop.eup %4221 }
0x1d3f   : > { %v2949_v56 = vmul.f32 %v4222_v55, %v4220_v28  ;;  %v4148_v28 = vld [vmem:[%s5428_s23 + $0x30] sm:$0xff]  }
0x1d41   : > { %v2951_v30 = vpack.c.bf16 %v2949_v56, %v2949_v56 }
0x1d43   : > { %3999 = vmatmul.mubr.msk.bf16.vlgmr.msra.gmra.mrb[88].mxu1 %vm606_vm2, %v2951_v30 }
0x1d44   : > { %4012 = vmatprep.mubr.msk.bf16.mxu1 %vm4459_vm0, %v4458_v0 }
0x1d71   : > { %v2994_v57 = vpop.f32.mrb[76].mxu0 }
0x1d72   : > { %v3994_v58 = vpop.f32.mrb[77].mxu0 }
0x1d73   : > { %v2997_v36 = vpop.f32.mrb[78].mxu0 }
0x1d74   : > { %v3995_v59 = vpop.f32.mrb[79].mxu0 }
0x1e16   : > { %v3042_v60 = vpop.f32.mrb[88].mxu1 }
0x1e17   : > { %v3048_v61 = vpack.c.bf16 %v3042_v60, %v2994_v57  ;;  %v4000_v62 = vpop.f32.mrb[89].mxu1 }
0x1e18   : > { %v3045_v63 = vpop.f32.mrb[90].mxu1 }
0x1e19   : > { %v4001_v1 = vpop.f32.mrb[91].mxu1  ;;  %4005 = vmatmul.mubr.msk.bf16.vlgmr.msra.gmra.mrb[80].mxu0 %vm606_vm2, %v3048_v61 }
0x1e1a   : > { %4024 = vmatprep.mubr.msk.bf16.mxu0 %vm4459_vm0, %v4458_v0 }
0x1eec   : > { %v3090_v2 = vpop.f32.mrb[80].mxu0 }
0x1eed   : > { %v3097_v5 = vadd.f32 %v3090_v2, %v2826_v31  ;;  %v4006_v6 = vpop.f32.mrb[81].mxu0  ;;  %v4146_v31 = vld [vmem:[%s5428_s23 + $0x20] sm:$0xff]  }
0x1eee   : > { %v3093_v7 = vpop.f32.mrb[82].mxu0  ;;  %4017 = vmatpush3.bf16.msra.mxu0 %v4146_v31 }
0x1eef   : > { %v3107_v8 = vadd.f32 %v3589_v4, %v3097_v5  ;;  %v3098_v3 = vadd.f32 %v3093_v7, %v2827_v34  ;;  %v4007_v10 = vpop.f32.mrb[83].mxu0  ;;  %4018 = vmatprep.subr.bf16.mxu0 %v4458_v0 }
0x1ef1   : > { %v3108_v11 = vadd.f32 %v3589_v4, %v3098_v3  ;;  %v3109_v13 = vadd.f32 %v3107_v8, %v5061_v22 }
0x1ef2   : > { %4019 = vmatpush3.bf16.msra.mxu0 %v4147_v32 }
0x1ef3   : > { %v3111_v14 = vsel %vm552_vm1, %v3109_v13, 0.0  ;;  %v3110_v15 = vadd.f32 %v3108_v11, %v5063_v23  ;;  %v4144_v23 = vld [vmem:[%s5374_s7 + $0x10] sm:$0xff]   ;;  %4020 = vmatprep.subr.bf16.mxu0 %v4458_v0 }
0x1ef4   : > { %3112 = vadd.xlane.f32.xlu1 %v3111_v14  ;;  %4009 = vmatpush3.bf16.msra.mxu1 %v4144_v23  ;;  %v3618_v23 = vld [vmem:[%s5431_s24 + $0x1] ss:$0 sm:$0xff] }
0x1ef5   : > { %v3114_v17 = vsel %vm552_vm1, %v3110_v15, 0.0  ;;  %4010 = vmatprep.subr.bf16.mxu1 %v4458_v0 }
0x1ef6   : > { %3115 = vadd.xlane.f32.xlu0 %v3114_v17  ;;  %4021 = vmatpush3.bf16.msra.mxu0 %v4148_v28 }
0x1ef7   : > { %4022 = vmatprep.subr.bf16.mxu0 %v4458_v0  ;;  %v3609_v0 = vld [vmem:[%s5429_s16 + $0x1] ss:$0 sm:$0xff] }
0x1ef8   : > { %4011 = vmatpush3.bf16.msra.mxu1 %v4145_v9 }
0x1efa   : > { %4023 = vmatpush3.bf16.msra.mxu0 %v4149_v49 }
0x1f81   : > { %v3113_v19 = vpop.xlane.xlu1 %3112 }
0x1f82   : > { %v3117_v20 = vmul.f32 0.03125, %v3113_v19 }
0x1f83   : > { %v3116_v24 = vpop.xlane.xlu0 %3115 }
0x1f84   : > { %v3119_v25 = vsub.f32 %v3109_v13, %v3117_v20  ;;  %v3118_v16 = vmul.f32 0.03125, %v3116_v24 }
0x1f86   : > { %v3120_v26 = vsub.f32 %v3110_v15, %v3118_v16  ;;  %v3121_v27 = vmul.f32 %v3119_v25, %v3119_v25 }
0x1f88   : > { %v3123_v21 = vsel %vm552_vm1, %v3121_v27, 0.0  ;;  %v3122_v29 = vmul.f32 %v3120_v26, %v3120_v26 }
0x1f89   : > { %3124 = vadd.xlane.f32.xlu1 %v3123_v21  ;;  %v3616_v21 = vld [vmem:[%s5430_s18 + $0x1] ss:$0 sm:$0xff] }
0x1f8a   : > { %v3126_v22 = vsel %vm552_vm1, %v3122_v29, 0.0 }
0x1f8b   : > { %3127 = vadd.xlane.f32.xlu0 %v3126_v22 }
0x2016   : > { %v3125_v33 = vpop.xlane.xlu1 %3124 }
0x2017   : > { %v3129_v34 = vmul.f32 0.03125, %v3125_v33 }
0x2018   : > { %v3128_v38 = vpop.xlane.xlu0 %3127 }
0x2019   : > { %v3131_v12 = vadd.f32 1e-05, %v3129_v34  ;;  %v3130_v40 = vmul.f32 0.03125, %v3128_v38 }
0x201b   : > { %4223 = vrsqrt.f32 %v3131_v12  ;;  %v3132_v41 = vadd.f32 1e-05, %v3130_v40 }
0x201d   : > { %4225 = vrsqrt.f32 %v3132_v41 }
0x2025   : > { %v4224_v37 = vpop.eup %4223 }
0x2026   : > { %v3135_v42 = vmul.f32 %v4224_v37, %v3119_v25 }
0x2027   : > { %v4226_v43 = vpop.eup %4225 }
0x2028   : > { %v3145_v44 = vmul.f32 %v3590_v18, %v3135_v42  ;;  %v3136_v35 = vmul.f32 %v4226_v43, %v3120_v26 }
0x202a   : > { %v3146_v46 = vmul.f32 %v3590_v18, %v3136_v35  ;;  %v3155_v47 = vadd.f32 %v3591_v45, %v3145_v44 }
0x202c   : > { %v3156_v39 = vadd.f32 %v3591_v45, %v3146_v46 }
0x202e   : > { %v3157_v48 = vpack.c.bf16 %v3156_v39, %v3155_v47 }
0x2030   : > { %4013 = vmatmul.mubr.msk.bf16.vlgmr.msra.gmra.mrb[92].mxu1 %vm552_vm1, %v3157_v48 }
0x2103   : > { %v3220_v51 = vpop.f32.mrb[92].mxu1 }
0x2104   : > { %v3221_v52 = vadd.f32 %v3596_v50, %v3220_v51  ;;  %v4014_v53 = vpop.f32.mrb[93].mxu1 }
0x2105   : > { %v3223_v54 = vpop.f32.mrb[94].mxu1 }
0x2106   : > { %v3224_v55 = vadd.f32 %v3596_v50, %v3223_v54  ;;  %v4015_v56 = vpop.f32.mrb[95].mxu1  ;;  %v3227_v30 = vmax.f32 %v3221_v52, 0.0 }
0x2108   : > { %v3228_v57 = vmax.f32 %v3224_v55, 0.0 }
0x210a   : > { %v3229_v58 = vpack.c.bf16 %v3228_v57, %v3227_v30 }
0x210c   : > { %4025 = vmatmul.mubr.msk.bf16.vlgmr.msra.gmra.mrb[84].mxu0 %vm1851_vm4, %v3229_v58 }
0x21df   : > { %v3308_v36 = vpop.f32.mrb[84].mxu0 }
0x21e0   : > { %v3309_v59 = vadd.f32 %v3609_v0, %v3308_v36  ;;  %v4026_v60 = vpop.f32.mrb[85].mxu0 }
0x21e1   : > { %v3311_v61 = vpop.f32.mrb[86].mxu0 }
0x21e2   : > { %v3312_v62 = vadd.f32 %v3609_v0, %v3311_v61  ;;  %v4027_v63 = vpop.f32.mrb[87].mxu0  ;;  %v3315_v1 = vadd.f32 %v3309_v59, %v3155_v47 }
0x21e4   : > { %v3317_v2 = vsel %vm552_vm1, %v3315_v1, 0.0  ;;  %v3316_v4 = vadd.f32 %v3312_v62, %v3156_v39 }
0x21e5   : > { %3318 = vadd.xlane.f32.xlu1 %v3317_v2 }
0x21e6   : > { %v3320_v5 = vsel %vm552_vm1, %v3316_v4, 0.0 }
0x21e7   : > { %3321 = vadd.xlane.f32.xlu0 %v3320_v5 }
0x2272   : > { %v3319_v6 = vpop.xlane.xlu1 %3318 }
0x2273   : > { %v3323_v7 = vmul.f32 0.03125, %v3319_v6 }
0x2274   : > { %v3322_v8 = vpop.xlane.xlu0 %3321 }
0x2275   : > { %v3325_v3 = vsub.f32 %v3315_v1, %v3323_v7  ;;  %v3324_v10 = vmul.f32 0.03125, %v3322_v8 }
0x2277   : > { %v3326_v11 = vsub.f32 %v3316_v4, %v3324_v10  ;;  %v3327_v13 = vmul.f32 %v3325_v3, %v3325_v3 }
0x2279   : > { %v3329_v14 = vsel %vm552_vm1, %v3327_v13, 0.0  ;;  %v3328_v15 = vmul.f32 %v3326_v11, %v3326_v11 }
0x227a   : > { %3330 = vadd.xlane.f32.xlu1 %v3329_v14 }
0x227b   : > { %v3332_v17 = vsel %vm552_vm1, %v3328_v15, 0.0 }
0x227c   : > { %3333 = vadd.xlane.f32.xlu0 %v3332_v17 }
0x2307   : > { %v3331_v19 = vpop.xlane.xlu1 %3330 }
0x2308   : > { %v3335_v20 = vmul.f32 0.03125, %v3331_v19 }
0x2309   : > { %v3334_v24 = vpop.xlane.xlu0 %3333 }
0x230a   : > { %v3337_v25 = vadd.f32 1e-05, %v3335_v20  ;;  %v3336_v16 = vmul.f32 0.03125, %v3334_v24 }
0x230c   : > { %4227 = vrsqrt.f32 %v3337_v25  ;;  %v3338_v26 = vadd.f32 1e-05, %v3336_v16 }
0x230e   : > { %4229 = vrsqrt.f32 %v3338_v26 }
0x2316   : > { %v4228_v27 = vpop.eup %4227 }
0x2317   : > { %v3341_v29 = vmul.f32 %v4228_v27, %v3325_v3 }
0x2318   : > { %v4230_v22 = vpop.eup %4229 }
0x2319   : > { %v3351_v9 = vmul.f32 %v3616_v21, %v3341_v29  ;;  %v3342_v31 = vmul.f32 %v4230_v22, %v3326_v11 }
0x231b   : > { %v3361_v32 = vadd.f32 %v3618_v23, %v3351_v9  ;;  %v3352_v33 = vmul.f32 %v3616_v21, %v3342_v31 }
0x231d   : > { %v3627_v34 = vpack.c.bf16 %v3361_v32, %v3361_v32  ;;  %v3362_v38 = vadd.f32 %v3618_v23, %v3352_v33 }
0x231f   : > { %v3628_v12 = vpack.c.bf16 %v3362_v38, %v3362_v38  ;;  %3372 = vst.msk [vmem:[%s516_s17] sm:$0xf] %vm3371_vm5, %v3627_v34 }
0x2321   : > { %3373 = vst.msk [vmem:[%s516_s17 + $0x4] sm:$0xf] %vm3371_vm5, %v3628_v12 }
0x2322   : > { %4386 = shalt.err (!%p4383_p13)
}
0x2323   : > { %s4387_s22 = scalar_lea.hbm %s5319_s25, 128  ;;  %s4391_s10 = scalar_lea.hbm %s5439_s9, 256 }
0x2324   : > { %p4388_p9 = scmp.ne.s32.totalorder %s5319_s25, %s4387_s22  ;;  %p4392_p4 = scmp.lt.u32.totalorder %s5319_s25, %s5439_s9 }
0x2325   : > { %p4393_p8 = scmp.lt.u32.totalorder %s4391_s10, %s4387_s22  ;;  %p4395_p3 = scmp.lt.u32.totalorder %s4387_s22, %s5319_s25 }
0x2326   : > { %p4389_p0 = pnand %p4388_p9, %p4714_p10 }
0x2327   : > { %p4394_p6 = por %p4393_p8, %p4392_p4 }
0x2328   : > { %p4390_p11 = pneg %p4389_p0 }
0x2329   : > { %p4396_p5 = por %p4395_p3, %p4394_p6 }
0x232b   : > { %p4397_p7 = pnand %p4396_p5, %p4390_p11 }
0x232d   : > { %4400 = shalt.err (!%p4397_p7)
}
0x232e   : > { %s4472_s14 = smov 4   ;;  %s5440_s11 = smov 64  }
0x232f   : > { %s5441_s0 = scalar_lea.sflag [#allocation4], %s4766_s20 }
0x2330   : > { %4046 = dma.vmem_to_hbm [thread:$0]  (%p4714_p10), %s5321_s21, 128, %s5319_s25, %s5441_s0, %s5440_s11, %s5440_s11, %s4472_s14  }
0x2331 PF: > { %s5442_s17 = sld [smem:[#allocation16_spill]]  ;;  %s5443_s29 = sld [smem:[#allocation17_spill]] }
0x2332   : > { %p5445_p1 = scmp.ge.s32.totalorder %s4447_s28, 2 }
0x2337   : > { %s3403_s19 = sand.u32 1, %s5442_s17   ;;  %p5444_p12 = scmp.ne.s32.totalorder %s5443_s29, 0 }
0x2338   : > { %s3404_s22 = scalar_lea.sflag [#allocation4], %s3403_s19 }
0x2339   : > { %p4066_p2 = pnand %p5445_p1, %p5444_p12 }
0x233b   : > { %4430 = dma.done.wait (!%p4066_p2), %s3404_s22, 128  }
0x233c   : > { %4432 = vsyncadd (!%p4066_p2), %s3404_s22, 4294967168  ;;  %p28_p13 = scmp.ge.s32.totalorder %s4704_s13, 4   ;;  %s5446_s25 = smov %s4439_s26 }
0x233d   : > { %s5447_s26 = smov %s4443_s27  ;;  %s5448_s27 = smov %s4720_s30 }
0x233e   : > { %s5449_s28 = smov %s4704_s13  ;;  %30 = sbr.rel (!%p28_p13) target bundleno = 14 (0xe), region = 145 }
0x2345   :  { %3409 = vsyncpa [#allocation3], 1 }
0x2346   :  { %3411 = vsyncpa [#allocation3 + $0x1], 1 }
0x2347   :  { %3412 = vsyncpa [#allocation6], 1 }
0x2348   :  { %3413 = vsyncpa [#allocation9], 1 }
0x2349   :  { %3414 = vsyncpa [#allocation4], 1 }
0x234a   :  { %3416 = vsyncpa [#allocation4 + $0x1], 1 }

</bundles_post_ra>
